<compile_context>
chip_gen: v7x
topology: tpu7x:2x2x1
jax: 0.10.0
libtpu: 0.0.40
codegen_flags: <defaults>
</compile_context>

<pallas_src>
import functools

import jax
import jax.numpy as jnp
from jax.experimental import pallas as pl
from jax.experimental.pallas import tpu as pltpu

LN_EPS = 1e-5  # PyTorch nn.LayerNorm default eps


def _layernorm(x, g, b):
    mean = jnp.mean(x, axis=-1, keepdims=True)
    var = jnp.mean((x - mean) ** 2, axis=-1, keepdims=True)
    return (x - mean) * jax.lax.rsqrt(var + LN_EPS) * g + b


def slot_attention_kernel(
    inputs_ref, slots0_ref,
    vecs_ref, wq_ref, wkv_ref, wih_ref, whh_ref, w1b_ref, w2_ref,
    out_ref,
    *, iters, eps, scale, dim, n_inputs, n_slots, batch_block):
    bb, N, S, D = batch_block, n_inputs, n_slots, dim
    rx, rs = bb * N, bb * S          # flattened input / slot row counts

    # Flatten the per-step batch block into rows (for bb=1 this is just a
    # leading-1 squeeze).
    x = inputs_ref[...].reshape(rx, D)
    slots = slots0_ref[...].reshape(rs, D)

    # ---- unpack the packed (1, D) vectors (single VMEM operand) ----
    V = vecs_ref[...]                              # (16, D)
    ni_g, ni_b = V[0:1], V[1:2]
    ns_g, ns_b = V[2:3], V[3:4]
    npf_g, npf_b = V[4:5], V[5:6]
    bq, bk, bv, b2 = V[6:7], V[7:8], V[8:9], V[9:10]
    bir, biz, bin_ = V[10:11], V[11:12], V[12:13]
    bhr, bhz, bhn = V[13:14], V[14:15], V[15:16]

    # ---- weights (hoisted out of the iteration loop) ----
    wq = wq_ref[...]
    wir, wiz, win = wih_ref[0], wih_ref[1], wih_ref[2]   # per-gate (D, D)
    whr, whz, whn = whh_ref[0], whh_ref[1], whh_ref[2]
    w1b = w1b_ref[...]                                   # (D+1, H)
    w1, b1 = w1b[0:D], w1b[D:D + 1]
    w2 = w2_ref[...]

    # norm_input once (inputs are loop-invariant).
    x = _layernorm(x, ni_g, ni_b)

    # Fused k|v projection: one MXU dot, sliced once before the loop.
    kv = jnp.dot(x, wkv_ref[...], preferred_element_type=jnp.float32)
    k = kv[:, 0:D] + bk          # (rx, D)
    v = kv[:, D:2 * D] + bv      # (rx, D)

    if bb > 1:
        # Block-diagonal mask so batches folded into the same step do not mix:
        # slot row i belongs to batch i // S, input column j to batch j // N.
        row_b = jax.lax.broadcasted_iota(jnp.int32, (rs, rx), 0) // S
        col_b = jax.lax.broadcasted_iota(jnp.int32, (rs, rx), 1) // N
        same = row_b == col_b
        neg_mask = jnp.where(same, 0.0, -1e30).astype(jnp.float32)
        blk_mask = same.astype(jnp.float32)

    for _ in range(iters):            # static unroll, iters is small (5)
        slots_prev = slots
        slots_n = _layernorm(slots, ns_g, ns_b)
        q = jnp.dot(slots_n, wq, preferred_element_type=jnp.float32) + bq

        # Contract on the D axis of both operands -> no k transpose needed.
        dots = jnp.einsum("sd,nd->sn", q, k,
                          preferred_element_type=jnp.float32) * scale
        if bb > 1:
            dots = dots + neg_mask

        # softmax over the slot axis (rows), as in torch softmax(dim=1).
        m = jnp.max(dots, axis=0, keepdims=True)
        e = jnp.exp(dots - m)
        attn = e * pl.reciprocal(jnp.sum(e, axis=0, keepdims=True), approx=True)
        attn = attn + eps
        if bb > 1:
            attn = attn * blk_mask
        attn = attn * pl.reciprocal(
            jnp.sum(attn, axis=1, keepdims=True), approx=True)

        updates = jnp.dot(attn, v, preferred_element_type=jnp.float32)   # (rs, D)

        # GRUCell(input=updates, hidden=slots_prev), per-gate weights (r, z, n).
        r = jax.nn.sigmoid(
            jnp.dot(updates, wir, preferred_element_type=jnp.float32) + bir +
            jnp.dot(slots_prev, whr, preferred_element_type=jnp.float32) + bhr)
        z = jax.nn.sigmoid(
            jnp.dot(updates, wiz, preferred_element_type=jnp.float32) + biz +
            jnp.dot(slots_prev, whz, preferred_element_type=jnp.float32) + bhz)
        nt = jnp.tanh(
            jnp.dot(updates, win, preferred_element_type=jnp.float32) + bin_ +
            r * (jnp.dot(slots_prev, whn, preferred_element_type=jnp.float32) + bhn))
        slots = (1.0 - z) * nt + z * slots_prev

        # Residual MLP with pre-LayerNorm.
        h = _layernorm(slots, npf_g, npf_b)
        h1 = jnp.maximum(
            jnp.dot(h, w1, preferred_element_type=jnp.float32) + b1, 0.0)
        slots = slots + jnp.dot(h1, w2, preferred_element_type=jnp.float32) + b2

    out_ref[...] = slots.reshape(bb, S, D)


def pack_params(p):
    """Pack logical parameters into the 7 kernel operands."""
    vecs = jnp.concatenate(
        [p["ni_g"], p["ni_b"], p["ns_g"], p["ns_b"], p["npf_g"], p["npf_b"],
         p["bq"], p["bk"], p["bv"], p["b2"],
         p["bir"], p["biz"], p["bin"], p["bhr"], p["bhz"], p["bhn"]], axis=0)
    wkv = jnp.concatenate([p["wk"], p["wv"]], axis=1)            # (D, 2D)
    wih_g = jnp.stack([p["wir"], p["wiz"], p["win"]], axis=0)    # (3, D, D)
    whh_g = jnp.stack([p["whr"], p["whz"], p["whn"]], axis=0)    # (3, D, D)
    w1b = jnp.concatenate([p["w1"], p["b1"]], axis=0)            # (D+1, H)
    return (vecs, p["wq"], wkv, wih_g, whh_g, w1b, p["w2"])


def slot_attention_forward(inputs, slots_init, params, *, iters=5, eps=1e-8,
                           batch_block=None):
    b, n, d = inputs.shape
    s = slots_init.shape[1]
    scale = float(d) ** (-0.5)

    if batch_block is None:
        # Keep >= 2 grid steps when possible (one per v7x TensorCore); larger
        # batches fold b//2 elements per step to amortize grid overhead.
        batch_block = b // 2 if (b >= 2 and b % 2 == 0) else 1
    assert b % batch_block == 0, "batch must be divisible by batch_block"
    num_steps = b // batch_block

    packed = pack_params(params)

    def data_spec(rows):
        return pl.BlockSpec((batch_block, rows, d), lambda i: (i, 0, 0))

    in_specs = [data_spec(n), data_spec(s)]
    # Packed parameters are passed whole, replicated across grid steps.
    in_specs += [pl.BlockSpec(p.shape, lambda i, nd=p.ndim: (0,) * nd)
                 for p in packed]

    kernel = functools.partial(
        slot_attention_kernel, iters=iters, eps=eps, scale=scale, dim=d,
        n_inputs=n, n_slots=s, batch_block=batch_block)

    return pl.pallas_call(
        kernel,
        out_shape=jax.ShapeDtypeStruct((b, s, d), jnp.float32),
        grid_spec=pltpu.PrefetchScalarGridSpec(
            num_scalar_prefetch=0,
            grid=(num_steps,),
            in_specs=in_specs,
            out_specs=pl.BlockSpec((batch_block, s, d), lambda i: (i, 0, 0)),
        ),
        compiler_params=pltpu.CompilerParams(
            dimension_semantics=("parallel",)),
    )(inputs, slots_init, *packed)


def reference_forward(inputs, slots_init, p, *, iters=5, eps=1e-8):
    """Pure-JAX reference identical to the PyTorch forward (for checking)."""
    b, n, d = inputs.shape
    scale = float(d) ** (-0.5)

    def ln(x, g, b_):
        m = x.mean(-1, keepdims=True)
        v = ((x - m) ** 2).mean(-1, keepdims=True)
        return (x - m) / jnp.sqrt(v + LN_EPS) * g + b_

    x = ln(inputs, p["ni_g"], p["ni_b"])
    k = x @ p["wk"] + p["bk"]
    v = x @ p["wv"] + p["bv"]
    slots = slots_init
    for _ in range(iters):
        slots_prev = slots
        q = ln(slots, p["ns_g"], p["ns_b"]) @ p["wq"] + p["bq"]
        dots = jnp.einsum("bid,bjd->bij", q, k) * scale
        attn = jax.nn.softmax(dots, axis=1) + eps
        attn = attn / attn.sum(axis=-1, keepdims=True)
        updates = jnp.einsum("bjd,bij->bid", v, attn)
        r = jax.nn.sigmoid(updates @ p["wir"] + p["bir"]
                           + slots_prev @ p["whr"] + p["bhr"])
        z = jax.nn.sigmoid(updates @ p["wiz"] + p["biz"]
                           + slots_prev @ p["whz"] + p["bhz"])
        nt = jnp.tanh(updates @ p["win"] + p["bin"]
                      + r * (slots_prev @ p["whn"] + p["bhn"]))
        slots = (1.0 - z) * nt + z * slots_prev
        h = ln(slots, p["npf_g"], p["npf_b"])
        slots = slots + jnp.maximum(h @ p["w1"] + p["b1"], 0.0) @ p["w2"] + p["b2"]
    return slots


def init_params(key, dim, hidden_dim):
    hidden_dim = max(dim, hidden_dim)
    ks = jax.random.split(key, 20)
    f32 = jnp.float32
    nrm = lambda k, shp: 0.1 * jax.random.normal(k, shp, f32)
    return {
        # LayerNorm params (PyTorch init: gamma=1, beta=0)
        "ni_g": jnp.ones((1, dim), f32), "ni_b": jnp.zeros((1, dim), f32),
        "ns_g": jnp.ones((1, dim), f32), "ns_b": jnp.zeros((1, dim), f32),
        "npf_g": jnp.ones((1, dim), f32), "npf_b": jnp.zeros((1, dim), f32),
        # Linear weights, stored (in, out)
        "wq": nrm(ks[0], (dim, dim)), "bq": nrm(ks[1], (1, dim)),
        "wk": nrm(ks[2], (dim, dim)), "bk": nrm(ks[3], (1, dim)),
        "wv": nrm(ks[4], (dim, dim)), "bv": nrm(ks[5], (1, dim)),
        # GRUCell, per-gate (torch gate order r, z, n), weights stored (in, out)
        "wir": nrm(ks[6], (dim, dim)), "wiz": nrm(ks[7], (dim, dim)),
        "win": nrm(ks[8], (dim, dim)),
        "whr": nrm(ks[9], (dim, dim)), "whz": nrm(ks[10], (dim, dim)),
        "whn": nrm(ks[11], (dim, dim)),
        "bir": nrm(ks[12], (1, dim)), "biz": nrm(ks[13], (1, dim)),
        "bin": nrm(ks[14], (1, dim)),
        "bhr": nrm(ks[15], (1, dim)), "bhz": nrm(ks[16], (1, dim)),
        "bhn": nrm(ks[17], (1, dim)),
        # MLP: Linear(dim, hidden) -> ReLU -> Linear(hidden, dim)
        "w1": nrm(ks[18], (dim, hidden_dim)),
        "b1": jnp.zeros((1, hidden_dim), f32),
        "w2": nrm(ks[19], (hidden_dim, dim)),
        "b2": jnp.zeros((1, dim), f32),
    }


if __name__ == "__main__":
    B, N, D = 2, 8, 32          # batch, input sequence length, feature dim
    NUM_SLOTS, HIDDEN = 4, 128
    ITERS, EPS = 5, 1e-8

    root = jax.random.PRNGKey(0)
    k_in, k_mu, k_sig, k_noise, k_par = jax.random.split(root, 5)

    inputs = jax.random.normal(k_in, (B, N, D), jnp.float32)

    # slots_mu / slots_sigma parameters (1, 1, D) and the slot init
    # slots = mu + sigma * randn; noise is drawn deterministically host-side.
    # TODO(synk): the in-forward torch.randn could instead use in-kernel
    # pltpu.prng_* if on-device sampling is required.
    slots_mu = jax.random.normal(k_mu, (1, 1, D), jnp.float32)
    slots_sigma = jax.random.normal(k_sig, (1, 1, D), jnp.float32)
    noise = jax.random.normal(k_noise, (B, NUM_SLOTS, D), jnp.float32)
    slots_init = slots_mu + slots_sigma * noise

    params = init_params(k_par, D, HIDDEN)

    out = slot_attention_forward(inputs, slots_init, params,
                                 iters=ITERS, eps=EPS)
    out = jax.block_until_ready(out)

    ref = reference_forward(inputs, slots_init, params, iters=ITERS, eps=EPS)
    assert out.shape == (B, NUM_SLOTS, D)
    # Slightly looser tolerance than the exact-divide version (2e-3) to cover
    # the EUP approximate reciprocals in the softmax normalizations.
    assert jnp.allclose(out, ref, rtol=5e-3, atol=5e-3), "mismatch vs reference"

    print("KERNEL_OK")
</pallas_src>

<mosaic_0001>
module attributes {stable_mosaic.version = 11 : i64} {
  func.func @slot_attention_kernel(%arg0: i32, %arg1: memref<1x8x32xf32, #tpu.memory_space<vmem>>, %arg2: memref<1x4x32xf32, #tpu.memory_space<vmem>>, %arg3: memref<16x32xf32, #tpu.memory_space<vmem>>, %arg4: memref<32x32xf32, #tpu.memory_space<vmem>>, %arg5: memref<32x64xf32, #tpu.memory_space<vmem>>, %arg6: memref<3x32x32xf32, #tpu.memory_space<vmem>>, %arg7: memref<3x32x32xf32, #tpu.memory_space<vmem>>, %arg8: memref<33x128xf32, #tpu.memory_space<vmem>>, %arg9: memref<128x32xf32, #tpu.memory_space<vmem>>, %arg10: memref<1x4x32xf32, #tpu.memory_space<vmem>>) attributes {dimension_semantics = [#tpu.dimension_semantics<parallel>], iteration_bounds = array<i64: 2>, scalar_prefetch = 0 : i64, scratch_operands = 0 : i64, tpu.core_type = #tpu.core_type<tc>, window_params = [{transform_indices = @transform_0, window_bounds = array<i64: 1, 8, 32>}, {transform_indices = @transform_1, window_bounds = array<i64: 1, 4, 32>}, {pipeline_mode = #tpu.pipeline_mode<synchronous>, transform_indices = @transform_2, window_bounds = array<i64: 16, 32>}, {pipeline_mode = #tpu.pipeline_mode<synchronous>, transform_indices = @transform_3, window_bounds = array<i64: 32, 32>}, {pipeline_mode = #tpu.pipeline_mode<synchronous>, transform_indices = @transform_4, window_bounds = array<i64: 32, 64>}, {pipeline_mode = #tpu.pipeline_mode<synchronous>, transform_indices = @transform_5, window_bounds = array<i64: 3, 32, 32>}, {pipeline_mode = #tpu.pipeline_mode<synchronous>, transform_indices = @transform_6, window_bounds = array<i64: 3, 32, 32>}, {pipeline_mode = #tpu.pipeline_mode<synchronous>, transform_indices = @transform_7, window_bounds = array<i64: 33, 128>}, {pipeline_mode = #tpu.pipeline_mode<synchronous>, transform_indices = @transform_8, window_bounds = array<i64: 128, 32>}, {transform_indices = @transform_9, window_bounds = array<i64: 1, 4, 32>}]} {
    %c0 = arith.constant 0 : index
    %c0_0 = arith.constant 0 : index
    %c0_1 = arith.constant 0 : index
    %0 = vector.load %arg1[%c0, %c0_0, %c0_1] : memref<1x8x32xf32, #tpu.memory_space<vmem>>, vector<1x8x32xf32>
    %1 = vector.shape_cast %0 : vector<1x8x32xf32> to vector<8x32xf32>
    %c0_2 = arith.constant 0 : index
    %c0_3 = arith.constant 0 : index
    %c0_4 = arith.constant 0 : index
    %2 = vector.load %arg2[%c0_2, %c0_3, %c0_4] : memref<1x4x32xf32, #tpu.memory_space<vmem>>, vector<1x4x32xf32>
    %3 = vector.shape_cast %2 : vector<1x4x32xf32> to vector<4x32xf32>
    %c0_5 = arith.constant 0 : index
    %c0_6 = arith.constant 0 : index
    %4 = vector.load %arg3[%c0_5, %c0_6] : memref<16x32xf32, #tpu.memory_space<vmem>>, vector<16x32xf32>
    %5 = vector.extract_strided_slice %4 {offsets = [0, 0], sizes = [1, 32], strides = [1, 1]} : vector<16x32xf32> to vector<1x32xf32>
    %6 = vector.extract_strided_slice %4 {offsets = [1, 0], sizes = [1, 32], strides = [1, 1]} : vector<16x32xf32> to vector<1x32xf32>
    %7 = vector.extract_strided_slice %4 {offsets = [2, 0], sizes = [1, 32], strides = [1, 1]} : vector<16x32xf32> to vector<1x32xf32>
    %8 = vector.extract_strided_slice %4 {offsets = [3, 0], sizes = [1, 32], strides = [1, 1]} : vector<16x32xf32> to vector<1x32xf32>
    %9 = vector.extract_strided_slice %4 {offsets = [4, 0], sizes = [1, 32], strides = [1, 1]} : vector<16x32xf32> to vector<1x32xf32>
    %10 = vector.extract_strided_slice %4 {offsets = [5, 0], sizes = [1, 32], strides = [1, 1]} : vector<16x32xf32> to vector<1x32xf32>
    %11 = vector.extract_strided_slice %4 {offsets = [6, 0], sizes = [1, 32], strides = [1, 1]} : vector<16x32xf32> to vector<1x32xf32>
    %12 = vector.extract_strided_slice %4 {offsets = [7, 0], sizes = [1, 32], strides = [1, 1]} : vector<16x32xf32> to vector<1x32xf32>
    %13 = vector.extract_strided_slice %4 {offsets = [8, 0], sizes = [1, 32], strides = [1, 1]} : vector<16x32xf32> to vector<1x32xf32>
    %14 = vector.extract_strided_slice %4 {offsets = [9, 0], sizes = [1, 32], strides = [1, 1]} : vector<16x32xf32> to vector<1x32xf32>
    %15 = vector.extract_strided_slice %4 {offsets = [10, 0], sizes = [1, 32], strides = [1, 1]} : vector<16x32xf32> to vector<1x32xf32>
    %16 = vector.extract_strided_slice %4 {offsets = [11, 0], sizes = [1, 32], strides = [1, 1]} : vector<16x32xf32> to vector<1x32xf32>
    %17 = vector.extract_strided_slice %4 {offsets = [12, 0], sizes = [1, 32], strides = [1, 1]} : vector<16x32xf32> to vector<1x32xf32>
    %18 = vector.extract_strided_slice %4 {offsets = [13, 0], sizes = [1, 32], strides = [1, 1]} : vector<16x32xf32> to vector<1x32xf32>
    %19 = vector.extract_strided_slice %4 {offsets = [14, 0], sizes = [1, 32], strides = [1, 1]} : vector<16x32xf32> to vector<1x32xf32>
    %20 = vector.extract_strided_slice %4 {offsets = [15, 0], sizes = [1, 32], strides = [1, 1]} : vector<16x32xf32> to vector<1x32xf32>
    %c0_7 = arith.constant 0 : index
    %c0_8 = arith.constant 0 : index
    %21 = vector.load %arg4[%c0_7, %c0_8] : memref<32x32xf32, #tpu.memory_space<vmem>>, vector<32x32xf32>
    %c0_9 = arith.constant 0 : index
    %c0_10 = arith.constant 0 : index
    %c0_11 = arith.constant 0 : index
    %22 = vector.load %arg6[%c0_9, %c0_10, %c0_11] : memref<3x32x32xf32, #tpu.memory_space<vmem>>, vector<1x32x32xf32>
    %23 = vector.shape_cast %22 : vector<1x32x32xf32> to vector<32x32xf32>
    %c1 = arith.constant 1 : index
    %c0_12 = arith.constant 0 : index
    %c0_13 = arith.constant 0 : index
    %24 = vector.load %arg6[%c1, %c0_12, %c0_13] : memref<3x32x32xf32, #tpu.memory_space<vmem>>, vector<1x32x32xf32>
    %25 = vector.shape_cast %24 : vector<1x32x32xf32> to vector<32x32xf32>
    %c2 = arith.constant 2 : index
    %c0_14 = arith.constant 0 : index
    %c0_15 = arith.constant 0 : index
    %26 = vector.load %arg6[%c2, %c0_14, %c0_15] : memref<3x32x32xf32, #tpu.memory_space<vmem>>, vector<1x32x32xf32>
    %27 = vector.shape_cast %26 : vector<1x32x32xf32> to vector<32x32xf32>
    %c0_16 = arith.constant 0 : index
    %c0_17 = arith.constant 0 : index
    %c0_18 = arith.constant 0 : index
    %28 = vector.load %arg7[%c0_16, %c0_17, %c0_18] : memref<3x32x32xf32, #tpu.memory_space<vmem>>, vector<1x32x32xf32>
    %29 = vector.shape_cast %28 : vector<1x32x32xf32> to vector<32x32xf32>
    %c1_19 = arith.constant 1 : index
    %c0_20 = arith.constant 0 : index
    %c0_21 = arith.constant 0 : index
    %30 = vector.load %arg7[%c1_19, %c0_20, %c0_21] : memref<3x32x32xf32, #tpu.memory_space<vmem>>, vector<1x32x32xf32>
    %31 = vector.shape_cast %30 : vector<1x32x32xf32> to vector<32x32xf32>
    %c2_22 = arith.constant 2 : index
    %c0_23 = arith.constant 0 : index
    %c0_24 = arith.constant 0 : index
    %32 = vector.load %arg7[%c2_22, %c0_23, %c0_24] : memref<3x32x32xf32, #tpu.memory_space<vmem>>, vector<1x32x32xf32>
    %33 = vector.shape_cast %32 : vector<1x32x32xf32> to vector<32x32xf32>
    %c0_25 = arith.constant 0 : index
    %c0_26 = arith.constant 0 : index
    %34 = vector.load %arg8[%c0_25, %c0_26] : memref<33x128xf32, #tpu.memory_space<vmem>>, vector<33x128xf32>
    %35 = vector.extract_strided_slice %34 {offsets = [0, 0], sizes = [32, 128], strides = [1, 1]} : vector<33x128xf32> to vector<32x128xf32>
    %36 = vector.extract_strided_slice %34 {offsets = [32, 0], sizes = [1, 128], strides = [1, 1]} : vector<33x128xf32> to vector<1x128xf32>
    %c0_27 = arith.constant 0 : index
    %c0_28 = arith.constant 0 : index
    %37 = vector.load %arg9[%c0_27, %c0_28] : memref<128x32xf32, #tpu.memory_space<vmem>>, vector<128x32xf32>
    %cst = arith.constant dense<0.000000e+00> : vector<8xf32>
    %38 = vector.multi_reduction <add>, %1, %cst [1] : vector<8x32xf32> to vector<8xf32>
    %39 = vector.shape_cast %38 : vector<8xf32> to vector<8x1xf32>
    %cst_29 = arith.constant 3.200000e+01 : f32
    %40 = vector.broadcast %cst_29 : f32 to vector<8x1xf32>
    %41 = arith.divf %39, %40 : vector<8x1xf32>
    %42 = vector.broadcast %41 : vector<8x1xf32> to vector<8x32xf32>
    %43 = arith.subf %1, %42 : vector<8x32xf32>
    %44 = arith.mulf %43, %43 : vector<8x32xf32>
    %cst_30 = arith.constant dense<0.000000e+00> : vector<8xf32>
    %45 = vector.multi_reduction <add>, %44, %cst_30 [1] : vector<8x32xf32> to vector<8xf32>
    %46 = vector.shape_cast %45 : vector<8xf32> to vector<8x1xf32>
    %cst_31 = arith.constant 3.200000e+01 : f32
    %47 = vector.broadcast %cst_31 : f32 to vector<8x1xf32>
    %48 = arith.divf %46, %47 : vector<8x1xf32>
    %49 = vector.broadcast %41 : vector<8x1xf32> to vector<8x32xf32>
    %50 = arith.subf %1, %49 : vector<8x32xf32>
    %cst_32 = arith.constant 9.99999974E-6 : f32
    %51 = vector.broadcast %cst_32 : f32 to vector<8x1xf32>
    %52 = arith.addf %48, %51 : vector<8x1xf32>
    %53 = math.rsqrt %52 : vector<8x1xf32>
    %54 = vector.broadcast %53 : vector<8x1xf32> to vector<8x32xf32>
    %55 = arith.mulf %50, %54 : vector<8x32xf32>
    %56 = vector.broadcast %5 : vector<1x32xf32> to vector<8x32xf32>
    %57 = arith.mulf %55, %56 : vector<8x32xf32>
    %58 = vector.broadcast %6 : vector<1x32xf32> to vector<8x32xf32>
    %59 = arith.addf %57, %58 : vector<8x32xf32>
    %c0_33 = arith.constant 0 : index
    %c0_34 = arith.constant 0 : index
    %60 = vector.load %arg5[%c0_33, %c0_34] : memref<32x64xf32, #tpu.memory_space<vmem>>, vector<32x64xf32>
    %cst_35 = arith.constant dense<0.000000e+00> : vector<8x64xf32>
    %61 = tpu.matmul %59, %60, %cst_35 {dimension_numbers = #tpu.dot_dimension_numbers<[1], [0], [0], [1], [0, 0, 1, 1], [], []>} : vector<8x32xf32>, vector<32x64xf32>, vector<8x64xf32> -> vector<8x64xf32>
    %62 = vector.extract_strided_slice %61 {offsets = [0, 0], sizes = [8, 32], strides = [1, 1]} : vector<8x64xf32> to vector<8x32xf32>
    %63 = vector.broadcast %12 : vector<1x32xf32> to vector<8x32xf32>
    %64 = arith.addf %62, %63 : vector<8x32xf32>
    %65 = vector.extract_strided_slice %61 {offsets = [0, 32], sizes = [8, 32], strides = [1, 1]} : vector<8x64xf32> to vector<8x32xf32>
    %66 = vector.broadcast %13 : vector<1x32xf32> to vector<8x32xf32>
    %67 = arith.addf %65, %66 : vector<8x32xf32>
    %cst_36 = arith.constant dense<0.000000e+00> : vector<4xf32>
    %68 = vector.multi_reduction <add>, %3, %cst_36 [1] : vector<4x32xf32> to vector<4xf32>
    %69 = vector.shape_cast %68 : vector<4xf32> to vector<4x1xf32>
    %cst_37 = arith.constant 3.200000e+01 : f32
    %70 = vector.broadcast %cst_37 : f32 to vector<4x1xf32>
    %71 = arith.divf %69, %70 : vector<4x1xf32>
    %72 = vector.broadcast %71 : vector<4x1xf32> to vector<4x32xf32>
    %73 = arith.subf %3, %72 : vector<4x32xf32>
    %74 = arith.mulf %73, %73 : vector<4x32xf32>
    %cst_38 = arith.constant dense<0.000000e+00> : vector<4xf32>
    %75 = vector.multi_reduction <add>, %74, %cst_38 [1] : vector<4x32xf32> to vector<4xf32>
    %76 = vector.shape_cast %75 : vector<4xf32> to vector<4x1xf32>
    %cst_39 = arith.constant 3.200000e+01 : f32
    %77 = vector.broadcast %cst_39 : f32 to vector<4x1xf32>
    %78 = arith.divf %76, %77 : vector<4x1xf32>
    %79 = vector.broadcast %71 : vector<4x1xf32> to vector<4x32xf32>
    %80 = arith.subf %3, %79 : vector<4x32xf32>
    %cst_40 = arith.constant 9.99999974E-6 : f32
    %81 = vector.broadcast %cst_40 : f32 to vector<4x1xf32>
    %82 = arith.addf %78, %81 : vector<4x1xf32>
    %83 = math.rsqrt %82 : vector<4x1xf32>
    %84 = vector.broadcast %83 : vector<4x1xf32> to vector<4x32xf32>
    %85 = arith.mulf %80, %84 : vector<4x32xf32>
    %86 = vector.broadcast %7 : vector<1x32xf32> to vector<4x32xf32>
    %87 = arith.mulf %85, %86 : vector<4x32xf32>
    %88 = vector.broadcast %8 : vector<1x32xf32> to vector<4x32xf32>
    %89 = arith.addf %87, %88 : vector<4x32xf32>
    %cst_41 = arith.constant dense<0.000000e+00> : vector<4x32xf32>
    %90 = tpu.matmul %89, %21, %cst_41 {dimension_numbers = #tpu.dot_dimension_numbers<[1], [0], [0], [1], [0, 0, 1, 1], [], []>} : vector<4x32xf32>, vector<32x32xf32>, vector<4x32xf32> -> vector<4x32xf32>
    %91 = vector.broadcast %11 : vector<1x32xf32> to vector<4x32xf32>
    %92 = arith.addf %90, %91 : vector<4x32xf32>
    "tpu.trace_start"() <{level = 10 : i32, message = "sd,nd->sn"}> : () -> ()
    %cst_42 = arith.constant dense<0.000000e+00> : vector<4x8xf32>
    %93 = tpu.matmul %92, %64, %cst_42 {dimension_numbers = #tpu.dot_dimension_numbers<[1], [1], [0], [0], [0, 0, 1, 0], [], []>} : vector<4x32xf32>, vector<8x32xf32>, vector<4x8xf32> -> vector<4x8xf32>
    "tpu.trace_stop"() : () -> ()
    %cst_43 = arith.constant 0.176776692 : f32
    %94 = vector.broadcast %cst_43 : f32 to vector<4x8xf32>
    %95 = arith.mulf %93, %94 : vector<4x8xf32>
    %cst_44 = arith.constant dense<0xFF800000> : vector<8xf32>
    %96 = vector.multi_reduction <maximumf>, %95, %cst_44 [0] : vector<4x8xf32> to vector<8xf32>
    %97 = vector.shape_cast %96 : vector<8xf32> to vector<1x8xf32>
    %98 = vector.broadcast %97 : vector<1x8xf32> to vector<4x8xf32>
    %99 = arith.subf %95, %98 : vector<4x8xf32>
    %100 = math.exp %99 : vector<4x8xf32>
    %cst_45 = arith.constant dense<0.000000e+00> : vector<8xf32>
    %101 = vector.multi_reduction <add>, %100, %cst_45 [0] : vector<4x8xf32> to vector<8xf32>
    %102 = vector.shape_cast %101 : vector<8xf32> to vector<1x8xf32>
    %103 = tpu.reciprocal %102 {approx = true} : vector<1x8xf32> -> vector<1x8xf32>
    %104 = vector.broadcast %103 : vector<1x8xf32> to vector<4x8xf32>
    %105 = arith.mulf %100, %104 : vector<4x8xf32>
    %cst_46 = arith.constant 9.99999993E-9 : f32
    %106 = vector.broadcast %cst_46 : f32 to vector<4x8xf32>
    %107 = arith.addf %105, %106 : vector<4x8xf32>
    %cst_47 = arith.constant dense<0.000000e+00> : vector<4xf32>
    %108 = vector.multi_reduction <add>, %107, %cst_47 [1] : vector<4x8xf32> to vector<4xf32>
    %109 = vector.shape_cast %108 : vector<4xf32> to vector<4x1xf32>
    %110 = tpu.reciprocal %109 {approx = true} : vector<4x1xf32> -> vector<4x1xf32>
    %111 = vector.broadcast %110 : vector<4x1xf32> to vector<4x8xf32>
    %112 = arith.mulf %107, %111 : vector<4x8xf32>
    %cst_48 = arith.constant dense<0.000000e+00> : vector<4x32xf32>
    %113 = tpu.matmul %112, %67, %cst_48 {dimension_numbers = #tpu.dot_dimension_numbers<[1], [0], [0], [1], [0, 0, 1, 1], [], []>} : vector<4x8xf32>, vector<8x32xf32>, vector<4x32xf32> -> vector<4x32xf32>
    %cst_49 = arith.constant dense<0.000000e+00> : vector<4x32xf32>
    %114 = tpu.matmul %113, %23, %cst_49 {dimension_numbers = #tpu.dot_dimension_numbers<[1], [0], [0], [1], [0, 0, 1, 1], [], []>} : vector<4x32xf32>, vector<32x32xf32>, vector<4x32xf32> -> vector<4x32xf32>
    %115 = vector.broadcast %15 : vector<1x32xf32> to vector<4x32xf32>
    %116 = arith.addf %114, %115 : vector<4x32xf32>
    %cst_50 = arith.constant dense<0.000000e+00> : vector<4x32xf32>
    %117 = tpu.matmul %3, %29, %cst_50 {dimension_numbers = #tpu.dot_dimension_numbers<[1], [0], [0], [1], [0, 0, 1, 1], [], []>} : vector<4x32xf32>, vector<32x32xf32>, vector<4x32xf32> -> vector<4x32xf32>
    %118 = arith.addf %116, %117 : vector<4x32xf32>
    %119 = vector.broadcast %18 : vector<1x32xf32> to vector<4x32xf32>
    %120 = arith.addf %118, %119 : vector<4x32xf32>
    %121 = arith.negf %120 : vector<4x32xf32>
    %122 = math.exp %121 : vector<4x32xf32>
    %cst_51 = arith.constant 1.000000e+00 : f32
    %123 = vector.broadcast %cst_51 : f32 to vector<4x32xf32>
    %124 = arith.addf %123, %122 : vector<4x32xf32>
    %125 = arith.divf %123, %124 : vector<4x32xf32>
    %cst_52 = arith.constant dense<0.000000e+00> : vector<4x32xf32>
    %126 = tpu.matmul %113, %25, %cst_52 {dimension_numbers = #tpu.dot_dimension_numbers<[1], [0], [0], [1], [0, 0, 1, 1], [], []>} : vector<4x32xf32>, vector<32x32xf32>, vector<4x32xf32> -> vector<4x32xf32>
    %127 = vector.broadcast %16 : vector<1x32xf32> to vector<4x32xf32>
    %128 = arith.addf %126, %127 : vector<4x32xf32>
    %cst_53 = arith.constant dense<0.000000e+00> : vector<4x32xf32>
    %129 = tpu.matmul %3, %31, %cst_53 {dimension_numbers = #tpu.dot_dimension_numbers<[1], [0], [0], [1], [0, 0, 1, 1], [], []>} : vector<4x32xf32>, vector<32x32xf32>, vector<4x32xf32> -> vector<4x32xf32>
    %130 = arith.addf %128, %129 : vector<4x32xf32>
    %131 = vector.broadcast %19 : vector<1x32xf32> to vector<4x32xf32>
    %132 = arith.addf %130, %131 : vector<4x32xf32>
    %133 = arith.negf %132 : vector<4x32xf32>
    %134 = math.exp %133 : vector<4x32xf32>
    %cst_54 = arith.constant 1.000000e+00 : f32
    %135 = vector.broadcast %cst_54 : f32 to vector<4x32xf32>
    %136 = arith.addf %135, %134 : vector<4x32xf32>
    %137 = arith.divf %135, %136 : vector<4x32xf32>
    %cst_55 = arith.constant dense<0.000000e+00> : vector<4x32xf32>
    %138 = tpu.matmul %113, %27, %cst_55 {dimension_numbers = #tpu.dot_dimension_numbers<[1], [0], [0], [1], [0, 0, 1, 1], [], []>} : vector<4x32xf32>, vector<32x32xf32>, vector<4x32xf32> -> vector<4x32xf32>
    %139 = vector.broadcast %17 : vector<1x32xf32> to vector<4x32xf32>
    %140 = arith.addf %138, %139 : vector<4x32xf32>
    %cst_56 = arith.constant dense<0.000000e+00> : vector<4x32xf32>
    %141 = tpu.matmul %3, %33, %cst_56 {dimension_numbers = #tpu.dot_dimension_numbers<[1], [0], [0], [1], [0, 0, 1, 1], [], []>} : vector<4x32xf32>, vector<32x32xf32>, vector<4x32xf32> -> vector<4x32xf32>
    %142 = vector.broadcast %20 : vector<1x32xf32> to vector<4x32xf32>
    %143 = arith.addf %141, %142 : vector<4x32xf32>
    %144 = arith.mulf %125, %143 : vector<4x32xf32>
    %145 = arith.addf %140, %144 : vector<4x32xf32>
    %146 = math.tanh %145 : vector<4x32xf32>
    %cst_57 = arith.constant 1.000000e+00 : f32
    %147 = vector.broadcast %cst_57 : f32 to vector<4x32xf32>
    %148 = arith.subf %147, %137 : vector<4x32xf32>
    %149 = arith.mulf %148, %146 : vector<4x32xf32>
    %150 = arith.mulf %137, %3 : vector<4x32xf32>
    %151 = arith.addf %149, %150 : vector<4x32xf32>
    %cst_58 = arith.constant dense<0.000000e+00> : vector<4xf32>
    %152 = vector.multi_reduction <add>, %151, %cst_58 [1] : vector<4x32xf32> to vector<4xf32>
    %153 = vector.shape_cast %152 : vector<4xf32> to vector<4x1xf32>
    %cst_59 = arith.constant 3.200000e+01 : f32
    %154 = vector.broadcast %cst_59 : f32 to vector<4x1xf32>
    %155 = arith.divf %153, %154 : vector<4x1xf32>
    %156 = vector.broadcast %155 : vector<4x1xf32> to vector<4x32xf32>
    %157 = arith.subf %151, %156 : vector<4x32xf32>
    %158 = arith.mulf %157, %157 : vector<4x32xf32>
    %cst_60 = arith.constant dense<0.000000e+00> : vector<4xf32>
    %159 = vector.multi_reduction <add>, %158, %cst_60 [1] : vector<4x32xf32> to vector<4xf32>
    %160 = vector.shape_cast %159 : vector<4xf32> to vector<4x1xf32>
    %cst_61 = arith.constant 3.200000e+01 : f32
    %161 = vector.broadcast %cst_61 : f32 to vector<4x1xf32>
    %162 = arith.divf %160, %161 : vector<4x1xf32>
    %163 = vector.broadcast %155 : vector<4x1xf32> to vector<4x32xf32>
    %164 = arith.subf %151, %163 : vector<4x32xf32>
    %cst_62 = arith.constant 9.99999974E-6 : f32
    %165 = vector.broadcast %cst_62 : f32 to vector<4x1xf32>
    %166 = arith.addf %162, %165 : vector<4x1xf32>
    %167 = math.rsqrt %166 : vector<4x1xf32>
    %168 = vector.broadcast %167 : vector<4x1xf32> to vector<4x32xf32>
    %169 = arith.mulf %164, %168 : vector<4x32xf32>
    %170 = vector.broadcast %9 : vector<1x32xf32> to vector<4x32xf32>
    %171 = arith.mulf %169, %170 : vector<4x32xf32>
    %172 = vector.broadcast %10 : vector<1x32xf32> to vector<4x32xf32>
    %173 = arith.addf %171, %172 : vector<4x32xf32>
    %cst_63 = arith.constant dense<0.000000e+00> : vector<4x128xf32>
    %174 = tpu.matmul %173, %35, %cst_63 {dimension_numbers = #tpu.dot_dimension_numbers<[1], [0], [0], [1], [0, 0, 1, 1], [], []>} : vector<4x32xf32>, vector<32x128xf32>, vector<4x128xf32> -> vector<4x128xf32>
    %175 = vector.broadcast %36 : vector<1x128xf32> to vector<4x128xf32>
    %176 = arith.addf %174, %175 : vector<4x128xf32>
    %cst_64 = arith.constant 0.000000e+00 : f32
    %177 = vector.broadcast %cst_64 : f32 to vector<4x128xf32>
    %178 = arith.maximumf %176, %177 : vector<4x128xf32>
    %cst_65 = arith.constant dense<0.000000e+00> : vector<4x32xf32>
    %179 = tpu.matmul %178, %37, %cst_65 {dimension_numbers = #tpu.dot_dimension_numbers<[1], [0], [0], [1], [0, 0, 1, 1], [], []>} : vector<4x128xf32>, vector<128x32xf32>, vector<4x32xf32> -> vector<4x32xf32>
    %180 = arith.addf %151, %179 : vector<4x32xf32>
    %181 = vector.broadcast %14 : vector<1x32xf32> to vector<4x32xf32>
    %182 = arith.addf %180, %181 : vector<4x32xf32>
    %cst_66 = arith.constant dense<0.000000e+00> : vector<4xf32>
    %183 = vector.multi_reduction <add>, %182, %cst_66 [1] : vector<4x32xf32> to vector<4xf32>
    %184 = vector.shape_cast %183 : vector<4xf32> to vector<4x1xf32>
    %cst_67 = arith.constant 3.200000e+01 : f32
    %185 = vector.broadcast %cst_67 : f32 to vector<4x1xf32>
    %186 = arith.divf %184, %185 : vector<4x1xf32>
    %187 = vector.broadcast %186 : vector<4x1xf32> to vector<4x32xf32>
    %188 = arith.subf %182, %187 : vector<4x32xf32>
    %189 = arith.mulf %188, %188 : vector<4x32xf32>
    %cst_68 = arith.constant dense<0.000000e+00> : vector<4xf32>
    %190 = vector.multi_reduction <add>, %189, %cst_68 [1] : vector<4x32xf32> to vector<4xf32>
    %191 = vector.shape_cast %190 : vector<4xf32> to vector<4x1xf32>
    %cst_69 = arith.constant 3.200000e+01 : f32
    %192 = vector.broadcast %cst_69 : f32 to vector<4x1xf32>
    %193 = arith.divf %191, %192 : vector<4x1xf32>
    %194 = vector.broadcast %186 : vector<4x1xf32> to vector<4x32xf32>
    %195 = arith.subf %182, %194 : vector<4x32xf32>
    %cst_70 = arith.constant 9.99999974E-6 : f32
    %196 = vector.broadcast %cst_70 : f32 to vector<4x1xf32>
    %197 = arith.addf %193, %196 : vector<4x1xf32>
    %198 = math.rsqrt %197 : vector<4x1xf32>
    %199 = vector.broadcast %198 : vector<4x1xf32> to vector<4x32xf32>
    %200 = arith.mulf %195, %199 : vector<4x32xf32>
    %201 = vector.broadcast %7 : vector<1x32xf32> to vector<4x32xf32>
    %202 = arith.mulf %200, %201 : vector<4x32xf32>
    %203 = vector.broadcast %8 : vector<1x32xf32> to vector<4x32xf32>
    %204 = arith.addf %202, %203 : vector<4x32xf32>
    %cst_71 = arith.constant dense<0.000000e+00> : vector<4x32xf32>
    %205 = tpu.matmul %204, %21, %cst_71 {dimension_numbers = #tpu.dot_dimension_numbers<[1], [0], [0], [1], [0, 0, 1, 1], [], []>} : vector<4x32xf32>, vector<32x32xf32>, vector<4x32xf32> -> vector<4x32xf32>
    %206 = vector.broadcast %11 : vector<1x32xf32> to vector<4x32xf32>
    %207 = arith.addf %205, %206 : vector<4x32xf32>
    "tpu.trace_start"() <{level = 10 : i32, message = "sd,nd->sn"}> : () -> ()
    %cst_72 = arith.constant dense<0.000000e+00> : vector<4x8xf32>
    %208 = tpu.matmul %207, %64, %cst_72 {dimension_numbers = #tpu.dot_dimension_numbers<[1], [1], [0], [0], [0, 0, 1, 0], [], []>} : vector<4x32xf32>, vector<8x32xf32>, vector<4x8xf32> -> vector<4x8xf32>
    "tpu.trace_stop"() : () -> ()
    %cst_73 = arith.constant 0.176776692 : f32
    %209 = vector.broadcast %cst_73 : f32 to vector<4x8xf32>
    %210 = arith.mulf %208, %209 : vector<4x8xf32>
    %cst_74 = arith.constant dense<0xFF800000> : vector<8xf32>
    %211 = vector.multi_reduction <maximumf>, %210, %cst_74 [0] : vector<4x8xf32> to vector<8xf32>
    %212 = vector.shape_cast %211 : vector<8xf32> to vector<1x8xf32>
    %213 = vector.broadcast %212 : vector<1x8xf32> to vector<4x8xf32>
    %214 = arith.subf %210, %213 : vector<4x8xf32>
    %215 = math.exp %214 : vector<4x8xf32>
    %cst_75 = arith.constant dense<0.000000e+00> : vector<8xf32>
    %216 = vector.multi_reduction <add>, %215, %cst_75 [0] : vector<4x8xf32> to vector<8xf32>
    %217 = vector.shape_cast %216 : vector<8xf32> to vector<1x8xf32>
    %218 = tpu.reciprocal %217 {approx = true} : vector<1x8xf32> -> vector<1x8xf32>
    %219 = vector.broadcast %218 : vector<1x8xf32> to vector<4x8xf32>
    %220 = arith.mulf %215, %219 : vector<4x8xf32>
    %cst_76 = arith.constant 9.99999993E-9 : f32
    %221 = vector.broadcast %cst_76 : f32 to vector<4x8xf32>
    %222 = arith.addf %220, %221 : vector<4x8xf32>
    %cst_77 = arith.constant dense<0.000000e+00> : vector<4xf32>
    %223 = vector.multi_reduction <add>, %222, %cst_77 [1] : vector<4x8xf32> to vector<4xf32>
    %224 = vector.shape_cast %223 : vector<4xf32> to vector<4x1xf32>
    %225 = tpu.reciprocal %224 {approx = true} : vector<4x1xf32> -> vector<4x1xf32>
    %226 = vector.broadcast %225 : vector<4x1xf32> to vector<4x8xf32>
    %227 = arith.mulf %222, %226 : vector<4x8xf32>
    %cst_78 = arith.constant dense<0.000000e+00> : vector<4x32xf32>
    %228 = tpu.matmul %227, %67, %cst_78 {dimension_numbers = #tpu.dot_dimension_numbers<[1], [0], [0], [1], [0, 0, 1, 1], [], []>} : vector<4x8xf32>, vector<8x32xf32>, vector<4x32xf32> -> vector<4x32xf32>
    %cst_79 = arith.constant dense<0.000000e+00> : vector<4x32xf32>
    %229 = tpu.matmul %228, %23, %cst_79 {dimension_numbers = #tpu.dot_dimension_numbers<[1], [0], [0], [1], [0, 0, 1, 1], [], []>} : vector<4x32xf32>, vector<32x32xf32>, vector<4x32xf32> -> vector<4x32xf32>
    %230 = vector.broadcast %15 : vector<1x32xf32> to vector<4x32xf32>
    %231 = arith.addf %229, %230 : vector<4x32xf32>
    %cst_80 = arith.constant dense<0.000000e+00> : vector<4x32xf32>
    %232 = tpu.matmul %182, %29, %cst_80 {dimension_numbers = #tpu.dot_dimension_numbers<[1], [0], [0], [1], [0, 0, 1, 1], [], []>} : vector<4x32xf32>, vector<32x32xf32>, vector<4x32xf32> -> vector<4x32xf32>
    %233 = arith.addf %231, %232 : vector<4x32xf32>
    %234 = vector.broadcast %18 : vector<1x32xf32> to vector<4x32xf32>
    %235 = arith.addf %233, %234 : vector<4x32xf32>
    %236 = arith.negf %235 : vector<4x32xf32>
    %237 = math.exp %236 : vector<4x32xf32>
    %cst_81 = arith.constant 1.000000e+00 : f32
    %238 = vector.broadcast %cst_81 : f32 to vector<4x32xf32>
    %239 = arith.addf %238, %237 : vector<4x32xf32>
    %240 = arith.divf %238, %239 : vector<4x32xf32>
    %cst_82 = arith.constant dense<0.000000e+00> : vector<4x32xf32>
    %241 = tpu.matmul %228, %25, %cst_82 {dimension_numbers = #tpu.dot_dimension_numbers<[1], [0], [0], [1], [0, 0, 1, 1], [], []>} : vector<4x32xf32>, vector<32x32xf32>, vector<4x32xf32> -> vector<4x32xf32>
    %242 = vector.broadcast %16 : vector<1x32xf32> to vector<4x32xf32>
    %243 = arith.addf %241, %242 : vector<4x32xf32>
    %cst_83 = arith.constant dense<0.000000e+00> : vector<4x32xf32>
    %244 = tpu.matmul %182, %31, %cst_83 {dimension_numbers = #tpu.dot_dimension_numbers<[1], [0], [0], [1], [0, 0, 1, 1], [], []>} : vector<4x32xf32>, vector<32x32xf32>, vector<4x32xf32> -> vector<4x32xf32>
    %245 = arith.addf %243, %244 : vector<4x32xf32>
    %246 = vector.broadcast %19 : vector<1x32xf32> to vector<4x32xf32>
    %247 = arith.addf %245, %246 : vector<4x32xf32>
    %248 = arith.negf %247 : vector<4x32xf32>
    %249 = math.exp %248 : vector<4x32xf32>
    %cst_84 = arith.constant 1.000000e+00 : f32
    %250 = vector.broadcast %cst_84 : f32 to vector<4x32xf32>
    %251 = arith.addf %250, %249 : vector<4x32xf32>
    %252 = arith.divf %250, %251 : vector<4x32xf32>
    %cst_85 = arith.constant dense<0.000000e+00> : vector<4x32xf32>
    %253 = tpu.matmul %228, %27, %cst_85 {dimension_numbers = #tpu.dot_dimension_numbers<[1], [0], [0], [1], [0, 0, 1, 1], [], []>} : vector<4x32xf32>, vector<32x32xf32>, vector<4x32xf32> -> vector<4x32xf32>
    %254 = vector.broadcast %17 : vector<1x32xf32> to vector<4x32xf32>
    %255 = arith.addf %253, %254 : vector<4x32xf32>
    %cst_86 = arith.constant dense<0.000000e+00> : vector<4x32xf32>
    %256 = tpu.matmul %182, %33, %cst_86 {dimension_numbers = #tpu.dot_dimension_numbers<[1], [0], [0], [1], [0, 0, 1, 1], [], []>} : vector<4x32xf32>, vector<32x32xf32>, vector<4x32xf32> -> vector<4x32xf32>
    %257 = vector.broadcast %20 : vector<1x32xf32> to vector<4x32xf32>
    %258 = arith.addf %256, %257 : vector<4x32xf32>
    %259 = arith.mulf %240, %258 : vector<4x32xf32>
    %260 = arith.addf %255, %259 : vector<4x32xf32>
    %261 = math.tanh %260 : vector<4x32xf32>
    %cst_87 = arith.constant 1.000000e+00 : f32
    %262 = vector.broadcast %cst_87 : f32 to vector<4x32xf32>
    %263 = arith.subf %262, %252 : vector<4x32xf32>
    %264 = arith.mulf %263, %261 : vector<4x32xf32>
    %265 = arith.mulf %252, %182 : vector<4x32xf32>
    %266 = arith.addf %264, %265 : vector<4x32xf32>
    %cst_88 = arith.constant dense<0.000000e+00> : vector<4xf32>
    %267 = vector.multi_reduction <add>, %266, %cst_88 [1] : vector<4x32xf32> to vector<4xf32>
    %268 = vector.shape_cast %267 : vector<4xf32> to vector<4x1xf32>
    %cst_89 = arith.constant 3.200000e+01 : f32
    %269 = vector.broadcast %cst_89 : f32 to vector<4x1xf32>
    %270 = arith.divf %268, %269 : vector<4x1xf32>
    %271 = vector.broadcast %270 : vector<4x1xf32> to vector<4x32xf32>
    %272 = arith.subf %266, %271 : vector<4x32xf32>
    %273 = arith.mulf %272, %272 : vector<4x32xf32>
    %cst_90 = arith.constant dense<0.000000e+00> : vector<4xf32>
    %274 = vector.multi_reduction <add>, %273, %cst_90 [1] : vector<4x32xf32> to vector<4xf32>
    %275 = vector.shape_cast %274 : vector<4xf32> to vector<4x1xf32>
    %cst_91 = arith.constant 3.200000e+01 : f32
    %276 = vector.broadcast %cst_91 : f32 to vector<4x1xf32>
    %277 = arith.divf %275, %276 : vector<4x1xf32>
    %278 = vector.broadcast %270 : vector<4x1xf32> to vector<4x32xf32>
    %279 = arith.subf %266, %278 : vector<4x32xf32>
    %cst_92 = arith.constant 9.99999974E-6 : f32
    %280 = vector.broadcast %cst_92 : f32 to vector<4x1xf32>
    %281 = arith.addf %277, %280 : vector<4x1xf32>
    %282 = math.rsqrt %281 : vector<4x1xf32>
    %283 = vector.broadcast %282 : vector<4x1xf32> to vector<4x32xf32>
    %284 = arith.mulf %279, %283 : vector<4x32xf32>
    %285 = vector.broadcast %9 : vector<1x32xf32> to vector<4x32xf32>
    %286 = arith.mulf %284, %285 : vector<4x32xf32>
    %287 = vector.broadcast %10 : vector<1x32xf32> to vector<4x32xf32>
    %288 = arith.addf %286, %287 : vector<4x32xf32>
    %cst_93 = arith.constant dense<0.000000e+00> : vector<4x128xf32>
    %289 = tpu.matmul %288, %35, %cst_93 {dimension_numbers = #tpu.dot_dimension_numbers<[1], [0], [0], [1], [0, 0, 1, 1], [], []>} : vector<4x32xf32>, vector<32x128xf32>, vector<4x128xf32> -> vector<4x128xf32>
    %290 = vector.broadcast %36 : vector<1x128xf32> to vector<4x128xf32>
    %291 = arith.addf %289, %290 : vector<4x128xf32>
    %cst_94 = arith.constant 0.000000e+00 : f32
    %292 = vector.broadcast %cst_94 : f32 to vector<4x128xf32>
    %293 = arith.maximumf %291, %292 : vector<4x128xf32>
    %cst_95 = arith.constant dense<0.000000e+00> : vector<4x32xf32>
    %294 = tpu.matmul %293, %37, %cst_95 {dimension_numbers = #tpu.dot_dimension_numbers<[1], [0], [0], [1], [0, 0, 1, 1], [], []>} : vector<4x128xf32>, vector<128x32xf32>, vector<4x32xf32> -> vector<4x32xf32>
    %295 = arith.addf %266, %294 : vector<4x32xf32>
    %296 = vector.broadcast %14 : vector<1x32xf32> to vector<4x32xf32>
    %297 = arith.addf %295, %296 : vector<4x32xf32>
    %cst_96 = arith.constant dense<0.000000e+00> : vector<4xf32>
    %298 = vector.multi_reduction <add>, %297, %cst_96 [1] : vector<4x32xf32> to vector<4xf32>
    %299 = vector.shape_cast %298 : vector<4xf32> to vector<4x1xf32>
    %cst_97 = arith.constant 3.200000e+01 : f32
    %300 = vector.broadcast %cst_97 : f32 to vector<4x1xf32>
    %301 = arith.divf %299, %300 : vector<4x1xf32>
    %302 = vector.broadcast %301 : vector<4x1xf32> to vector<4x32xf32>
    %303 = arith.subf %297, %302 : vector<4x32xf32>
    %304 = arith.mulf %303, %303 : vector<4x32xf32>
    %cst_98 = arith.constant dense<0.000000e+00> : vector<4xf32>
    %305 = vector.multi_reduction <add>, %304, %cst_98 [1] : vector<4x32xf32> to vector<4xf32>
    %306 = vector.shape_cast %305 : vector<4xf32> to vector<4x1xf32>
    %cst_99 = arith.constant 3.200000e+01 : f32
    %307 = vector.broadcast %cst_99 : f32 to vector<4x1xf32>
    %308 = arith.divf %306, %307 : vector<4x1xf32>
    %309 = vector.broadcast %301 : vector<4x1xf32> to vector<4x32xf32>
    %310 = arith.subf %297, %309 : vector<4x32xf32>
    %cst_100 = arith.constant 9.99999974E-6 : f32
    %311 = vector.broadcast %cst_100 : f32 to vector<4x1xf32>
    %312 = arith.addf %308, %311 : vector<4x1xf32>
    %313 = math.rsqrt %312 : vector<4x1xf32>
    %314 = vector.broadcast %313 : vector<4x1xf32> to vector<4x32xf32>
    %315 = arith.mulf %310, %314 : vector<4x32xf32>
    %316 = vector.broadcast %7 : vector<1x32xf32> to vector<4x32xf32>
    %317 = arith.mulf %315, %316 : vector<4x32xf32>
    %318 = vector.broadcast %8 : vector<1x32xf32> to vector<4x32xf32>
    %319 = arith.addf %317, %318 : vector<4x32xf32>
    %cst_101 = arith.constant dense<0.000000e+00> : vector<4x32xf32>
    %320 = tpu.matmul %319, %21, %cst_101 {dimension_numbers = #tpu.dot_dimension_numbers<[1], [0], [0], [1], [0, 0, 1, 1], [], []>} : vector<4x32xf32>, vector<32x32xf32>, vector<4x32xf32> -> vector<4x32xf32>
    %321 = vector.broadcast %11 : vector<1x32xf32> to vector<4x32xf32>
    %322 = arith.addf %320, %321 : vector<4x32xf32>
    "tpu.trace_start"() <{level = 10 : i32, message = "sd,nd->sn"}> : () -> ()
    %cst_102 = arith.constant dense<0.000000e+00> : vector<4x8xf32>
    %323 = tpu.matmul %322, %64, %cst_102 {dimension_numbers = #tpu.dot_dimension_numbers<[1], [1], [0], [0], [0, 0, 1, 0], [], []>} : vector<4x32xf32>, vector<8x32xf32>, vector<4x8xf32> -> vector<4x8xf32>
    "tpu.trace_stop"() : () -> ()
    %cst_103 = arith.constant 0.176776692 : f32
    %324 = vector.broadcast %cst_103 : f32 to vector<4x8xf32>
    %325 = arith.mulf %323, %324 : vector<4x8xf32>
    %cst_104 = arith.constant dense<0xFF800000> : vector<8xf32>
    %326 = vector.multi_reduction <maximumf>, %325, %cst_104 [0] : vector<4x8xf32> to vector<8xf32>
    %327 = vector.shape_cast %326 : vector<8xf32> to vector<1x8xf32>
    %328 = vector.broadcast %327 : vector<1x8xf32> to vector<4x8xf32>
    %329 = arith.subf %325, %328 : vector<4x8xf32>
    %330 = math.exp %329 : vector<4x8xf32>
    %cst_105 = arith.constant dense<0.000000e+00> : vector<8xf32>
    %331 = vector.multi_reduction <add>, %330, %cst_105 [0] : vector<4x8xf32> to vector<8xf32>
    %332 = vector.shape_cast %331 : vector<8xf32> to vector<1x8xf32>
    %333 = tpu.reciprocal %332 {approx = true} : vector<1x8xf32> -> vector<1x8xf32>
    %334 = vector.broadcast %333 : vector<1x8xf32> to vector<4x8xf32>
    %335 = arith.mulf %330, %334 : vector<4x8xf32>
    %cst_106 = arith.constant 9.99999993E-9 : f32
    %336 = vector.broadcast %cst_106 : f32 to vector<4x8xf32>
    %337 = arith.addf %335, %336 : vector<4x8xf32>
    %cst_107 = arith.constant dense<0.000000e+00> : vector<4xf32>
    %338 = vector.multi_reduction <add>, %337, %cst_107 [1] : vector<4x8xf32> to vector<4xf32>
    %339 = vector.shape_cast %338 : vector<4xf32> to vector<4x1xf32>
    %340 = tpu.reciprocal %339 {approx = true} : vector<4x1xf32> -> vector<4x1xf32>
    %341 = vector.broadcast %340 : vector<4x1xf32> to vector<4x8xf32>
    %342 = arith.mulf %337, %341 : vector<4x8xf32>
    %cst_108 = arith.constant dense<0.000000e+00> : vector<4x32xf32>
    %343 = tpu.matmul %342, %67, %cst_108 {dimension_numbers = #tpu.dot_dimension_numbers<[1], [0], [0], [1], [0, 0, 1, 1], [], []>} : vector<4x8xf32>, vector<8x32xf32>, vector<4x32xf32> -> vector<4x32xf32>
    %cst_109 = arith.constant dense<0.000000e+00> : vector<4x32xf32>
    %344 = tpu.matmul %343, %23, %cst_109 {dimension_numbers = #tpu.dot_dimension_numbers<[1], [0], [0], [1], [0, 0, 1, 1], [], []>} : vector<4x32xf32>, vector<32x32xf32>, vector<4x32xf32> -> vector<4x32xf32>
    %345 = vector.broadcast %15 : vector<1x32xf32> to vector<4x32xf32>
    %346 = arith.addf %344, %345 : vector<4x32xf32>
    %cst_110 = arith.constant dense<0.000000e+00> : vector<4x32xf32>
    %347 = tpu.matmul %297, %29, %cst_110 {dimension_numbers = #tpu.dot_dimension_numbers<[1], [0], [0], [1], [0, 0, 1, 1], [], []>} : vector<4x32xf32>, vector<32x32xf32>, vector<4x32xf32> -> vector<4x32xf32>
    %348 = arith.addf %346, %347 : vector<4x32xf32>
    %349 = vector.broadcast %18 : vector<1x32xf32> to vector<4x32xf32>
    %350 = arith.addf %348, %349 : vector<4x32xf32>
    %351 = arith.negf %350 : vector<4x32xf32>
    %352 = math.exp %351 : vector<4x32xf32>
    %cst_111 = arith.constant 1.000000e+00 : f32
    %353 = vector.broadcast %cst_111 : f32 to vector<4x32xf32>
    %354 = arith.addf %353, %352 : vector<4x32xf32>
    %355 = arith.divf %353, %354 : vector<4x32xf32>
    %cst_112 = arith.constant dense<0.000000e+00> : vector<4x32xf32>
    %356 = tpu.matmul %343, %25, %cst_112 {dimension_numbers = #tpu.dot_dimension_numbers<[1], [0], [0], [1], [0, 0, 1, 1], [], []>} : vector<4x32xf32>, vector<32x32xf32>, vector<4x32xf32> -> vector<4x32xf32>
    %357 = vector.broadcast %16 : vector<1x32xf32> to vector<4x32xf32>
    %358 = arith.addf %356, %357 : vector<4x32xf32>
    %cst_113 = arith.constant dense<0.000000e+00> : vector<4x32xf32>
    %359 = tpu.matmul %297, %31, %cst_113 {dimension_numbers = #tpu.dot_dimension_numbers<[1], [0], [0], [1], [0, 0, 1, 1], [], []>} : vector<4x32xf32>, vector<32x32xf32>, vector<4x32xf32> -> vector<4x32xf32>
    %360 = arith.addf %358, %359 : vector<4x32xf32>
    %361 = vector.broadcast %19 : vector<1x32xf32> to vector<4x32xf32>
    %362 = arith.addf %360, %361 : vector<4x32xf32>
    %363 = arith.negf %362 : vector<4x32xf32>
    %364 = math.exp %363 : vector<4x32xf32>
    %cst_114 = arith.constant 1.000000e+00 : f32
    %365 = vector.broadcast %cst_114 : f32 to vector<4x32xf32>
    %366 = arith.addf %365, %364 : vector<4x32xf32>
    %367 = arith.divf %365, %366 : vector<4x32xf32>
    %cst_115 = arith.constant dense<0.000000e+00> : vector<4x32xf32>
    %368 = tpu.matmul %343, %27, %cst_115 {dimension_numbers = #tpu.dot_dimension_numbers<[1], [0], [0], [1], [0, 0, 1, 1], [], []>} : vector<4x32xf32>, vector<32x32xf32>, vector<4x32xf32> -> vector<4x32xf32>
    %369 = vector.broadcast %17 : vector<1x32xf32> to vector<4x32xf32>
    %370 = arith.addf %368, %369 : vector<4x32xf32>
    %cst_116 = arith.constant dense<0.000000e+00> : vector<4x32xf32>
    %371 = tpu.matmul %297, %33, %cst_116 {dimension_numbers = #tpu.dot_dimension_numbers<[1], [0], [0], [1], [0, 0, 1, 1], [], []>} : vector<4x32xf32>, vector<32x32xf32>, vector<4x32xf32> -> vector<4x32xf32>
    %372 = vector.broadcast %20 : vector<1x32xf32> to vector<4x32xf32>
    %373 = arith.addf %371, %372 : vector<4x32xf32>
    %374 = arith.mulf %355, %373 : vector<4x32xf32>
    %375 = arith.addf %370, %374 : vector<4x32xf32>
    %376 = math.tanh %375 : vector<4x32xf32>
    %cst_117 = arith.constant 1.000000e+00 : f32
    %377 = vector.broadcast %cst_117 : f32 to vector<4x32xf32>
    %378 = arith.subf %377, %367 : vector<4x32xf32>
    %379 = arith.mulf %378, %376 : vector<4x32xf32>
    %380 = arith.mulf %367, %297 : vector<4x32xf32>
    %381 = arith.addf %379, %380 : vector<4x32xf32>
    %cst_118 = arith.constant dense<0.000000e+00> : vector<4xf32>
    %382 = vector.multi_reduction <add>, %381, %cst_118 [1] : vector<4x32xf32> to vector<4xf32>
    %383 = vector.shape_cast %382 : vector<4xf32> to vector<4x1xf32>
    %cst_119 = arith.constant 3.200000e+01 : f32
    %384 = vector.broadcast %cst_119 : f32 to vector<4x1xf32>
    %385 = arith.divf %383, %384 : vector<4x1xf32>
    %386 = vector.broadcast %385 : vector<4x1xf32> to vector<4x32xf32>
    %387 = arith.subf %381, %386 : vector<4x32xf32>
    %388 = arith.mulf %387, %387 : vector<4x32xf32>
    %cst_120 = arith.constant dense<0.000000e+00> : vector<4xf32>
    %389 = vector.multi_reduction <add>, %388, %cst_120 [1] : vector<4x32xf32> to vector<4xf32>
    %390 = vector.shape_cast %389 : vector<4xf32> to vector<4x1xf32>
    %cst_121 = arith.constant 3.200000e+01 : f32
    %391 = vector.broadcast %cst_121 : f32 to vector<4x1xf32>
    %392 = arith.divf %390, %391 : vector<4x1xf32>
    %393 = vector.broadcast %385 : vector<4x1xf32> to vector<4x32xf32>
    %394 = arith.subf %381, %393 : vector<4x32xf32>
    %cst_122 = arith.constant 9.99999974E-6 : f32
    %395 = vector.broadcast %cst_122 : f32 to vector<4x1xf32>
    %396 = arith.addf %392, %395 : vector<4x1xf32>
    %397 = math.rsqrt %396 : vector<4x1xf32>
    %398 = vector.broadcast %397 : vector<4x1xf32> to vector<4x32xf32>
    %399 = arith.mulf %394, %398 : vector<4x32xf32>
    %400 = vector.broadcast %9 : vector<1x32xf32> to vector<4x32xf32>
    %401 = arith.mulf %399, %400 : vector<4x32xf32>
    %402 = vector.broadcast %10 : vector<1x32xf32> to vector<4x32xf32>
    %403 = arith.addf %401, %402 : vector<4x32xf32>
    %cst_123 = arith.constant dense<0.000000e+00> : vector<4x128xf32>
    %404 = tpu.matmul %403, %35, %cst_123 {dimension_numbers = #tpu.dot_dimension_numbers<[1], [0], [0], [1], [0, 0, 1, 1], [], []>} : vector<4x32xf32>, vector<32x128xf32>, vector<4x128xf32> -> vector<4x128xf32>
    %405 = vector.broadcast %36 : vector<1x128xf32> to vector<4x128xf32>
    %406 = arith.addf %404, %405 : vector<4x128xf32>
    %cst_124 = arith.constant 0.000000e+00 : f32
    %407 = vector.broadcast %cst_124 : f32 to vector<4x128xf32>
    %408 = arith.maximumf %406, %407 : vector<4x128xf32>
    %cst_125 = arith.constant dense<0.000000e+00> : vector<4x32xf32>
    %409 = tpu.matmul %408, %37, %cst_125 {dimension_numbers = #tpu.dot_dimension_numbers<[1], [0], [0], [1], [0, 0, 1, 1], [], []>} : vector<4x128xf32>, vector<128x32xf32>, vector<4x32xf32> -> vector<4x32xf32>
    %410 = arith.addf %381, %409 : vector<4x32xf32>
    %411 = vector.broadcast %14 : vector<1x32xf32> to vector<4x32xf32>
    %412 = arith.addf %410, %411 : vector<4x32xf32>
    %cst_126 = arith.constant dense<0.000000e+00> : vector<4xf32>
    %413 = vector.multi_reduction <add>, %412, %cst_126 [1] : vector<4x32xf32> to vector<4xf32>
    %414 = vector.shape_cast %413 : vector<4xf32> to vector<4x1xf32>
    %cst_127 = arith.constant 3.200000e+01 : f32
    %415 = vector.broadcast %cst_127 : f32 to vector<4x1xf32>
    %416 = arith.divf %414, %415 : vector<4x1xf32>
    %417 = vector.broadcast %416 : vector<4x1xf32> to vector<4x32xf32>
    %418 = arith.subf %412, %417 : vector<4x32xf32>
    %419 = arith.mulf %418, %418 : vector<4x32xf32>
    %cst_128 = arith.constant dense<0.000000e+00> : vector<4xf32>
    %420 = vector.multi_reduction <add>, %419, %cst_128 [1] : vector<4x32xf32> to vector<4xf32>
    %421 = vector.shape_cast %420 : vector<4xf32> to vector<4x1xf32>
    %cst_129 = arith.constant 3.200000e+01 : f32
    %422 = vector.broadcast %cst_129 : f32 to vector<4x1xf32>
    %423 = arith.divf %421, %422 : vector<4x1xf32>
    %424 = vector.broadcast %416 : vector<4x1xf32> to vector<4x32xf32>
    %425 = arith.subf %412, %424 : vector<4x32xf32>
    %cst_130 = arith.constant 9.99999974E-6 : f32
    %426 = vector.broadcast %cst_130 : f32 to vector<4x1xf32>
    %427 = arith.addf %423, %426 : vector<4x1xf32>
    %428 = math.rsqrt %427 : vector<4x1xf32>
    %429 = vector.broadcast %428 : vector<4x1xf32> to vector<4x32xf32>
    %430 = arith.mulf %425, %429 : vector<4x32xf32>
    %431 = vector.broadcast %7 : vector<1x32xf32> to vector<4x32xf32>
    %432 = arith.mulf %430, %431 : vector<4x32xf32>
    %433 = vector.broadcast %8 : vector<1x32xf32> to vector<4x32xf32>
    %434 = arith.addf %432, %433 : vector<4x32xf32>
    %cst_131 = arith.constant dense<0.000000e+00> : vector<4x32xf32>
    %435 = tpu.matmul %434, %21, %cst_131 {dimension_numbers = #tpu.dot_dimension_numbers<[1], [0], [0], [1], [0, 0, 1, 1], [], []>} : vector<4x32xf32>, vector<32x32xf32>, vector<4x32xf32> -> vector<4x32xf32>
    %436 = vector.broadcast %11 : vector<1x32xf32> to vector<4x32xf32>
    %437 = arith.addf %435, %436 : vector<4x32xf32>
    "tpu.trace_start"() <{level = 10 : i32, message = "sd,nd->sn"}> : () -> ()
    %cst_132 = arith.constant dense<0.000000e+00> : vector<4x8xf32>
    %438 = tpu.matmul %437, %64, %cst_132 {dimension_numbers = #tpu.dot_dimension_numbers<[1], [1], [0], [0], [0, 0, 1, 0], [], []>} : vector<4x32xf32>, vector<8x32xf32>, vector<4x8xf32> -> vector<4x8xf32>
    "tpu.trace_stop"() : () -> ()
    %cst_133 = arith.constant 0.176776692 : f32
    %439 = vector.broadcast %cst_133 : f32 to vector<4x8xf32>
    %440 = arith.mulf %438, %439 : vector<4x8xf32>
    %cst_134 = arith.constant dense<0xFF800000> : vector<8xf32>
    %441 = vector.multi_reduction <maximumf>, %440, %cst_134 [0] : vector<4x8xf32> to vector<8xf32>
    %442 = vector.shape_cast %441 : vector<8xf32> to vector<1x8xf32>
    %443 = vector.broadcast %442 : vector<1x8xf32> to vector<4x8xf32>
    %444 = arith.subf %440, %443 : vector<4x8xf32>
    %445 = math.exp %444 : vector<4x8xf32>
    %cst_135 = arith.constant dense<0.000000e+00> : vector<8xf32>
    %446 = vector.multi_reduction <add>, %445, %cst_135 [0] : vector<4x8xf32> to vector<8xf32>
    %447 = vector.shape_cast %446 : vector<8xf32> to vector<1x8xf32>
    %448 = tpu.reciprocal %447 {approx = true} : vector<1x8xf32> -> vector<1x8xf32>
    %449 = vector.broadcast %448 : vector<1x8xf32> to vector<4x8xf32>
    %450 = arith.mulf %445, %449 : vector<4x8xf32>
    %cst_136 = arith.constant 9.99999993E-9 : f32
    %451 = vector.broadcast %cst_136 : f32 to vector<4x8xf32>
    %452 = arith.addf %450, %451 : vector<4x8xf32>
    %cst_137 = arith.constant dense<0.000000e+00> : vector<4xf32>
    %453 = vector.multi_reduction <add>, %452, %cst_137 [1] : vector<4x8xf32> to vector<4xf32>
    %454 = vector.shape_cast %453 : vector<4xf32> to vector<4x1xf32>
    %455 = tpu.reciprocal %454 {approx = true} : vector<4x1xf32> -> vector<4x1xf32>
    %456 = vector.broadcast %455 : vector<4x1xf32> to vector<4x8xf32>
    %457 = arith.mulf %452, %456 : vector<4x8xf32>
    %cst_138 = arith.constant dense<0.000000e+00> : vector<4x32xf32>
    %458 = tpu.matmul %457, %67, %cst_138 {dimension_numbers = #tpu.dot_dimension_numbers<[1], [0], [0], [1], [0, 0, 1, 1], [], []>} : vector<4x8xf32>, vector<8x32xf32>, vector<4x32xf32> -> vector<4x32xf32>
    %cst_139 = arith.constant dense<0.000000e+00> : vector<4x32xf32>
    %459 = tpu.matmul %458, %23, %cst_139 {dimension_numbers = #tpu.dot_dimension_numbers<[1], [0], [0], [1], [0, 0, 1, 1], [], []>} : vector<4x32xf32>, vector<32x32xf32>, vector<4x32xf32> -> vector<4x32xf32>
    %460 = vector.broadcast %15 : vector<1x32xf32> to vector<4x32xf32>
    %461 = arith.addf %459, %460 : vector<4x32xf32>
    %cst_140 = arith.constant dense<0.000000e+00> : vector<4x32xf32>
    %462 = tpu.matmul %412, %29, %cst_140 {dimension_numbers = #tpu.dot_dimension_numbers<[1], [0], [0], [1], [0, 0, 1, 1], [], []>} : vector<4x32xf32>, vector<32x32xf32>, vector<4x32xf32> -> vector<4x32xf32>
    %463 = arith.addf %461, %462 : vector<4x32xf32>
    %464 = vector.broadcast %18 : vector<1x32xf32> to vector<4x32xf32>
    %465 = arith.addf %463, %464 : vector<4x32xf32>
    %466 = arith.negf %465 : vector<4x32xf32>
    %467 = math.exp %466 : vector<4x32xf32>
    %cst_141 = arith.constant 1.000000e+00 : f32
    %468 = vector.broadcast %cst_141 : f32 to vector<4x32xf32>
    %469 = arith.addf %468, %467 : vector<4x32xf32>
    %470 = arith.divf %468, %469 : vector<4x32xf32>
    %cst_142 = arith.constant dense<0.000000e+00> : vector<4x32xf32>
    %471 = tpu.matmul %458, %25, %cst_142 {dimension_numbers = #tpu.dot_dimension_numbers<[1], [0], [0], [1], [0, 0, 1, 1], [], []>} : vector<4x32xf32>, vector<32x32xf32>, vector<4x32xf32> -> vector<4x32xf32>
    %472 = vector.broadcast %16 : vector<1x32xf32> to vector<4x32xf32>
    %473 = arith.addf %471, %472 : vector<4x32xf32>
    %cst_143 = arith.constant dense<0.000000e+00> : vector<4x32xf32>
    %474 = tpu.matmul %412, %31, %cst_143 {dimension_numbers = #tpu.dot_dimension_numbers<[1], [0], [0], [1], [0, 0, 1, 1], [], []>} : vector<4x32xf32>, vector<32x32xf32>, vector<4x32xf32> -> vector<4x32xf32>
    %475 = arith.addf %473, %474 : vector<4x32xf32>
    %476 = vector.broadcast %19 : vector<1x32xf32> to vector<4x32xf32>
    %477 = arith.addf %475, %476 : vector<4x32xf32>
    %478 = arith.negf %477 : vector<4x32xf32>
    %479 = math.exp %478 : vector<4x32xf32>
    %cst_144 = arith.constant 1.000000e+00 : f32
    %480 = vector.broadcast %cst_144 : f32 to vector<4x32xf32>
    %481 = arith.addf %480, %479 : vector<4x32xf32>
    %482 = arith.divf %480, %481 : vector<4x32xf32>
    %cst_145 = arith.constant dense<0.000000e+00> : vector<4x32xf32>
    %483 = tpu.matmul %458, %27, %cst_145 {dimension_numbers = #tpu.dot_dimension_numbers<[1], [0], [0], [1], [0, 0, 1, 1], [], []>} : vector<4x32xf32>, vector<32x32xf32>, vector<4x32xf32> -> vector<4x32xf32>
    %484 = vector.broadcast %17 : vector<1x32xf32> to vector<4x32xf32>
    %485 = arith.addf %483, %484 : vector<4x32xf32>
    %cst_146 = arith.constant dense<0.000000e+00> : vector<4x32xf32>
    %486 = tpu.matmul %412, %33, %cst_146 {dimension_numbers = #tpu.dot_dimension_numbers<[1], [0], [0], [1], [0, 0, 1, 1], [], []>} : vector<4x32xf32>, vector<32x32xf32>, vector<4x32xf32> -> vector<4x32xf32>
    %487 = vector.broadcast %20 : vector<1x32xf32> to vector<4x32xf32>
    %488 = arith.addf %486, %487 : vector<4x32xf32>
    %489 = arith.mulf %470, %488 : vector<4x32xf32>
    %490 = arith.addf %485, %489 : vector<4x32xf32>
    %491 = math.tanh %490 : vector<4x32xf32>
    %cst_147 = arith.constant 1.000000e+00 : f32
    %492 = vector.broadcast %cst_147 : f32 to vector<4x32xf32>
    %493 = arith.subf %492, %482 : vector<4x32xf32>
    %494 = arith.mulf %493, %491 : vector<4x32xf32>
    %495 = arith.mulf %482, %412 : vector<4x32xf32>
    %496 = arith.addf %494, %495 : vector<4x32xf32>
    %cst_148 = arith.constant dense<0.000000e+00> : vector<4xf32>
    %497 = vector.multi_reduction <add>, %496, %cst_148 [1] : vector<4x32xf32> to vector<4xf32>
    %498 = vector.shape_cast %497 : vector<4xf32> to vector<4x1xf32>
    %cst_149 = arith.constant 3.200000e+01 : f32
    %499 = vector.broadcast %cst_149 : f32 to vector<4x1xf32>
    %500 = arith.divf %498, %499 : vector<4x1xf32>
    %501 = vector.broadcast %500 : vector<4x1xf32> to vector<4x32xf32>
    %502 = arith.subf %496, %501 : vector<4x32xf32>
    %503 = arith.mulf %502, %502 : vector<4x32xf32>
    %cst_150 = arith.constant dense<0.000000e+00> : vector<4xf32>
    %504 = vector.multi_reduction <add>, %503, %cst_150 [1] : vector<4x32xf32> to vector<4xf32>
    %505 = vector.shape_cast %504 : vector<4xf32> to vector<4x1xf32>
    %cst_151 = arith.constant 3.200000e+01 : f32
    %506 = vector.broadcast %cst_151 : f32 to vector<4x1xf32>
    %507 = arith.divf %505, %506 : vector<4x1xf32>
    %508 = vector.broadcast %500 : vector<4x1xf32> to vector<4x32xf32>
    %509 = arith.subf %496, %508 : vector<4x32xf32>
    %cst_152 = arith.constant 9.99999974E-6 : f32
    %510 = vector.broadcast %cst_152 : f32 to vector<4x1xf32>
    %511 = arith.addf %507, %510 : vector<4x1xf32>
    %512 = math.rsqrt %511 : vector<4x1xf32>
    %513 = vector.broadcast %512 : vector<4x1xf32> to vector<4x32xf32>
    %514 = arith.mulf %509, %513 : vector<4x32xf32>
    %515 = vector.broadcast %9 : vector<1x32xf32> to vector<4x32xf32>
    %516 = arith.mulf %514, %515 : vector<4x32xf32>
    %517 = vector.broadcast %10 : vector<1x32xf32> to vector<4x32xf32>
    %518 = arith.addf %516, %517 : vector<4x32xf32>
    %cst_153 = arith.constant dense<0.000000e+00> : vector<4x128xf32>
    %519 = tpu.matmul %518, %35, %cst_153 {dimension_numbers = #tpu.dot_dimension_numbers<[1], [0], [0], [1], [0, 0, 1, 1], [], []>} : vector<4x32xf32>, vector<32x128xf32>, vector<4x128xf32> -> vector<4x128xf32>
    %520 = vector.broadcast %36 : vector<1x128xf32> to vector<4x128xf32>
    %521 = arith.addf %519, %520 : vector<4x128xf32>
    %cst_154 = arith.constant 0.000000e+00 : f32
    %522 = vector.broadcast %cst_154 : f32 to vector<4x128xf32>
    %523 = arith.maximumf %521, %522 : vector<4x128xf32>
    %cst_155 = arith.constant dense<0.000000e+00> : vector<4x32xf32>
    %524 = tpu.matmul %523, %37, %cst_155 {dimension_numbers = #tpu.dot_dimension_numbers<[1], [0], [0], [1], [0, 0, 1, 1], [], []>} : vector<4x128xf32>, vector<128x32xf32>, vector<4x32xf32> -> vector<4x32xf32>
    %525 = arith.addf %496, %524 : vector<4x32xf32>
    %526 = vector.broadcast %14 : vector<1x32xf32> to vector<4x32xf32>
    %527 = arith.addf %525, %526 : vector<4x32xf32>
    %cst_156 = arith.constant dense<0.000000e+00> : vector<4xf32>
    %528 = vector.multi_reduction <add>, %527, %cst_156 [1] : vector<4x32xf32> to vector<4xf32>
    %529 = vector.shape_cast %528 : vector<4xf32> to vector<4x1xf32>
    %cst_157 = arith.constant 3.200000e+01 : f32
    %530 = vector.broadcast %cst_157 : f32 to vector<4x1xf32>
    %531 = arith.divf %529, %530 : vector<4x1xf32>
    %532 = vector.broadcast %531 : vector<4x1xf32> to vector<4x32xf32>
    %533 = arith.subf %527, %532 : vector<4x32xf32>
    %534 = arith.mulf %533, %533 : vector<4x32xf32>
    %cst_158 = arith.constant dense<0.000000e+00> : vector<4xf32>
    %535 = vector.multi_reduction <add>, %534, %cst_158 [1] : vector<4x32xf32> to vector<4xf32>
    %536 = vector.shape_cast %535 : vector<4xf32> to vector<4x1xf32>
    %cst_159 = arith.constant 3.200000e+01 : f32
    %537 = vector.broadcast %cst_159 : f32 to vector<4x1xf32>
    %538 = arith.divf %536, %537 : vector<4x1xf32>
    %539 = vector.broadcast %531 : vector<4x1xf32> to vector<4x32xf32>
    %540 = arith.subf %527, %539 : vector<4x32xf32>
    %cst_160 = arith.constant 9.99999974E-6 : f32
    %541 = vector.broadcast %cst_160 : f32 to vector<4x1xf32>
    %542 = arith.addf %538, %541 : vector<4x1xf32>
    %543 = math.rsqrt %542 : vector<4x1xf32>
    %544 = vector.broadcast %543 : vector<4x1xf32> to vector<4x32xf32>
    %545 = arith.mulf %540, %544 : vector<4x32xf32>
    %546 = vector.broadcast %7 : vector<1x32xf32> to vector<4x32xf32>
    %547 = arith.mulf %545, %546 : vector<4x32xf32>
    %548 = vector.broadcast %8 : vector<1x32xf32> to vector<4x32xf32>
    %549 = arith.addf %547, %548 : vector<4x32xf32>
    %cst_161 = arith.constant dense<0.000000e+00> : vector<4x32xf32>
    %550 = tpu.matmul %549, %21, %cst_161 {dimension_numbers = #tpu.dot_dimension_numbers<[1], [0], [0], [1], [0, 0, 1, 1], [], []>} : vector<4x32xf32>, vector<32x32xf32>, vector<4x32xf32> -> vector<4x32xf32>
    %551 = vector.broadcast %11 : vector<1x32xf32> to vector<4x32xf32>
    %552 = arith.addf %550, %551 : vector<4x32xf32>
    "tpu.trace_start"() <{level = 10 : i32, message = "sd,nd->sn"}> : () -> ()
    %cst_162 = arith.constant dense<0.000000e+00> : vector<4x8xf32>
    %553 = tpu.matmul %552, %64, %cst_162 {dimension_numbers = #tpu.dot_dimension_numbers<[1], [1], [0], [0], [0, 0, 1, 0], [], []>} : vector<4x32xf32>, vector<8x32xf32>, vector<4x8xf32> -> vector<4x8xf32>
    "tpu.trace_stop"() : () -> ()
    %cst_163 = arith.constant 0.176776692 : f32
    %554 = vector.broadcast %cst_163 : f32 to vector<4x8xf32>
    %555 = arith.mulf %553, %554 : vector<4x8xf32>
    %cst_164 = arith.constant dense<0xFF800000> : vector<8xf32>
    %556 = vector.multi_reduction <maximumf>, %555, %cst_164 [0] : vector<4x8xf32> to vector<8xf32>
    %557 = vector.shape_cast %556 : vector<8xf32> to vector<1x8xf32>
    %558 = vector.broadcast %557 : vector<1x8xf32> to vector<4x8xf32>
    %559 = arith.subf %555, %558 : vector<4x8xf32>
    %560 = math.exp %559 : vector<4x8xf32>
    %cst_165 = arith.constant dense<0.000000e+00> : vector<8xf32>
    %561 = vector.multi_reduction <add>, %560, %cst_165 [0] : vector<4x8xf32> to vector<8xf32>
    %562 = vector.shape_cast %561 : vector<8xf32> to vector<1x8xf32>
    %563 = tpu.reciprocal %562 {approx = true} : vector<1x8xf32> -> vector<1x8xf32>
    %564 = vector.broadcast %563 : vector<1x8xf32> to vector<4x8xf32>
    %565 = arith.mulf %560, %564 : vector<4x8xf32>
    %cst_166 = arith.constant 9.99999993E-9 : f32
    %566 = vector.broadcast %cst_166 : f32 to vector<4x8xf32>
    %567 = arith.addf %565, %566 : vector<4x8xf32>
    %cst_167 = arith.constant dense<0.000000e+00> : vector<4xf32>
    %568 = vector.multi_reduction <add>, %567, %cst_167 [1] : vector<4x8xf32> to vector<4xf32>
    %569 = vector.shape_cast %568 : vector<4xf32> to vector<4x1xf32>
    %570 = tpu.reciprocal %569 {approx = true} : vector<4x1xf32> -> vector<4x1xf32>
    %571 = vector.broadcast %570 : vector<4x1xf32> to vector<4x8xf32>
    %572 = arith.mulf %567, %571 : vector<4x8xf32>
    %cst_168 = arith.constant dense<0.000000e+00> : vector<4x32xf32>
    %573 = tpu.matmul %572, %67, %cst_168 {dimension_numbers = #tpu.dot_dimension_numbers<[1], [0], [0], [1], [0, 0, 1, 1], [], []>} : vector<4x8xf32>, vector<8x32xf32>, vector<4x32xf32> -> vector<4x32xf32>
    %cst_169 = arith.constant dense<0.000000e+00> : vector<4x32xf32>
    %574 = tpu.matmul %573, %23, %cst_169 {dimension_numbers = #tpu.dot_dimension_numbers<[1], [0], [0], [1], [0, 0, 1, 1], [], []>} : vector<4x32xf32>, vector<32x32xf32>, vector<4x32xf32> -> vector<4x32xf32>
    %575 = vector.broadcast %15 : vector<1x32xf32> to vector<4x32xf32>
    %576 = arith.addf %574, %575 : vector<4x32xf32>
    %cst_170 = arith.constant dense<0.000000e+00> : vector<4x32xf32>
    %577 = tpu.matmul %527, %29, %cst_170 {dimension_numbers = #tpu.dot_dimension_numbers<[1], [0], [0], [1], [0, 0, 1, 1], [], []>} : vector<4x32xf32>, vector<32x32xf32>, vector<4x32xf32> -> vector<4x32xf32>
    %578 = arith.addf %576, %577 : vector<4x32xf32>
    %579 = vector.broadcast %18 : vector<1x32xf32> to vector<4x32xf32>
    %580 = arith.addf %578, %579 : vector<4x32xf32>
    %581 = arith.negf %580 : vector<4x32xf32>
    %582 = math.exp %581 : vector<4x32xf32>
    %cst_171 = arith.constant 1.000000e+00 : f32
    %583 = vector.broadcast %cst_171 : f32 to vector<4x32xf32>
    %584 = arith.addf %583, %582 : vector<4x32xf32>
    %585 = arith.divf %583, %584 : vector<4x32xf32>
    %cst_172 = arith.constant dense<0.000000e+00> : vector<4x32xf32>
    %586 = tpu.matmul %573, %25, %cst_172 {dimension_numbers = #tpu.dot_dimension_numbers<[1], [0], [0], [1], [0, 0, 1, 1], [], []>} : vector<4x32xf32>, vector<32x32xf32>, vector<4x32xf32> -> vector<4x32xf32>
    %587 = vector.broadcast %16 : vector<1x32xf32> to vector<4x32xf32>
    %588 = arith.addf %586, %587 : vector<4x32xf32>
    %cst_173 = arith.constant dense<0.000000e+00> : vector<4x32xf32>
    %589 = tpu.matmul %527, %31, %cst_173 {dimension_numbers = #tpu.dot_dimension_numbers<[1], [0], [0], [1], [0, 0, 1, 1], [], []>} : vector<4x32xf32>, vector<32x32xf32>, vector<4x32xf32> -> vector<4x32xf32>
    %590 = arith.addf %588, %589 : vector<4x32xf32>
    %591 = vector.broadcast %19 : vector<1x32xf32> to vector<4x32xf32>
    %592 = arith.addf %590, %591 : vector<4x32xf32>
    %593 = arith.negf %592 : vector<4x32xf32>
    %594 = math.exp %593 : vector<4x32xf32>
    %cst_174 = arith.constant 1.000000e+00 : f32
    %595 = vector.broadcast %cst_174 : f32 to vector<4x32xf32>
    %596 = arith.addf %595, %594 : vector<4x32xf32>
    %597 = arith.divf %595, %596 : vector<4x32xf32>
    %cst_175 = arith.constant dense<0.000000e+00> : vector<4x32xf32>
    %598 = tpu.matmul %573, %27, %cst_175 {dimension_numbers = #tpu.dot_dimension_numbers<[1], [0], [0], [1], [0, 0, 1, 1], [], []>} : vector<4x32xf32>, vector<32x32xf32>, vector<4x32xf32> -> vector<4x32xf32>
    %599 = vector.broadcast %17 : vector<1x32xf32> to vector<4x32xf32>
    %600 = arith.addf %598, %599 : vector<4x32xf32>
    %cst_176 = arith.constant dense<0.000000e+00> : vector<4x32xf32>
    %601 = tpu.matmul %527, %33, %cst_176 {dimension_numbers = #tpu.dot_dimension_numbers<[1], [0], [0], [1], [0, 0, 1, 1], [], []>} : vector<4x32xf32>, vector<32x32xf32>, vector<4x32xf32> -> vector<4x32xf32>
    %602 = vector.broadcast %20 : vector<1x32xf32> to vector<4x32xf32>
    %603 = arith.addf %601, %602 : vector<4x32xf32>
    %604 = arith.mulf %585, %603 : vector<4x32xf32>
    %605 = arith.addf %600, %604 : vector<4x32xf32>
    %606 = math.tanh %605 : vector<4x32xf32>
    %cst_177 = arith.constant 1.000000e+00 : f32
    %607 = vector.broadcast %cst_177 : f32 to vector<4x32xf32>
    %608 = arith.subf %607, %597 : vector<4x32xf32>
    %609 = arith.mulf %608, %606 : vector<4x32xf32>
    %610 = arith.mulf %597, %527 : vector<4x32xf32>
    %611 = arith.addf %609, %610 : vector<4x32xf32>
    %cst_178 = arith.constant dense<0.000000e+00> : vector<4xf32>
    %612 = vector.multi_reduction <add>, %611, %cst_178 [1] : vector<4x32xf32> to vector<4xf32>
    %613 = vector.shape_cast %612 : vector<4xf32> to vector<4x1xf32>
    %cst_179 = arith.constant 3.200000e+01 : f32
    %614 = vector.broadcast %cst_179 : f32 to vector<4x1xf32>
    %615 = arith.divf %613, %614 : vector<4x1xf32>
    %616 = vector.broadcast %615 : vector<4x1xf32> to vector<4x32xf32>
    %617 = arith.subf %611, %616 : vector<4x32xf32>
    %618 = arith.mulf %617, %617 : vector<4x32xf32>
    %cst_180 = arith.constant dense<0.000000e+00> : vector<4xf32>
    %619 = vector.multi_reduction <add>, %618, %cst_180 [1] : vector<4x32xf32> to vector<4xf32>
    %620 = vector.shape_cast %619 : vector<4xf32> to vector<4x1xf32>
    %cst_181 = arith.constant 3.200000e+01 : f32
    %621 = vector.broadcast %cst_181 : f32 to vector<4x1xf32>
    %622 = arith.divf %620, %621 : vector<4x1xf32>
    %623 = vector.broadcast %615 : vector<4x1xf32> to vector<4x32xf32>
    %624 = arith.subf %611, %623 : vector<4x32xf32>
    %cst_182 = arith.constant 9.99999974E-6 : f32
    %625 = vector.broadcast %cst_182 : f32 to vector<4x1xf32>
    %626 = arith.addf %622, %625 : vector<4x1xf32>
    %627 = math.rsqrt %626 : vector<4x1xf32>
    %628 = vector.broadcast %627 : vector<4x1xf32> to vector<4x32xf32>
    %629 = arith.mulf %624, %628 : vector<4x32xf32>
    %630 = vector.broadcast %9 : vector<1x32xf32> to vector<4x32xf32>
    %631 = arith.mulf %629, %630 : vector<4x32xf32>
    %632 = vector.broadcast %10 : vector<1x32xf32> to vector<4x32xf32>
    %633 = arith.addf %631, %632 : vector<4x32xf32>
    %cst_183 = arith.constant dense<0.000000e+00> : vector<4x128xf32>
    %634 = tpu.matmul %633, %35, %cst_183 {dimension_numbers = #tpu.dot_dimension_numbers<[1], [0], [0], [1], [0, 0, 1, 1], [], []>} : vector<4x32xf32>, vector<32x128xf32>, vector<4x128xf32> -> vector<4x128xf32>
    %635 = vector.broadcast %36 : vector<1x128xf32> to vector<4x128xf32>
    %636 = arith.addf %634, %635 : vector<4x128xf32>
    %cst_184 = arith.constant 0.000000e+00 : f32
    %637 = vector.broadcast %cst_184 : f32 to vector<4x128xf32>
    %638 = arith.maximumf %636, %637 : vector<4x128xf32>
    %cst_185 = arith.constant dense<0.000000e+00> : vector<4x32xf32>
    %639 = tpu.matmul %638, %37, %cst_185 {dimension_numbers = #tpu.dot_dimension_numbers<[1], [0], [0], [1], [0, 0, 1, 1], [], []>} : vector<4x128xf32>, vector<128x32xf32>, vector<4x32xf32> -> vector<4x32xf32>
    %640 = arith.addf %611, %639 : vector<4x32xf32>
    %641 = vector.broadcast %14 : vector<1x32xf32> to vector<4x32xf32>
    %642 = arith.addf %640, %641 : vector<4x32xf32>
    %643 = vector.shape_cast %642 : vector<4x32xf32> to vector<1x4x32xf32>
    %c0_186 = arith.constant 0 : index
    %c0_187 = arith.constant 0 : index
    %c0_188 = arith.constant 0 : index
    %644 = vector.load %arg10[%c0_186, %c0_187, %c0_188] : memref<1x4x32xf32, #tpu.memory_space<vmem>>, vector<1x4x32xf32>
    tpu.vector_store %arg10[%c0_186, %c0_187, %c0_188], %643 {strides = array<i32>} : memref<1x4x32xf32, #tpu.memory_space<vmem>>, vector<1x4x32xf32>,
    return
  }
  func.func @transform_0(%arg0: i32) -> (i32, i32, i32) {
    %c0_i32 = arith.constant 0 : i32
    %c0_i32_0 = arith.constant 0 : i32
    %c0_i32_1 = arith.constant 0 : i32
    return %arg0, %c0_i32, %c0_i32_0 : i32, i32, i32
  }
  func.func @transform_1(%arg0: i32) -> (i32, i32, i32) {
    %c0_i32 = arith.constant 0 : i32
    %c0_i32_0 = arith.constant 0 : i32
    %c0_i32_1 = arith.constant 0 : i32
    return %arg0, %c0_i32, %c0_i32_0 : i32, i32, i32
  }
  func.func @transform_2(%arg0: i32) -> (i32, i32) {
    %c0_i32 = arith.constant 0 : i32
    %c0_i32_0 = arith.constant 0 : i32
    %c0_i32_1 = arith.constant 0 : i32
    return %c0_i32, %c0_i32_0 : i32, i32
  }
  func.func @transform_3(%arg0: i32) -> (i32, i32) {
    %c0_i32 = arith.constant 0 : i32
    %c0_i32_0 = arith.constant 0 : i32
    %c0_i32_1 = arith.constant 0 : i32
    return %c0_i32, %c0_i32_0 : i32, i32
  }
  func.func @transform_4(%arg0: i32) -> (i32, i32) {
    %c0_i32 = arith.constant 0 : i32
    %c0_i32_0 = arith.constant 0 : i32
    %c0_i32_1 = arith.constant 0 : i32
    return %c0_i32, %c0_i32_0 : i32, i32
  }
  func.func @transform_5(%arg0: i32) -> (i32, i32, i32) {
    %c0_i32 = arith.constant 0 : i32
    %c0_i32_0 = arith.constant 0 : i32
    %c0_i32_1 = arith.constant 0 : i32
    %c0_i32_2 = arith.constant 0 : i32
    return %c0_i32, %c0_i32_0, %c0_i32_1 : i32, i32, i32
  }
  func.func @transform_6(%arg0: i32) -> (i32, i32, i32) {
    %c0_i32 = arith.constant 0 : i32
    %c0_i32_0 = arith.constant 0 : i32
    %c0_i32_1 = arith.constant 0 : i32
    %c0_i32_2 = arith.constant 0 : i32
    return %c0_i32, %c0_i32_0, %c0_i32_1 : i32, i32, i32
  }
  func.func @transform_7(%arg0: i32) -> (i32, i32) {
    %c0_i32 = arith.constant 0 : i32
    %c0_i32_0 = arith.constant 0 : i32
    %c0_i32_1 = arith.constant 0 : i32
    return %c0_i32, %c0_i32_0 : i32, i32
  }
  func.func @transform_8(%arg0: i32) -> (i32, i32) {
    %c0_i32 = arith.constant 0 : i32
    %c0_i32_0 = arith.constant 0 : i32
    %c0_i32_1 = arith.constant 0 : i32
    return %c0_i32, %c0_i32_0 : i32, i32
  }
  func.func @transform_9(%arg0: i32) -> (i32, i32, i32) {
    %c0_i32 = arith.constant 0 : i32
    %c0_i32_0 = arith.constant 0 : i32
    %c0_i32_1 = arith.constant 0 : i32
    return %arg0, %c0_i32, %c0_i32_0 : i32, i32, i32
  }
}

</mosaic_0001>

<bundles_post_ra>
// kernel: tpu_custom_call.1
= control target key start
LH: loop header
LB: loop body
LE: loop exit
PB: predicated region body
PF: predicated region fallthrough
CT: control target
= control target key end

     0   :  { %s8104_s0 = inlined_call_operand.hbm [shape: f32[2,8,32], index: 0, kind: input, shape index: {}]   ;;  %s8105_s1 = inlined_call_operand.vmem [shape: f32[2,4,32], index: 1, kind: input, shape index: {}]   ;;  %s8106_s2 = inlined_call_operand.hbm [shape: f32[16,32], index: 2, kind: input, shape index: {}]   ;;  %s8107_s3 = inlined_call_operand.vmem [shape: f32[32,32], index: 3, kind: input, shape index: {}]   ;;  %s8108_s4 = inlined_call_operand.hbm [shape: f32[32,64], index: 4, kind: input, shape index: {}]   ;;  %s8109_s5 = inlined_call_operand.vmem [shape: f32[3,32,32], index: 5, kind: input, shape index: {}]   ;;  %s8110_s6 = inlined_call_operand.hbm [shape: f32[3,32,32], index: 6, kind: input, shape index: {}]   ;;  %s8111_s7 = inlined_call_operand.vmem [shape: f32[33,128], index: 7, kind: input, shape index: {}]   ;;  %s8112_s8 = inlined_call_operand.vmem [shape: f32[128,32], index: 8, kind: input, shape index: {}]   ;;  %s8113_s9 = inlined_call_operand.hbm [shape: f32[2,4,32], index: 9, kind: output, shape index: {}]  }
   0x1   :  { %8120 = sst [smem:[#allocation17_spill]] %s8113_s9 }
   0x2   :  { %14 = vsyncpa [#allocation3], 0 }
   0x3   :  { %16 = vsyncpa [#allocation3 + $0x1], 0 }
   0x4   :  { %17 = vsyncpa [#allocation6], 0 }
   0x5   :  { %18 = vsyncpa [#allocation9], 0 }
   0x6   :  { %19 = vsyncpa [#allocation4], 0 }
   0x7   :  { %21 = vsyncpa [#allocation4 + $0x1], 0  ;;  %s7005_s30 = smov 0   ;;  %s7007_s10 = smov 0  }
   0x8   :  { %s7009_s11 = smov 0   ;;  %s7011_s12 = smov 0  }
   0x9 LB: > { %8121 = sst [smem:[#allocation15_spill]] %s6929_s30  ;;  %s7026_s13 = sadd.s32 4294967295, %s6941_s12   ;;  %s6941_s12 = sphi %s7011_s12, %s8145_s12   ;;  %s6937_s11 = sphi %s7009_s11, %s8144_s11   ;;  %s6933_s10 = sphi %s7007_s10, %s8143_s10   ;;  %s6929_s30 = sphi %s7005_s30, %s8142_s30  }
   0xa   : > { %s5120_s14 = sadd.s32 4294967294, %s6941_s12   ;;  %p47_p0 = scmp.ne.s32.totalorder %s6933_s10, %s6929_s30 }
   0xb   : > { %p8114_p1 = scmp.eq.s32.totalorder %s7026_s13, 0  ;;  %p250_p3 = scmp.eq.s32.totalorder %s5120_s14, 1 }
   0xc   : > { %p5121_p5 = scmp.ge.s32.totalorder %s6941_s12, 1  ;;  %p257_p7 = scmp.lt.s32.totalorder %s6941_s12, 3 }
   0xd   : > { %p7035_p4 = por %p8114_p1, %p47_p0  ;;  %p7040_p6 = por %p250_p3, %p47_p0 }
   0xe   : > { %p7045_p8 = pnand %p5121_p5, %p257_p7  ;;  %s6943_s18 = smov [#allocation5]  }
   0xf   : > { %s8122_s15 = scalar_select %p7035_p4, 1, 0 }
  0x10   : > { %s8123_s16 = scalar_select %p7040_p6, 1, 0 }
  0x11   : > { %s8125_s17 = scalar_select %p7045_p8, 1, 0 }
  0x12   : > { %8124 = sst [smem:[#allocation16_spill]] %s8123_s16  ;;  %s269_s19 = sshll.u32 %s6943_s18, 4  ;;  %s7049_s19 = int_to_ptr.vmem [resolvable:$true] %s269_s19 }
  0x13   : > { %p6582_p9 = pneg %p7045_p8  ;;  %s6944_s21 = smov [#allocation7]  }
  0x14   : > { %s285_s22 = sshll.u32 %s6944_s21, 4  ;;  %s6945_s23 = smov [#allocation8]   ;;  %s7060_s22 = int_to_ptr.vmem [resolvable:$true] %s285_s22 }
  0x15   : > { %p7056_p11 = pnand %p6582_p9, %p8114_p1  ;;  %s7062_s24 = sshll.u32 %s6945_s23, 4  ;;  %s302_s24 = int_to_ptr.vmem [resolvable:$true] %s7062_s24 }
  0x16   : > { %s6753_s27 = scalar_lea.hbm %s8106_s2, 256 }
  0x17   : > { %p6754_p12 = scmp.ne.s32.totalorder %s8106_s2, %s6753_s27  ;;  %p7072_p13 = pneg %p7056_p11 }
  0x18   : > { %p6760_p5 = scmp.lt.u32.totalorder %s6753_s27, %s8106_s2 }
  0x19   : > { %p6756_p0 = pnand %p7072_p13, %p6754_p12 }
  0x1b   : > { %p6757_p3 = pneg %p6756_p0 }
  0x1d   : > { %p6762_p7 = pnand %p6760_p5, %p6757_p3 }
  0x1f   : > { %6765 = shalt.err (!%p6762_p7)
}
  0x20   : > { %s6766_s23 = scalar_lea.vmem %s7049_s19, 256  ;;  %p6774_p2 = scmp.lt.s32.totalorder %s7049_s19, %s7049_s19 }
  0x21   : > { %p6767_p9 = scmp.ne.s32.totalorder %s7049_s19, %s6766_s23  ;;  %p6775_p6 = scmp.lt.s32.totalorder %s6766_s23, %s6766_s23 }
  0x23   : > { %p6769_p10 = pnand %p6767_p9, %p7072_p13  ;;  %p6776_p12 = por %p6775_p6, %p6774_p2 }
  0x25   : > { %p6770_p1 = pneg %p6769_p10 }
  0x27   : > { %p6777_p0 = pnand %p6776_p12, %p6770_p1 }
  0x29   : > { %6780 = shalt.err (!%p6777_p0)
}
  0x2a   : > { %s6946_s25 = smov 128   ;;  %s6947_s26 = smov 8  }
  0x2b   : > { %6585 = dma.hbm_to_vmem [thread:$0]  (!%p7056_p11), %s8106_s2, 256, %s7049_s19, [#allocation6], %s6946_s25, %s6946_s25, %s6947_s26  }
  0x2c   : > { %s6781_s21 = scalar_lea.hbm %s8108_s4, 512 }
  0x2d   : > { %p6782_p1 = scmp.ne.s32.totalorder %s8108_s4, %s6781_s21  ;;  %p6788_p10 = scmp.lt.u32.totalorder %s6781_s21, %s8108_s4 }
  0x2f   : > { %p6784_p2 = pnand %p6782_p1, %p7072_p13 }
  0x31   : > { %p6785_p6 = pneg %p6784_p2 }
  0x33   : > { %p6790_p3 = pnand %p6788_p10, %p6785_p6 }
  0x35   : > { %6793 = shalt.err (!%p6790_p3)
}
  0x36   : > { %s6794_s19 = scalar_lea.vmem %s7060_s22, 512  ;;  %p6802_p12 = scmp.lt.s32.totalorder %s7060_s22, %s7060_s22 }
  0x37   : > { %p6795_p5 = scmp.ne.s32.totalorder %s7060_s22, %s6794_s19  ;;  %p6803_p0 = scmp.lt.s32.totalorder %s6794_s19, %s6794_s19 }
  0x39   : > { %p6797_p7 = pnand %p6795_p5, %p7072_p13  ;;  %p6804_p1 = por %p6803_p0, %p6802_p12 }
  0x3b   : > { %p6798_p9 = pneg %p6797_p7 }
  0x3d   : > { %p6805_p2 = pnand %p6804_p1, %p6798_p9 }
  0x3f   : > { %6808 = shalt.err (!%p6805_p2)
}
  0x40   : > { %6588 = dma.hbm_to_vmem [thread:$0]  (!%p7056_p11), %s8108_s4, 512, %s7060_s22, [#allocation6], %s6946_s25, %s6946_s25, %s6947_s26  }
  0x41   : > { %s6809_s28 = scalar_lea.hbm %s8110_s6, 1536 }
  0x42   : > { %p6810_p6 = scmp.ne.s32.totalorder %s8110_s6, %s6809_s28  ;;  %p6816_p5 = scmp.lt.u32.totalorder %s6809_s28, %s8110_s6 }
  0x44   : > { %p6812_p10 = pnand %p6810_p6, %p7072_p13 }
  0x46   : > { %p6813_p3 = pneg %p6812_p10 }
  0x48   : > { %p6818_p7 = pnand %p6816_p5, %p6813_p3 }
  0x4a   : > { %6821 = shalt.err (!%p6818_p7)
}
  0x4b   : > { %s6822_s19 = scalar_lea.vmem %s302_s24, 1536  ;;  %p6830_p1 = scmp.lt.s32.totalorder %s302_s24, %s302_s24 }
  0x4c   : > { %p6823_p9 = scmp.ne.s32.totalorder %s302_s24, %s6822_s19  ;;  %p6831_p2 = scmp.lt.s32.totalorder %s6822_s19, %s6822_s19 }
  0x4e   : > { %p6825_p12 = pnand %p6823_p9, %p7072_p13  ;;  %p6832_p4 = por %p6831_p2, %p6830_p1 }
  0x50   : > { %p6826_p0 = pneg %p6825_p12 }
  0x52   : > { %p6833_p8 = pnand %p6832_p4, %p6826_p0 }
  0x54   : > { %6836 = shalt.err (!%p6833_p8)
}
  0x55   : > { %6591 = dma.hbm_to_vmem [thread:$0]  (!%p7056_p11), %s8110_s6, 1536, %s302_s24, [#allocation9], %s6946_s25, %s6946_s25, %s6947_s26  }
  0x56   : > { %s7145_s14 = sadd.s32 1, %s6941_s12   ;;  %s34_s30 = sadd.s32 1, %s6937_s11 }
  0x57   : > { %s31_s20 = ssub.s32 %s6941_s12, %s7145_s14  ;;  %p41_p8 = scmp.ne.s32.totalorder %s6937_s11, %s6933_s10 }
  0x58   : > { %p32_p4 = scmp.eq.s32.totalorder %s31_s20, 0  ;;  %p42_p13 = scmp.eq.s32.totalorder %s6941_s12, 0 }
  0x59   : > { %p6603_p6 = scmp.lt.s32.totalorder %s6941_s12, 2  ;;  %p8128_p3 = scmp.eq.s32.totalorder %s7026_s13, 1 }
  0x5a   : > { %s7155_s16 = scalar_select %p32_p4, %s6937_s11, %s34_s30  }
  0x5b   : > { %p43_p10 = por %p42_p13, %p41_p8  ;;  %p7159_p5 = por %p8128_p3, %p41_p8 }
  0x5c   : > { %s321_s28 = sand.u32 1, %s6937_s11   ;;  %s5127_s29 = sshll.u32 %s6941_s12, 7 }
  0x5d   : > { %s5126_s24 = sshll.u32 %s321_s28, 3  ;;  %s7168_s18 = scalar_lea.hbm %s8104_s0, %s5127_s29 }
  0x5e   : > { %s325_s21 = scalar_lea.vmem [#allocation2], %s5126_s24  ;;  %p7170_p11 = pnand %p6603_p6, %p43_p10 }
  0x5f   : > { %s332_s23 = sshll.u32 %s325_s21, 4  ;;  %s322_s22 = scalar_lea.sflag [#allocation3], %s321_s28  ;;  %s7174_s23 = int_to_ptr.vmem [resolvable:$true] %s332_s23 }
  0x60   : > { %s6837_s9 = scalar_lea.hbm %s7168_s18, 128  ;;  %p6839_p9 = pneg %p7170_p11 }
  0x61   : > { %p6838_p7 = scmp.ne.s32.totalorder %s7168_s18, %s6837_s9  ;;  %s6842_s29 = scalar_lea.hbm %s8104_s0, 256 }
  0x62   : > { %p6843_p1 = scmp.lt.u32.totalorder %s7168_s18, %s8104_s0  ;;  %p6844_p2 = scmp.lt.u32.totalorder %s6842_s29, %s6837_s9 }
  0x63   : > { %p6840_p12 = pnand %p6839_p9, %p6838_p7  ;;  %p6846_p8 = scmp.lt.u32.totalorder %s6837_s9, %s7168_s18 }
  0x64   : > { %p6845_p4 = por %p6844_p2, %p6843_p1 }
  0x65   : > { %p6841_p0 = pneg %p6840_p12 }
  0x66   : > { %p6847_p13 = por %p6846_p8, %p6845_p4 }
  0x68   : > { %p6848_p6 = pnand %p6847_p13, %p6841_p0 }
  0x6a   : > { %6851 = shalt.err (!%p6848_p6)
}
  0x6b   : > { %s6852_s28 = scalar_lea.vmem %s7174_s23, 128  ;;  %s6948_s26 = smov [#allocation2]  }
  0x6c   : > { %p6853_p10 = scmp.ne.s32.totalorder %s7174_s23, %s6852_s28  ;;  %s6857_s21 = sshll.u32 %s6948_s26, 4  ;;  %s6858_s21 = int_to_ptr.vmem [resolvable:$false] %s6857_s21 }
  0x6d   : > { %s6859_s20 = scalar_lea.vmem %s6858_s21, 256  ;;  %p6860_p12 = scmp.lt.s32.totalorder %s7174_s23, %s6858_s21 }
  0x6e   : > { %p6855_p3 = pnand %p6853_p10, %p6839_p9  ;;  %p6861_p1 = scmp.lt.s32.totalorder %s6859_s20, %s6852_s28 }
  0x70   : > { %p6856_p7 = pneg %p6855_p3  ;;  %p6862_p2 = por %p6861_p1, %p6860_p12 }
  0x72   : > { %p6863_p4 = pnand %p6862_p2, %p6856_p7 }
  0x74   : > { %6866 = shalt.err (!%p6863_p4)
}
  0x75   : > { %6595 = dma.hbm_to_vmem [thread:$0]  (!%p7170_p11), %s7168_s18, 128, %s7174_s23, %s322_s22  }
  0x76   : > { %p8131_p0 = scmp.ne.s32.totalorder %s8125_s17, 0 }
  0x77   : > { %s7204_s9 = sand.u32 (!%p8131_p0), 1, %s6933_s10   ;;  %p8132_p9 = scmp.ne.s32.totalorder (!%p8131_p0), %s8122_s15, 0 }
  0x78   : > { %348 = sbr.rel (%p8131_p0) target bundleno = 11046 (0x2b26), region = 56  ;;  %s5129_s30 = sshll.u32 (!%p8131_p0), %s7204_s9, 3 }
  0x79   : > { %s351_s29 = scalar_lea.sflag (!%p8131_p0), [#allocation3], %s7204_s9  ;;  %s354_s24 = scalar_lea.vmem (!%p8131_p0), [#allocation2], %s5129_s30 }
  0x7f   : > { %6912 = dma.done.wait (%p8132_p9), %s351_s29, 128  }
  0x80   : > { %6914 = vsyncadd (%p8132_p9), %s351_s29, 4294967168  ;;  %p8133_p8 = scmp.eq.s32.totalorder %s7026_s13, 0 }
  0x82   : > { %6916 = dma.done.wait (%p8133_p8), [#allocation6], 768   ;;  %p8134_p11 = pmov %p8133_p8 }
  0x83   : > { %p8135_p13 = pmov %p8133_p8 }
  0x84   : > { %6918 = vsyncadd (%p8134_p11), [#allocation6], 4294966528 }
  0x85   : > { %6920 = dma.done.wait (%p8135_p13), [#allocation9], 1536   ;;  %p8136_p6 = pmov %p8133_p8 }
  0x86   : > { %p405_p10 = scmp.lt.s32.totalorder %s7026_s13, 1  ;;  %vm466_vm0 = vcmask 261120   ;;  %v409_v0 = vld [vmem:[%s354_s24] sm:$0xff]  ;;  %vm582_vm1 = vcmask 257024   ;;  %v6949_v17 = vmov 0.0|0.0   ;;  %v493_v18 = vld [vmem:[#allocation7 + $0x10] sm:$0xff]  ;;  %v481_v21 = vlaneseq }
  0x87   : > { %6922 = vsyncadd (%p8136_p6), [#allocation9], 4294965760  ;;  %v467_v2 = vsel %vm466_vm0, %v409_v0, 0.0  ;;  %v491_v14 = vld [vmem:[#allocation7] sm:$0xff]  ;;  %v492_v15 = vld [vmem:[#allocation7 + $0x8] sm:$0xff]  ;;  %6200 = vmatprep.subr.bf16.mxu0 %v6949_v17  ;;  %6218 = vmatprep.subr.bf16.mxu1 %v6949_v17  ;;  %vm6950_vm2 = vmmov 0  }
  0x88   : > { %s406_s17 = scalar_select %p405_p10, %s7026_s13, 1  ;;  %468 = vadd.xlane.f32.xlu0 %v467_v2  ;;  %v6201_v16 = vpack.c.bf16 %v492_v15, %v491_v14  ;;  %v494_v19 = vld [vmem:[#allocation7 + $0x18] sm:$0xff]  ;;  %v6951_v22 = vmov 0.0   ;;  %v7241_v23 = vshrl.u32 %v481_v21, 7  ;;  %v7247_v33 = vld [vmem:[#allocation5] sm:$0xff]  ;;  %v413_v39 = vld [vmem:[%s8107_s3] sm:$0xff] }
  0x89   : > { %v6204_v20 = vpack.c.bf16 %v494_v19, %v493_v18  ;;  %5532 = vmatprep.mubr.msk.f32.mxu0 %vm6950_vm2, %v6951_v22  ;;  %5575 = vmatprep.mubr.msk.f32.mxu1 %vm6950_vm2, %v6951_v22  ;;  %v7243_v24 = vld [vmem:[#allocation5 + $0x8] sm:$0xff]  ;;  %s6952_s22 = smov 32   ;;  %v414_v40 = vld [vmem:[%s8107_s3 + $0x8] sm:$0xff]  ;;  %v415_v47 = vld [vmem:[%s8107_s3 + $0x10] sm:$0xff]  ;;  %vm760_vm3 = vcmask 60416   ;;  %vm790_vm4 = vcmask 64512  }
  0x8a   : > { %s5134_s18 = sshll.u32 %s406_s17, 2  ;;  %6202 = vmatpush3.bf16.msra.mxu0 %v6201_v16  ;;  %v483_v25 = vsub.s32 0, %v7241_v23  ;;  %v488_v34 = vsub.s32 1, %v7241_v23  ;;  %v598_v41 = vsub.s32 2, %v7241_v23  ;;  %v7261_v44 = vpack.c.bf16 %v414_v40, %v413_v39  ;;  %v416_v48 = vld [vmem:[%s8107_s3 + $0x18] sm:$0xff]  ;;  %s6953_s17 = smov 96  }
  0x8b   : > { %s408_s19 = scalar_lea.vmem %s8105_s1, %s5134_s18  ;;  %6203 = vmatprep.subr.bf16.mxu0 %v6949_v17  ;;  %v603_v50 = vsub.s32 3, %v7241_v23  ;;  %v7277_v51 = vpack.c.bf16 %v416_v48, %v415_v47  ;;  %v570_v55 = vsub.s32 7, %v7241_v23  ;;  %v608_v60 = vsub.s32 6, %v7241_v23  ;;  %s5133_s24 = sshll.u32 %s7204_s9, 2 }
  0x8c   : > { %v7225_v1 = vld [vmem:[%s408_s19] sm:$0xf]  ;;  %v576_v26 = vrot.slane %v7243_v24, %v483_v25  ;;  %v484_v35 = vrot.slane %v7247_v33, %v483_v25  ;;  %v489_v38 = vrot.slane %v7247_v33, %v488_v34  ;;  %v7272_v49 = vrot.slane %v7247_v33, %v598_v41  ;;  %s404_s18 = scalar_lea.vmem [#allocation10], %s5133_s24  ;;  %s4996_s28 = scalar_lea.sflag [#allocation4], %s7204_s9 }
  0x8d   : > { %v583_v3 = vsel %vm582_vm1, %v7225_v1, 0.0  ;;  %v7286_v53 = vrot.slane %v7247_v33, %v603_v50  ;;  %v571_v56 = vrot.slane %v7247_v33, %v570_v55  ;;  %v7307_v61 = vrot.slane %v7247_v33, %v608_v60  ;;  %s5009_s15 = sshll.u32 %s404_s18, 4  ;;  %s6954_s26 = smov [#allocation10]   ;;  %s8061_s15 = int_to_ptr.vmem [resolvable:$true] %s5009_s15 }
  0x8e   : > { %584 = vadd.xlane.f32.xlu0 %v583_v3  ;;  %6205 = vmatpush3.bf16.msra.mxu0 %v6204_v20  ;;  %s6871_s21 = sshll.u32 %s6954_s26, 4  ;;  %s6872_s21 = int_to_ptr.vmem [resolvable:$false] %s6871_s21 }
  0x8f   : > { %6206 = vmatprep.subr.bf16.mxu0 %v6949_v17  ;;  %s6873_s20 = scalar_lea.vmem %s6872_s21, 128  ;;  %p6874_p1 = scmp.lt.s32.totalorder %s8061_s15, %s6872_s21 }
  0xa4   : > { %578 = vrot.lane.b32.xlu0 %v576_v26, %s6952_s22  ;;  %s8137_s22 = sld [smem:[#allocation17_spill]] }
 0x115   : > { %v469_v4 = vpop.xlane.xlu0 %468 }
 0x116   : > { %v471_v5 = vmul.f32 0.03125, %v469_v4 }
 0x118   : > { %v472_v6 = vsub.f32 %v409_v0, %v471_v5 }
 0x11a   : > { %v473_v9 = vmul.f32 %v472_v6, %v472_v6 }
 0x11b   : > { %v585_v7 = vpop.xlane.xlu0 %584 }
 0x11c   : > { %v586_v8 = vmul.f32 0.03125, %v585_v7  ;;  %v474_v11 = vsel %vm466_vm0, %v473_v9, 0.0 }
 0x11d   : > { %475 = vadd.xlane.f32.xlu1 %v474_v11 }
 0x11e   : > { %v587_v10 = vsub.f32 %v7225_v1, %v586_v8 }
 0x120   : > { %v588_v12 = vmul.f32 %v587_v10, %v587_v10 }
 0x122   : > { %v589_v13 = vsel %vm582_vm1, %v588_v12, 0.0 }
 0x123   : > { %590 = vadd.xlane.f32.xlu1 %v589_v13 }
 0x1aa   : > { %v476_v27 = vpop.xlane.xlu1 %475 }
 0x1ab   : > { %v477_v28 = vmul.f32 0.03125, %v476_v27 }
 0x1ad   : > { %v478_v29 = vadd.f32 1e-05, %v477_v28 }
 0x1af   : > { %6650 = vrsqrt.f32 %v478_v29 }
 0x1b0   : > { %v591_v30 = vpop.xlane.xlu1 %590 }
 0x1b1   : > { %v592_v31 = vmul.f32 0.03125, %v591_v30  ;;  %v579_v30 = vpop.permute.xlu0 %578 }
 0x1b3   : > { %v593_v32 = vadd.f32 1e-05, %v592_v31 }
 0x1b5   : > { %6652 = vrsqrt.f32 %v593_v32  ;;  %v431_v32 = vld [vmem:[#allocation8] sm:$0xff] }
 0x1b9   : > { %v6651_v36 = vpop.eup %6650 }
 0x1ba   : > { %v480_v37 = vmul.f32 %v6651_v36, %v472_v6 }
 0x1bc   : > { %v485_v42 = vmul.f32 %v484_v35, %v480_v37  ;;  %v432_v35 = vld [vmem:[#allocation8 + $0x8] sm:$0xff]  ;;  %v433_v37 = vld [vmem:[#allocation8 + $0x10] sm:$0xff] }
 0x1bd   : > { %v7316_v36 = vpack.c.bf16 %v432_v35, %v431_v32  ;;  %v7431_v35 = vrot.slane %v7243_v24, %v598_v41 }
 0x1be   : > { %v490_v46 = vadd.f32 %v489_v38, %v485_v42  ;;  %v434_v38 = vld [vmem:[#allocation8 + $0x18] sm:$0xff] }
 0x1bf   : > { %v6653_v43 = vpop.eup %6652  ;;  %6220 = vmatpush3.bf16.msra.mxu1 %v7316_v36  ;;  %v7320_v39 = vpack.c.bf16 %v434_v38, %v433_v37  ;;  %v1017_v37 = vsub.s32 5, %v7241_v23 }
 0x1c0   : > { %v595_v45 = vmul.f32 %v6653_v43, %v587_v10  ;;  %5533 = vmatmul.mubr.msk.f32.vlgmr.msra.gmra.mrb[0].mxu0 %vm466_vm0, %v490_v46  ;;  %6221 = vmatprep.subr.bf16.mxu1 %v6949_v17  ;;  %v417_v43 = vld [vmem:[%s8109_s5] sm:$0xff] }
 0x1c1   : > { %6208 = vmatpush3.bf16.msra.mxu0 %v7261_v44  ;;  %5543 = vmatprep.mubr.msk.f32.mxu0 %vm6950_vm2, %v6951_v22 }
 0x1c2   : > { %6209 = vmatprep.subr.bf16.mxu0 %v6949_v17  ;;  %v600_v52 = vmul.f32 %v7272_v49, %v595_v45  ;;  %v418_v45 = vld [vmem:[%s8109_s5 + $0x8] sm:$0xff] }
 0x1c3   : > { %6223 = vmatpush3.bf16.msra.mxu1 %v7320_v39  ;;  %v7338_v47 = vpack.c.bf16 %v418_v45, %v417_v43  ;;  %v7438_v45 = vrot.slane %v7243_v24, %v1017_v37 }
 0x1c4   : > { %v605_v54 = vadd.f32 %v7286_v53, %v600_v52  ;;  %6230 = vmatprep.subr.bf16.mxu1 %v6949_v17  ;;  %v419_v52 = vld [vmem:[%s8109_s5 + $0x10] sm:$0xff] }
 0x1c5   : > { %6211 = vmatpush3.bf16.msra.mxu0 %v7277_v51 }
 0x1c6   : > { %5546 = vmatprep.subr.mxu0 %v6951_v22  ;;  %5576 = vmatmul.mubr.msk.f32.vlgmr.msra.gmra.mrb[0].mxu1 %vm466_vm0, %v7225_v1 }
 0x1c7   : > { %5597 = vmatprep.mubr.msk.f32.mxu1 %vm6950_vm2, %v6951_v22 }
 0x1c8   : > { %5544 = vmatmul.mubr.msk.f32.vlgmr.msra.gmra.mrb[2].mxu0 %vm466_vm0, %v605_v54  ;;  %v420_v54 = vld [vmem:[%s8109_s5 + $0x18] sm:$0xff] }
 0x1c9   : > { %5548 = vmatprep.mubr.msk.f32.mxu0 %vm6950_vm2, %v6951_v22 }
 0x293   : > { %v564_v57 = vpop.f32.mrb[0].mxu0 }
 0x294   : > { %v7298_v58 = vadd.f32 %v571_v56, %v564_v57  ;;  %v5534_v59 = vpop.f32.mrb[1].mxu0  ;;  %v581_v31 = vadd.f32 %v579_v30, %v564_v57  ;;  %v7348_v56 = vpack.c.bf16 %v420_v54, %v419_v52  ;;  %v436_v57 = vld [vmem:[#allocation8 + $0x20] sm:$0xff]  ;;  %v7444_v52 = vrot.slane %v7243_v24, %v603_v50 }
 0x295   : > { %v437_v59 = vld [vmem:[#allocation8 + $0x28] sm:$0xff] }
 0x296   : > { %5547 = vmatpush3.xpose.msk.msra.mxu0 %vm466_vm0, %v7298_v58 }
 0x297   : > { %5551 = vmatprep.subr.mxu0 %v6951_v22 }
 0x29b   : > { %v679_v62 = vpop.f32.mrb[2].mxu0 }
 0x29c   : > { %v680_v63 = vadd.f32 %v679_v62, %v7307_v61  ;;  %v5545_v0 = vpop.f32.mrb[3].mxu0  ;;  %v7355_v62 = vpack.c.bf16 %v437_v59, %v436_v57 }
 0x29d   : > { %v439_v0 = vld [vmem:[#allocation8 + $0x38] sm:$0xff] }
 0x29e   : > { %5549 = vmatmul.mubr.msk.f32.vlgmr.msra.gmra.mrb[4].mxu0 %vm466_vm0, %v680_v63  ;;  %6232 = vmatpush3.bf16.msra.mxu1 %v7355_v62  ;;  %v438_v63 = vld [vmem:[#allocation8 + $0x30] sm:$0xff] }
 0x29f   : > { %5553 = vmatprep.mubr.msk.f32.mxu0 %vm6950_vm2, %v6951_v22  ;;  %6233 = vmatprep.subr.bf16.mxu1 %v6949_v17 }
 0x371   : > { %v755_v2 = vpop.f32.mrb[4].mxu0 }
 0x372   : > { %v759_v3 = vmul.f32 0.17677669, %v755_v2  ;;  %v5550_v4 = vpop.f32.mrb[5].mxu0  ;;  %v7359_v2 = vpack.c.bf16 %v439_v0, %v438_v63  ;;  %v7450_v63 = vrot.slane %v7243_v24, %v608_v60 }
 0x373   : > { %v442_v4 = vld [vmem:[#allocation8 + $0x48] sm:$0xff] }
 0x374   : > { %v761_v5 = vsel %vm760_vm3, %v759_v3, -inf  ;;  %6235 = vmatpush3.bf16.msra.mxu1 %v7359_v2 }
 0x375   : > { %v762_v6 = vrot.slane %v761_v5, 4  ;;  %6242 = vmatprep.subr.bf16.mxu1 %v6949_v17 }
 0x377   : > { %v763_v7 = vmax.f32 %v761_v5, %v762_v6  ;;  %5598 = vmatmul.mubr.msk.f32.vlgmr.msra.gmra.mrb[2].mxu1 %vm466_vm0, %v7225_v1  ;;  %v443_v5 = vld [vmem:[#allocation8 + $0x50] sm:$0xff] }
 0x378   : > { %5619 = vmatprep.mubr.msk.f32.mxu1 %vm6950_vm2, %v6951_v22 }
 0x379   : > { %v764_v8 = vrot.slane %v763_v7, 2 }
 0x37b   : > { %v765_v9 = vmax.f32 %v763_v7, %v764_v8  ;;  %v444_v7 = vld [vmem:[#allocation8 + $0x58] sm:$0xff] }
 0x37c   : > { %v7370_v8 = vpack.c.bf16 %v444_v7, %v443_v5 }
 0x37d   : > { %v766_v10 = vrot.slane %v765_v9, 1 }
 0x37f   : > { %v767_v11 = vmax.f32 %v765_v9, %v766_v10  ;;  %v5135_v9 = vld [vmem:[%s8109_s5 + $0x20] sm:$0xff]  ;;  %v5136_v10 = vld [vmem:[%s8109_s5 + $0x28] sm:$0xff] }
 0x381   : > { %v768_v12 = vsub.f32 %v759_v3, %v767_v11  ;;  %v441_v3 = vld [vmem:[#allocation8 + $0x40] sm:$0xff]  ;;  %v7385_v11 = vpack.c.bf16 %v5136_v10, %v5135_v9  ;;  %v7456_v10 = vrot.slane %v7243_v24, %v570_v55 }
 0x382   : > { %v7367_v6 = vpack.c.bf16 %v442_v4, %v441_v3 }
 0x383   : > { %v769_v13 = vmul.f32 1.442695, %v768_v12  ;;  %v5137_v12 = vld [vmem:[%s8109_s5 + $0x30] sm:$0xff] }
 0x384   : > { %6244 = vmatpush3.bf16.msra.mxu1 %v7367_v6 }
 0x385   : > { %6654 = vpow2.f32 %v769_v13  ;;  %6245 = vmatprep.subr.bf16.mxu1 %v6949_v17  ;;  %v5138_v13 = vld [vmem:[%s8109_s5 + $0x38] sm:$0xff] }
 0x388   : > { %6247 = vmatpush3.bf16.msra.mxu1 %v7370_v8 }
 0x389   : > { %6254 = vmatprep.subr.bf16.mxu1 %v6949_v17 }
 0x38b   : > { %5620 = vmatmul.mubr.msk.f32.vlgmr.msra.gmra.mrb[4].mxu1 %vm466_vm0, %v7225_v1 }
 0x38c   : > { %5665 = vmatprep.mubr.msk.f32.mxu1 %vm6950_vm2, %v6951_v22 }
 0x38f   : > { %v6655_v14 = vpop.eup %6654 }
 0x390   : > { %v771_v15 = vsel %vm760_vm3, %v6655_v14, 0.0 }
 0x391   : > { %v772_v16 = vrot.slane %v771_v15, 4 }
 0x393   : > { %v773_v18 = vadd.f32 %v772_v16, %v771_v15  ;;  %v7395_v16 = vpack.c.bf16 %v5138_v13, %v5137_v12  ;;  %v1184_v12 = vsub.s32 4, %v7241_v23 }
 0x395   : > { %v774_v19 = vrot.slane %v773_v18, 2 }
 0x397   : > { %v775_v20 = vadd.f32 %v774_v19, %v773_v18  ;;  %v5139_v18 = vld [vmem:[%s8109_s5 + $0x40] sm:$0xff]  ;;  %v5140_v19 = vld [vmem:[%s8109_s5 + $0x48] sm:$0xff] }
 0x399   : > { %v776_v21 = vrot.slane %v775_v20, 1 }
 0x39b   : > { %v777_v25 = vadd.f32 %v776_v21, %v775_v20  ;;  %v7407_v20 = vpack.c.bf16 %v5140_v19, %v5139_v18  ;;  %v5141_v21 = vld [vmem:[%s8109_s5 + $0x50] sm:$0xff] }
 0x39d   : > { %6656 = vrcp.f32 %v777_v25  ;;  %v5142_v25 = vld [vmem:[%s8109_s5 + $0x58] sm:$0xff] }
 0x3a7   : > { %v6657_v26 = vpop.eup %6656 }
 0x3a8   : > { %v779_v27 = vmul.f32 %v6657_v26, %v6655_v14  ;;  %v7418_v26 = vpack.c.bf16 %v5142_v25, %v5141_v21 }
 0x3aa   : > { %v780_v28 = vadd.f32 1e-08, %v779_v27  ;;  %v1010_v27 = vpop.f32.mrb[0].mxu1 }
 0x3ac   : > { %v781_v29 = vsel %vm760_vm3, %v780_v28, 0.0 }
 0x3ad   : > { %782 = vadd.xlane.f32.xlu1 %v781_v29 }
 0x3be   : > { %787 = vrot.lane.b32.xlu1 %v581_v31, %s6953_s17  ;;  %s5211_s17 = sshll.u32 %s7026_s13, 6  ;;  %s6867_s13 = scalar_lea.vmem %s8061_s15, 64 }
 0x3bf   : > { %s8059_s25 = scalar_lea.hbm %s8137_s22, %s5211_s17  ;;  %p6868_p3 = scmp.ne.s32.totalorder %s8061_s15, %s6867_s13 }
 0x3c0   : > { %p6875_p2 = scmp.lt.s32.totalorder %s6873_s20, %s6867_s13 }
 0x3c1   : > { %p6869_p7 = pnand %p6868_p3, %p7159_p5 }
 0x3c2   : > { %p6876_p4 = por %p6875_p2, %p6874_p1 }
 0x3c3   : > { %p6870_p12 = pneg %p6869_p7 }
 0x3c5   : > { %p6877_p0 = pnand %p6876_p4, %p6870_p12 }
 0x43a   : > { %v783_v40 = vpop.xlane.xlu1 %782 }
 0x43b   : > { %6658 = vrcp.f32 %v783_v40 }
 0x43e   : > { %v7328_v42 = vpop.permute.xlu1 %787 }
 0x43f   : > { %5552 = vmatpush3.msra.mxu0 %v7328_v42 }
 0x440   : > { %6212 = vmatprep.subr.bf16.mxu0 %v6949_v17 }
 0x445   : > { %v6659_v46 = vpop.eup %6658 }
 0x446   : > { %v785_v48 = vmul.f32 %v6659_v46, %v780_v28  ;;  %v5577_v28 = vpop.f32.mrb[1].mxu1 }
 0x448   : > { %5554 = vmatmul.mubr.msk.f32.vlgmr.msra.gmra.mrb[6].mxu0 %vm790_vm4, %v785_v48 }
 0x449   : > { %6214 = vmatpush3.bf16.msra.mxu0 %v7338_v47  ;;  %5564 = vmatprep.mubr.msk.f32.mxu0 %vm6950_vm2, %v6951_v22 }
 0x44a   : > { %6215 = vmatprep.subr.bf16.mxu0 %v6949_v17  ;;  %v1166_v29 = vpop.f32.mrb[2].mxu1 }
 0x44b   : > { %v5599_v30 = vpop.f32.mrb[3].mxu1 }
 0x44d   : > { %6217 = vmatpush3.bf16.msra.mxu0 %v7348_v56 }
 0x44e   : > { %6224 = vmatprep.subr.bf16.mxu0 %v6949_v17 }
 0x45e   : > { %v1326_v31 = vpop.f32.mrb[4].mxu1 }
 0x45f   : > { %v5621_v32 = vpop.f32.mrb[5].mxu1 }
 0x51b   : > { %v860_v14 = vpop.f32.mrb[6].mxu0 }
 0x51c   : > { %v5555_v15 = vpop.f32.mrb[7].mxu0  ;;  %5565 = vmatmul.mubr.msk.f32.vlgmr.msra.gmra.mrb[8].mxu0 %vm466_vm0, %v860_v14 }
 0x51d   : > { %6226 = vmatpush3.bf16.msra.mxu0 %v7385_v11  ;;  %5586 = vmatprep.mubr.msk.f32.mxu0 %vm6950_vm2, %v6951_v22  ;;  %v1327_v15 = vadd.f32 %v1326_v31, %v7456_v10 }
 0x51e   : > { %6227 = vmatprep.subr.bf16.mxu0 %v6949_v17 }
 0x521   : > { %6229 = vmatpush3.bf16.msra.mxu0 %v7395_v16 }
 0x522   : > { %6236 = vmatprep.subr.bf16.mxu0 %v6949_v17 }
 0x524   : > { %5587 = vmatmul.mubr.msk.f32.vlgmr.msra.gmra.mrb[10].mxu0 %vm466_vm0, %v860_v14 }
 0x525   : > { %6238 = vmatpush3.bf16.msra.mxu0 %v7407_v20  ;;  %5608 = vmatprep.mubr.msk.f32.mxu0 %vm6950_vm2, %v6951_v22 }
 0x526   : > { %6239 = vmatprep.subr.bf16.mxu0 %v6949_v17 }
 0x529   : > { %6241 = vmatpush3.bf16.msra.mxu0 %v7418_v26 }
 0x52a   : > { %6248 = vmatprep.subr.bf16.mxu0 %v6949_v17 }
 0x52c   : > { %5609 = vmatmul.mubr.msk.f32.vlgmr.msra.gmra.mrb[12].mxu0 %vm466_vm0, %v860_v14  ;;  %v7462_v14 = vrot.slane %v7243_v24, %v1184_v12 }
 0x52d   : > { %5630 = vmatprep.mubr.msk.f32.mxu0 %vm6950_vm2, %v6951_v22 }
 0x5ef   : > { %v937_v38 = vpop.f32.mrb[8].mxu0 }
 0x5f0   : > { %v938_v40 = vadd.f32 %v937_v38, %v7431_v35  ;;  %v5566_v43 = vpop.f32.mrb[9].mxu0 }
 0x5f2   : > { %v1014_v46 = vadd.f32 %v1010_v27, %v938_v40 }
 0x5f4   : > { %v1019_v48 = vadd.f32 %v7438_v45, %v1014_v46 }
 0x5f6   : > { %v5150_v41 = vmul.f32 -1.442695, %v1019_v48 }
 0x5f7   : > { %v1096_v54 = vpop.f32.mrb[10].mxu0 }
 0x5f8   : > { %6660 = vpow2.f32 %v5150_v41  ;;  %v1097_v57 = vadd.f32 %v1096_v54, %v7444_v52  ;;  %v5588_v59 = vpop.f32.mrb[11].mxu0  ;;  %v445_v41 = vld [vmem:[%s8111_s7] sm:$0xff] }
 0x5f9   : > { %v448_v59 = vld [vmem:[%s8111_s7 + $0x18] sm:$0xff] }
 0x5fa   : > { %v1170_v0 = vadd.f32 %v1166_v29, %v1097_v57  ;;  %v447_v57 = vld [vmem:[%s8111_s7 + $0x10] sm:$0xff] }
 0x5fc   : > { %v1175_v3 = vadd.f32 %v7450_v63, %v1170_v0  ;;  %v7489_v0 = vpack.c.bf16 %v448_v59, %v447_v57  ;;  %v7571_v59 = vrot.slane %v7247_v33, %v1017_v37  ;;  %v465_v37 = vld [vmem:[%s8112_s8 + $0x78] sm:$0xff] }
 0x5fe   : > { %v5153_v4 = vmul.f32 -1.442695, %v1175_v3  ;;  %v450_v3 = vld [vmem:[%s8112_s8] sm:$0xff] }
 0x5ff   : > { %v1252_v5 = vpop.f32.mrb[12].mxu0 }
 0x600   : > { %6662 = vpow2.f32 %v5153_v4  ;;  %v5610_v7 = vpop.f32.mrb[13].mxu0  ;;  %v1253_v19 = vadd.f32 %v1252_v5, %v7462_v14  ;;  %v451_v4 = vld [vmem:[%s8112_s8 + $0x8] sm:$0xff]  ;;  %v452_v5 = vld [vmem:[%s8112_s8 + $0x10] sm:$0xff] }
 0x601   : > { %v7502_v7 = vpack.c.bf16 %v451_v4, %v450_v3 }
 0x602   : > { %v6661_v50 = vpop.eup %6660 }
 0x603   : > { %v1023_v9 = vadd.f32 1.0, %v6661_v50  ;;  %v453_v50 = vld [vmem:[%s8112_s8 + $0x18] sm:$0xff]  ;;  %6256 = vmatpush3.bf16.msra.mxu1 %v7502_v7 }
 0x604   : > { %6257 = vmatprep.subr.bf16.mxu1 %v6949_v17 }
 0x605   : > { %6664 = vrcp.f32 %v1023_v9  ;;  %v7508_v9 = vpack.c.bf16 %v453_v50, %v452_v5 }
 0x607   : > { %6259 = vmatpush3.bf16.msra.mxu1 %v7508_v9 }
 0x608   : > { %6260 = vmatprep.subr.bf16.mxu1 %v6949_v17 }
 0x60a   : > { %v6663_v13 = vpop.eup %6662 }
 0x60b   : > { %v1179_v60 = vadd.f32 1.0, %v6663_v13  ;;  %v454_v13 = vld [vmem:[%s8112_s8 + $0x20] sm:$0xff] }
 0x60d   : > { %6666 = vrcp.f32 %v1179_v60  ;;  %v455_v60 = vld [vmem:[%s8112_s8 + $0x28] sm:$0xff] }
 0x60f   : > { %v6665_v18 = vpop.eup %6664 }
 0x610   : > { %v1330_v21 = vmul.f32 %v6665_v18, %v1327_v15  ;;  %v7518_v15 = vpack.c.bf16 %v455_v60, %v454_v13  ;;  %v456_v18 = vld [vmem:[%s8112_s8 + $0x30] sm:$0xff] }
 0x612   : > { %v1331_v25 = vadd.f32 %v1330_v21, %v1253_v19  ;;  %v457_v19 = vld [vmem:[%s8112_s8 + $0x38] sm:$0xff]  ;;  %6262 = vmatpush3.bf16.msra.mxu1 %v7518_v15 }
 0x613   : > { %v7528_v21 = vpack.c.bf16 %v457_v19, %v456_v18  ;;  %6263 = vmatprep.subr.bf16.mxu1 %v6949_v17  ;;  %v7607_v19 = vrot.slane %v7243_v24, %v488_v34 }
 0x614   : > { %6668 = vtanh.f32 %v1331_v25  ;;  %v458_v25 = vld [vmem:[%s8112_s8 + $0x40] sm:$0xff] }
 0x616   : > { %6265 = vmatpush3.bf16.msra.mxu1 %v7528_v21 }
 0x617   : > { %v6667_v55 = vpop.eup %6666  ;;  %6266 = vmatprep.subr.bf16.mxu1 %v6949_v17 }
 0x618   : > { %v1333_v27 = vsub.f32 1.0, %v6667_v55  ;;  %v1335_v30 = vmul.f32 %v6667_v55, %v7225_v1  ;;  %v446_v1 = vld [vmem:[%s8111_s7 + $0x8] sm:$0xff] }
 0x619   : > { %v7479_v54 = vpack.c.bf16 %v446_v1, %v445_v41  ;;  %v459_v55 = vld [vmem:[%s8112_s8 + $0x48] sm:$0xff]  ;;  %v7566_v1 = vrot.slane %v7247_v33, %v1184_v12  ;;  %v464_v33 = vld [vmem:[%s8112_s8 + $0x70] sm:$0xff] }
 0x61a   : > { %v7588_v12 = vpack.c.bf16 %v465_v37, %v464_v33 }
 0x61b   : > { %6250 = vmatpush3.bf16.msra.mxu0 %v7479_v54 }
 0x61c   : > { %6251 = vmatprep.subr.bf16.mxu0 %v6949_v17 }
 0x61e   : > { %v6669_v28 = vpop.eup %6668 }
 0x61f   : > { %v1334_v29 = vmul.f32 %v6669_v28, %v1333_v27  ;;  %6253 = vmatpush3.bf16.msra.mxu0 %v7489_v0  ;;  %v7538_v27 = vpack.c.bf16 %v459_v55, %v458_v25  ;;  %v460_v28 = vld [vmem:[%s8112_s8 + $0x50] sm:$0xff] }
 0x620   : > { %6278 = vmatprep.subr.bf16.mxu0 %v6949_v17 }
 0x621   : > { %v7467_v32 = vadd.f32 %v1335_v30, %v1334_v29  ;;  %v461_v29 = vld [vmem:[%s8112_s8 + $0x58] sm:$0xff]  ;;  %6268 = vmatpush3.bf16.msra.mxu1 %v7538_v27 }
 0x622   : > { %v7548_v30 = vpack.c.bf16 %v461_v29, %v460_v28  ;;  %6269 = vmatprep.subr.bf16.mxu1 %v6949_v17 }
 0x623   : > { %v1337_v38 = vsel %vm582_vm1, %v7467_v32, 0.0 }
 0x624   : > { %1338 = vadd.xlane.f32.xlu1 %v1337_v38  ;;  %v462_v38 = vld [vmem:[%s8112_s8 + $0x60] sm:$0xff] }
 0x625   : > { %6271 = vmatpush3.bf16.msra.mxu1 %v7548_v30 }
 0x626   : > { %6272 = vmatprep.subr.bf16.mxu1 %v6949_v17 }
 0x6b1   : > { %v1339_v31 = vpop.xlane.xlu1 %1338 }
 0x6b2   : > { %v1340_v40 = vmul.f32 0.03125, %v1339_v31  ;;  %v463_v31 = vld [vmem:[%s8112_s8 + $0x68] sm:$0xff] }
 0x6b4   : > { %v1341_v43 = vsub.f32 %v7467_v32, %v1340_v40  ;;  %v7558_v40 = vpack.c.bf16 %v463_v31, %v462_v38 }
 0x6b6   : > { %v1342_v46 = vmul.f32 %v1341_v43, %v1341_v43  ;;  %6274 = vmatpush3.bf16.msra.mxu1 %v7558_v40 }
 0x6b7   : > { %6275 = vmatprep.subr.bf16.mxu1 %v6949_v17 }
 0x6b8   : > { %v1343_v48 = vsel %vm582_vm1, %v1342_v46, 0.0 }
 0x6b9   : > { %1344 = vadd.xlane.f32.xlu0 %v1343_v48 }
 0x6ba   : > { %6277 = vmatpush3.bf16.msra.mxu1 %v7588_v12 }
 0x6bb   : > { %6296 = vmatprep.subr.bf16.mxu1 %v6949_v17 }
 0x746   : > { %v1345_v46 = vpop.xlane.xlu0 %1344 }
 0x747   : > { %v1346_v48 = vmul.f32 0.03125, %v1345_v46 }
 0x749   : > { %v1347_v41 = vadd.f32 1e-05, %v1346_v48 }
 0x74b   : > { %6670 = vrsqrt.f32 %v1347_v41 }
 0x755   : > { %v6671_v57 = vpop.eup %6670 }
 0x756   : > { %v1349_v3 = vmul.f32 %v6671_v57, %v1341_v43  ;;  %v7595_v43 = vld [vmem:[%s8111_s7 + $0x20] ss:$0 sm:$0xff] }
 0x758   : > { %v1354_v4 = vmul.f32 %v7566_v1, %v1349_v3 }
 0x75a   : > { %v1359_v5 = vadd.f32 %v7571_v59, %v1354_v4 }
 0x75c   : > { %5631 = vmatmul.mubr.msk.f32.vlgmr.msra.gmra.mrb[14].mxu0 %vm466_vm0, %v1359_v5 }
 0x75d   : > { %6280 = vmatpush3.bf16.msra.mxu0 %v7261_v44  ;;  %5676 = vmatprep.mubr.msk.f32.mxu0 %vm6950_vm2, %v6951_v22 }
 0x75e   : > { %6281 = vmatprep.subr.bf16.mxu0 %v6949_v17 }
 0x761   : > { %6283 = vmatpush3.bf16.msra.mxu0 %v7277_v51 }
 0x762   : > { %5679 = vmatprep.subr.mxu0 %v6951_v22 }
 0x82f   : > { %v1433_v50 = vpop.f32.mrb[14].mxu0 }
 0x830   : > { %v1434_v13 = vadd.f32 %v7595_v43, %v1433_v50  ;;  %v5632_v60 = vpop.f32.mrb[15].mxu0 }
 0x832   : > { %v1437_v18 = vmax.f32 %v1434_v13, 0.0 }
 0x834   : > { %5666 = vmatmul.mubr.f32.vlgmr.msra.gmra.mrb[6].mxu1 %v1437_v18 }
 0x835   : > { %6298 = vmatpush3.bf16.msra.mxu1 %v7385_v11  ;;  %5719 = vmatprep.mubr.msk.f32.mxu1 %vm6950_vm2, %v6951_v22 }
 0x836   : > { %6299 = vmatprep.subr.bf16.mxu1 %v6949_v17 }
 0x839   : > { %6301 = vmatpush3.bf16.msra.mxu1 %v7395_v16 }
 0x83a   : > { %6308 = vmatprep.subr.bf16.mxu1 %v6949_v17 }
 0x907   : > { %v1504_v25 = vpop.f32.mrb[6].mxu1 }
 0x908   : > { %v1508_v55 = vadd.f32 %v1504_v25, %v7467_v32  ;;  %v5667_v28 = vpop.f32.mrb[7].mxu1 }
 0x90a   : > { %v7611_v29 = vadd.f32 %v7607_v19, %v1508_v55 }
 0x90c   : > { %v1514_v38 = vsel %vm582_vm1, %v7611_v29, 0.0 }
 0x90d   : > { %1515 = vadd.xlane.f32.xlu0 %v1514_v38 }
 0x99a   : > { %v1516_v31 = vpop.xlane.xlu0 %1515 }
 0x99b   : > { %v1517_v46 = vmul.f32 0.03125, %v1516_v31 }
 0x99d   : > { %v1518_v48 = vsub.f32 %v7611_v29, %v1517_v46 }
 0x99f   : > { %v1519_v41 = vmul.f32 %v1518_v48, %v1518_v48 }
 0x9a1   : > { %v1520_v23 = vsel %vm582_vm1, %v1519_v41, 0.0 }
 0x9a2   : > { %1521 = vadd.xlane.f32.xlu0 %v1520_v23 }
 0xa2f   : > { %v1522_v24 = vpop.xlane.xlu0 %1521 }
 0xa30   : > { %v1523_v34 = vmul.f32 0.03125, %v1522_v24 }
 0xa32   : > { %v1524_v57 = vadd.f32 1e-05, %v1523_v34 }
 0xa34   : > { %6672 = vrsqrt.f32 %v1524_v57 }
 0xa3e   : > { %v6673_v32 = vpop.eup %6672 }
 0xa3f   : > { %v1526_v3 = vmul.f32 %v6673_v32, %v1518_v48 }
 0xa41   : > { %v1527_v4 = vmul.f32 %v1526_v3, %v7272_v49 }
 0xa43   : > { %v1528_v5 = vadd.f32 %v1527_v4, %v7286_v53 }
 0xa45   : > { %5677 = vmatmul.mubr.msk.f32.vlgmr.msra.gmra.mrb[16].mxu0 %vm466_vm0, %v1528_v5 }
 0xa46   : > { %5680 = vmatpush3.xpose.msk.msra.mxu0 %vm466_vm0, %v7298_v58  ;;  %5681 = vmatprep.mubr.msk.f32.mxu0 %vm6950_vm2, %v6951_v22 }
 0xa47   : > { %5684 = vmatprep.subr.mxu0 %v6951_v22 }
 0xb18   : > { %v1598_v33 = vpop.f32.mrb[16].mxu0 }
 0xb19   : > { %v1599_v37 = vadd.f32 %v1598_v33, %v7307_v61  ;;  %v5678_v50 = vpop.f32.mrb[17].mxu0 }
 0xb1b   : > { %5682 = vmatmul.mubr.msk.f32.vlgmr.msra.gmra.mrb[18].mxu0 %vm466_vm0, %v1599_v37 }
 0xb1c   : > { %5685 = vmatpush3.msra.mxu0 %v7328_v42  ;;  %5686 = vmatprep.mubr.msk.f32.mxu0 %vm6950_vm2, %v6951_v22 }
 0xb1d   : > { %6284 = vmatprep.subr.bf16.mxu0 %v6949_v17 }
 0xbee   : > { %v1671_v13 = vpop.f32.mrb[18].mxu0 }
 0xbef   : > { %v1675_v60 = vmul.f32 0.17677669, %v1671_v13  ;;  %v5683_v18 = vpop.f32.mrb[19].mxu0 }
 0xbf1   : > { %v1676_v25 = vsel %vm760_vm3, %v1675_v60, -inf }
 0xbf2   : > { %v1677_v55 = vrot.slane %v1676_v25, 4 }
 0xbf4   : > { %v1678_v28 = vmax.f32 %v1676_v25, %v1677_v55 }
 0xbf6   : > { %v1679_v38 = vrot.slane %v1678_v28, 2 }
 0xbf8   : > { %v1680_v31 = vmax.f32 %v1678_v28, %v1679_v38 }
 0xbfa   : > { %v1681_v46 = vrot.slane %v1680_v31, 1 }
 0xbfc   : > { %v1682_v48 = vmax.f32 %v1680_v31, %v1681_v46 }
 0xbfe   : > { %v1683_v41 = vsub.f32 %v1675_v60, %v1682_v48 }
 0xc00   : > { %v1684_v23 = vmul.f32 1.442695, %v1683_v41 }
 0xc02   : > { %6674 = vpow2.f32 %v1684_v23 }
 0xc0c   : > { %v6675_v24 = vpop.eup %6674 }
 0xc0d   : > { %v1686_v34 = vsel %vm760_vm3, %v6675_v24, 0.0 }
 0xc0e   : > { %v1687_v57 = vrot.slane %v1686_v34, 4 }
 0xc10   : > { %v1688_v32 = vadd.f32 %v1687_v57, %v1686_v34 }
 0xc12   : > { %v1689_v3 = vrot.slane %v1688_v32, 2 }
 0xc14   : > { %v1690_v4 = vadd.f32 %v1689_v3, %v1688_v32 }
 0xc16   : > { %v1691_v5 = vrot.slane %v1690_v4, 1 }
 0xc18   : > { %v1692_v33 = vadd.f32 %v1691_v5, %v1690_v4 }
 0xc1a   : > { %6676 = vrcp.f32 %v1692_v33 }
 0xc24   : > { %v6677_v37 = vpop.eup %6676 }
 0xc25   : > { %v1694_v50 = vmul.f32 %v6677_v37, %v6675_v24 }
 0xc27   : > { %v1695_v13 = vadd.f32 1e-08, %v1694_v50 }
 0xc29   : > { %v1696_v18 = vsel %vm760_vm3, %v1695_v13, 0.0 }
 0xc2a   : > { %1697 = vadd.xlane.f32.xlu1 %v1696_v18 }
 0xcb7   : > { %v1698_v25 = vpop.xlane.xlu1 %1697 }
 0xcb8   : > { %6678 = vrcp.f32 %v1698_v25 }
 0xcc2   : > { %v6679_v60 = vpop.eup %6678 }
 0xcc3   : > { %v1700_v55 = vmul.f32 %v6679_v60, %v1695_v13 }
 0xcc5   : > { %5687 = vmatmul.mubr.msk.f32.vlgmr.msra.gmra.mrb[20].mxu0 %vm790_vm4, %v1700_v55 }
 0xcc6   : > { %6286 = vmatpush3.bf16.msra.mxu0 %v7338_v47  ;;  %5697 = vmatprep.mubr.msk.f32.mxu0 %vm6950_vm2, %v6951_v22 }
 0xcc7   : > { %6287 = vmatprep.subr.bf16.mxu0 %v6949_v17 }
 0xcca   : > { %6289 = vmatpush3.bf16.msra.mxu0 %v7348_v56 }
 0xccb   : > { %6290 = vmatprep.subr.bf16.mxu0 %v6949_v17 }
 0xd98   : > { %v1770_v28 = vpop.f32.mrb[20].mxu0 }
 0xd99   : > { %v5688_v38 = vpop.f32.mrb[21].mxu0  ;;  %5698 = vmatmul.mubr.msk.f32.vlgmr.msra.gmra.mrb[22].mxu0 %vm466_vm0, %v1770_v28  ;;  %5720 = vmatmul.mubr.msk.f32.vlgmr.msra.gmra.mrb[8].mxu1 %vm466_vm0, %v1770_v28 }
 0xd9a   : > { %6292 = vmatpush3.bf16.msra.mxu0 %v7316_v36  ;;  %6310 = vmatpush3.bf16.msra.mxu1 %v7407_v20 }
 0xd9b   : > { %6293 = vmatprep.subr.bf16.mxu0 %v6949_v17  ;;  %6311 = vmatprep.subr.bf16.mxu1 %v6949_v17 }
 0xd9c   : > { %5708 = vmatprep.mubr.msk.f32.mxu0 %vm6950_vm2, %v6951_v22  ;;  %5741 = vmatprep.mubr.msk.f32.mxu1 %vm6950_vm2, %v6951_v22 }
 0xd9e   : > { %6295 = vmatpush3.bf16.msra.mxu0 %v7320_v39  ;;  %6313 = vmatpush3.bf16.msra.mxu1 %v7418_v26 }
 0xd9f   : > { %6302 = vmatprep.subr.bf16.mxu0 %v6949_v17  ;;  %6320 = vmatprep.subr.bf16.mxu1 %v6949_v17 }
 0xda1   : > { %5709 = vmatmul.mubr.msk.f32.vlgmr.msra.gmra.mrb[24].mxu0 %vm466_vm0, %v7611_v29  ;;  %5742 = vmatmul.mubr.msk.f32.vlgmr.msra.gmra.mrb[10].mxu1 %vm466_vm0, %v1770_v28 }
 0xda2   : > { %6304 = vmatpush3.bf16.msra.mxu0 %v7355_v62  ;;  %5730 = vmatprep.mubr.msk.f32.mxu0 %vm6950_vm2, %v6951_v22 }
 0xda3   : > { %6305 = vmatprep.subr.bf16.mxu0 %v6949_v17  ;;  %6322 = vmatpush3.bf16.msra.mxu1 %v7479_v54 }
 0xda4   : > { %6323 = vmatprep.subr.bf16.mxu1 %v6949_v17  ;;  %5763 = vmatprep.mubr.msk.f32.mxu1 %vm6950_vm2, %v6951_v22 }
 0xda6   : > { %6307 = vmatpush3.bf16.msra.mxu0 %v7359_v2 }
 0xda7   : > { %6314 = vmatprep.subr.bf16.mxu0 %v6949_v17  ;;  %6325 = vmatpush3.bf16.msra.mxu1 %v7489_v0 }
 0xda8   : > { %6350 = vmatprep.subr.bf16.mxu1 %v6949_v17 }
 0xda9   : > { %5731 = vmatmul.mubr.msk.f32.vlgmr.msra.gmra.mrb[26].mxu0 %vm466_vm0, %v7611_v29 }
 0xdaa   : > { %6316 = vmatpush3.bf16.msra.mxu0 %v7367_v6  ;;  %5752 = vmatprep.mubr.msk.f32.mxu0 %vm6950_vm2, %v6951_v22 }
 0xdab   : > { %6317 = vmatprep.subr.bf16.mxu0 %v6949_v17 }
 0xdae   : > { %6319 = vmatpush3.bf16.msra.mxu0 %v7370_v8 }
 0xdaf   : > { %6326 = vmatprep.subr.bf16.mxu0 %v6949_v17 }
 0xdb1   : > { %5753 = vmatmul.mubr.msk.f32.vlgmr.msra.gmra.mrb[28].mxu0 %vm466_vm0, %v7611_v29 }
 0xdb2   : > { %6328 = vmatpush3.bf16.msra.mxu0 %v7502_v7  ;;  %5798 = vmatprep.mubr.msk.f32.mxu0 %vm6950_vm2, %v6951_v22 }
 0xdb3   : > { %6329 = vmatprep.subr.bf16.mxu0 %v6949_v17 }
 0xdb6   : > { %6331 = vmatpush3.bf16.msra.mxu0 %v7508_v9 }
 0xdb7   : > { %6332 = vmatprep.subr.bf16.mxu0 %v6949_v17 }
 0xdba   : > { %6334 = vmatpush3.bf16.msra.mxu0 %v7518_v15 }
 0xdbb   : > { %6335 = vmatprep.subr.bf16.mxu0 %v6949_v17 }
 0xdbe   : > { %6337 = vmatpush3.bf16.msra.mxu0 %v7528_v21 }
 0xdbf   : > { %6338 = vmatprep.subr.bf16.mxu0 %v6949_v17 }
 0xdc2   : > { %6340 = vmatpush3.bf16.msra.mxu0 %v7538_v27 }
 0xdc3   : > { %6341 = vmatprep.subr.bf16.mxu0 %v6949_v17 }
 0xdc6   : > { %6343 = vmatpush3.bf16.msra.mxu0 %v7548_v30 }
 0xdc7   : > { %6344 = vmatprep.subr.bf16.mxu0 %v6949_v17 }
 0xdca   : > { %6346 = vmatpush3.bf16.msra.mxu0 %v7558_v40 }
 0xdcb   : > { %6347 = vmatprep.subr.bf16.mxu0 %v6949_v17 }
 0xdce   : > { %6349 = vmatpush3.bf16.msra.mxu0 %v7588_v12 }
 0xdcf   : > { %6368 = vmatprep.subr.bf16.mxu0 %v6949_v17 }
 0xe6c   : > { %v1843_v31 = vpop.f32.mrb[22].mxu0  ;;  %v1994_v46 = vpop.f32.mrb[8].mxu1 }
 0xe6d   : > { %v5699_v48 = vpop.f32.mrb[23].mxu0  ;;  %v5721_v41 = vpop.f32.mrb[9].mxu1  ;;  %v1844_v23 = vadd.f32 %v1843_v31, %v7431_v35  ;;  %v1995_v33 = vadd.f32 %v1994_v46, %v7444_v52 }
 0xe74   : > { %v1916_v24 = vpop.f32.mrb[24].mxu0  ;;  %v2142_v34 = vpop.f32.mrb[10].mxu1 }
 0xe75   : > { %v1920_v57 = vadd.f32 %v1916_v24, %v1844_v23  ;;  %v5710_v32 = vpop.f32.mrb[25].mxu0  ;;  %v5743_v3 = vpop.f32.mrb[11].mxu1  ;;  %v2143_v46 = vadd.f32 %v2142_v34, %v7462_v14 }
 0xe77   : > { %v1921_v4 = vadd.f32 %v1920_v57, %v7438_v45 }
 0xe79   : > { %v5164_v5 = vmul.f32 -1.442695, %v1921_v4 }
 0xe7b   : > { %6680 = vpow2.f32 %v5164_v5 }
 0xe7c   : > { %v2064_v37 = vpop.f32.mrb[26].mxu0 }
 0xe7d   : > { %v2068_v50 = vadd.f32 %v2064_v37, %v1995_v33  ;;  %v5732_v13 = vpop.f32.mrb[27].mxu0 }
 0xe7f   : > { %v2069_v18 = vadd.f32 %v2068_v50, %v7450_v63 }
 0xe81   : > { %v5167_v25 = vmul.f32 -1.442695, %v2069_v18 }
 0xe83   : > { %6682 = vpow2.f32 %v5167_v25 }
 0xe84   : > { %v2212_v60 = vpop.f32.mrb[28].mxu0 }
 0xe85   : > { %v6681_v55 = vpop.eup %6680  ;;  %v5754_v28 = vpop.f32.mrb[29].mxu0  ;;  %v2213_v41 = vadd.f32 %v2212_v60, %v7456_v10 }
 0xe86   : > { %v1925_v38 = vadd.f32 1.0, %v6681_v55 }
 0xe88   : > { %6684 = vrcp.f32 %v1925_v38 }
 0xe8d   : > { %v6683_v31 = vpop.eup %6682 }
 0xe8e   : > { %v2073_v48 = vadd.f32 1.0, %v6683_v31 }
 0xe90   : > { %6686 = vrcp.f32 %v2073_v48 }
 0xe92   : > { %v6685_v23 = vpop.eup %6684 }
 0xe93   : > { %v2216_v24 = vmul.f32 %v6685_v23, %v2213_v41 }
 0xe95   : > { %v2217_v57 = vadd.f32 %v2216_v24, %v2143_v46 }
 0xe97   : > { %6688 = vtanh.f32 %v2217_v57 }
 0xe9a   : > { %v6687_v32 = vpop.eup %6686 }
 0xe9b   : > { %v2219_v3 = vsub.f32 1.0, %v6687_v32  ;;  %v2221_v33 = vmul.f32 %v6687_v32, %v7611_v29 }
 0xea1   : > { %v6689_v4 = vpop.eup %6688 }
 0xea2   : > { %v2220_v5 = vmul.f32 %v6689_v4, %v2219_v3 }
 0xea4   : > { %v2222_v37 = vadd.f32 %v2221_v33, %v2220_v5 }
 0xea6   : > { %v2223_v50 = vsel %vm582_vm1, %v2222_v37, 0.0 }
 0xea7   : > { %2224 = vadd.xlane.f32.xlu0 %v2223_v50 }
 0xf34   : > { %v2225_v13 = vpop.xlane.xlu0 %2224 }
 0xf35   : > { %v2226_v18 = vmul.f32 0.03125, %v2225_v13 }
 0xf37   : > { %v2227_v25 = vsub.f32 %v2222_v37, %v2226_v18 }
 0xf39   : > { %v2228_v60 = vmul.f32 %v2227_v25, %v2227_v25 }
 0xf3b   : > { %v2229_v34 = vsel %vm582_vm1, %v2228_v60, 0.0 }
 0xf3c   : > { %2230 = vadd.xlane.f32.xlu1 %v2229_v34 }
 0xfc9   : > { %v2231_v55 = vpop.xlane.xlu1 %2230 }
 0xfca   : > { %v2232_v28 = vmul.f32 0.03125, %v2231_v55 }
 0xfcc   : > { %v2233_v38 = vadd.f32 1e-05, %v2232_v28 }
 0xfce   : > { %6690 = vrsqrt.f32 %v2233_v38 }
 0xfd8   : > { %v6691_v31 = vpop.eup %6690 }
 0xfd9   : > { %v2235_v48 = vmul.f32 %v6691_v31, %v2227_v25 }
 0xfdb   : > { %v2236_v41 = vmul.f32 %v2235_v48, %v7566_v1 }
 0xfdd   : > { %v2237_v29 = vadd.f32 %v2236_v41, %v7571_v59 }
 0xfdf   : > { %5764 = vmatmul.mubr.msk.f32.vlgmr.msra.gmra.mrb[12].mxu1 %vm466_vm0, %v2237_v29 }
 0xfe0   : > { %6352 = vmatpush3.bf16.msra.mxu1 %v7261_v44  ;;  %5809 = vmatprep.mubr.msk.f32.mxu1 %vm6950_vm2, %v6951_v22 }
 0xfe1   : > { %6353 = vmatprep.subr.bf16.mxu1 %v6949_v17 }
 0xfe4   : > { %6355 = vmatpush3.bf16.msra.mxu1 %v7277_v51 }
 0xfe5   : > { %5812 = vmatprep.subr.mxu1 %v6951_v22 }
0x10b2   : > { %v2307_v23 = vpop.f32.mrb[12].mxu1 }
0x10b3   : > { %v2308_v46 = vadd.f32 %v7595_v43, %v2307_v23  ;;  %v5765_v24 = vpop.f32.mrb[13].mxu1 }
0x10b5   : > { %v2311_v57 = vmax.f32 %v2308_v46, 0.0 }
0x10b7   : > { %5799 = vmatmul.mubr.f32.vlgmr.msra.gmra.mrb[30].mxu0 %v2311_v57 }
0x10b8   : > { %6370 = vmatpush3.bf16.msra.mxu0 %v7385_v11  ;;  %5852 = vmatprep.mubr.msk.f32.mxu0 %vm6950_vm2, %v6951_v22 }
0x10b9   : > { %6371 = vmatprep.subr.bf16.mxu0 %v6949_v17 }
0x10bc   : > { %6373 = vmatpush3.bf16.msra.mxu0 %v7395_v16 }
0x10bd   : > { %6380 = vmatprep.subr.bf16.mxu0 %v6949_v17 }
0x118a   : > { %v2378_v32 = vpop.f32.mrb[30].mxu0 }
0x118b   : > { %v2382_v3 = vadd.f32 %v2378_v32, %v2222_v37  ;;  %v5800_v4 = vpop.f32.mrb[31].mxu0 }
0x118d   : > { %v7724_v5 = vadd.f32 %v2382_v3, %v7607_v19 }
0x118f   : > { %v2384_v33 = vsel %vm582_vm1, %v7724_v5, 0.0 }
0x1190   : > { %2385 = vadd.xlane.f32.xlu0 %v2384_v33 }
0x121d   : > { %v2386_v50 = vpop.xlane.xlu0 %2385 }
0x121e   : > { %v2387_v13 = vmul.f32 0.03125, %v2386_v50 }
0x1220   : > { %v2388_v18 = vsub.f32 %v7724_v5, %v2387_v13 }
0x1222   : > { %v2389_v25 = vmul.f32 %v2388_v18, %v2388_v18 }
0x1224   : > { %v2390_v60 = vsel %vm582_vm1, %v2389_v25, 0.0 }
0x1225   : > { %2391 = vadd.xlane.f32.xlu1 %v2390_v60 }
0x12b2   : > { %v2392_v34 = vpop.xlane.xlu1 %2391 }
0x12b3   : > { %v2393_v55 = vmul.f32 0.03125, %v2392_v34 }
0x12b5   : > { %v2394_v28 = vadd.f32 1e-05, %v2393_v55 }
0x12b7   : > { %6692 = vrsqrt.f32 %v2394_v28 }
0x12c1   : > { %v6693_v37 = vpop.eup %6692 }
0x12c2   : > { %v2396_v38 = vmul.f32 %v6693_v37, %v2388_v18 }
0x12c4   : > { %v2397_v31 = vmul.f32 %v2396_v38, %v7272_v49 }
0x12c6   : > { %v2398_v48 = vadd.f32 %v2397_v31, %v7286_v53 }
0x12c8   : > { %5810 = vmatmul.mubr.msk.f32.vlgmr.msra.gmra.mrb[14].mxu1 %vm466_vm0, %v2398_v48 }
0x12c9   : > { %5813 = vmatpush3.xpose.msk.msra.mxu1 %vm466_vm0, %v7298_v58  ;;  %5814 = vmatprep.mubr.msk.f32.mxu1 %vm6950_vm2, %v6951_v22 }
0x12ca   : > { %5817 = vmatprep.subr.mxu1 %v6951_v22 }
0x139b   : > { %v2468_v41 = vpop.f32.mrb[14].mxu1 }
0x139c   : > { %v2469_v29 = vadd.f32 %v2468_v41, %v7307_v61  ;;  %v5811_v23 = vpop.f32.mrb[15].mxu1 }
0x139e   : > { %5815 = vmatmul.mubr.msk.f32.vlgmr.msra.gmra.mrb[16].mxu1 %vm466_vm0, %v2469_v29 }
0x139f   : > { %5818 = vmatpush3.msra.mxu1 %v7328_v42  ;;  %5819 = vmatprep.mubr.msk.f32.mxu1 %vm6950_vm2, %v6951_v22 }
0x13a0   : > { %6356 = vmatprep.subr.bf16.mxu1 %v6949_v17 }
0x1471   : > { %v2541_v46 = vpop.f32.mrb[16].mxu1 }
0x1472   : > { %v2545_v24 = vmul.f32 0.17677669, %v2541_v46  ;;  %v5816_v57 = vpop.f32.mrb[17].mxu1 }
0x1474   : > { %v2546_v32 = vsel %vm760_vm3, %v2545_v24, -inf }
0x1475   : > { %v2547_v3 = vrot.slane %v2546_v32, 4 }
0x1477   : > { %v2548_v4 = vmax.f32 %v2546_v32, %v2547_v3 }
0x1479   : > { %v2549_v33 = vrot.slane %v2548_v4, 2 }
0x147b   : > { %v2550_v50 = vmax.f32 %v2548_v4, %v2549_v33 }
0x147d   : > { %v2551_v13 = vrot.slane %v2550_v50, 1 }
0x147f   : > { %v2552_v18 = vmax.f32 %v2550_v50, %v2551_v13 }
0x1481   : > { %v2553_v25 = vsub.f32 %v2545_v24, %v2552_v18 }
0x1483   : > { %v2554_v60 = vmul.f32 1.442695, %v2553_v25 }
0x1485   : > { %6694 = vpow2.f32 %v2554_v60 }
0x148f   : > { %v6695_v34 = vpop.eup %6694 }
0x1490   : > { %v2556_v55 = vsel %vm760_vm3, %v6695_v34, 0.0 }
0x1491   : > { %v2557_v28 = vrot.slane %v2556_v55, 4 }
0x1493   : > { %v2558_v37 = vadd.f32 %v2557_v28, %v2556_v55 }
0x1495   : > { %v2559_v38 = vrot.slane %v2558_v37, 2 }
0x1497   : > { %v2560_v31 = vadd.f32 %v2559_v38, %v2558_v37 }
0x1499   : > { %v2561_v48 = vrot.slane %v2560_v31, 1 }
0x149b   : > { %v2562_v41 = vadd.f32 %v2561_v48, %v2560_v31 }
0x149d   : > { %6696 = vrcp.f32 %v2562_v41 }
0x14a7   : > { %v6697_v29 = vpop.eup %6696 }
0x14a8   : > { %v2564_v23 = vmul.f32 %v6697_v29, %v6695_v34 }
0x14aa   : > { %v2565_v46 = vadd.f32 1e-08, %v2564_v23 }
0x14ac   : > { %v2566_v57 = vsel %vm760_vm3, %v2565_v46, 0.0 }
0x14ad   : > { %2567 = vadd.xlane.f32.xlu0 %v2566_v57 }
0x153a   : > { %v2568_v32 = vpop.xlane.xlu0 %2567 }
0x153b   : > { %6698 = vrcp.f32 %v2568_v32 }
0x1545   : > { %v6699_v24 = vpop.eup %6698 }
0x1546   : > { %v2570_v3 = vmul.f32 %v6699_v24, %v2565_v46 }
0x1548   : > { %5820 = vmatmul.mubr.msk.f32.vlgmr.msra.gmra.mrb[18].mxu1 %vm790_vm4, %v2570_v3 }
0x1549   : > { %6358 = vmatpush3.bf16.msra.mxu1 %v7338_v47  ;;  %5830 = vmatprep.mubr.msk.f32.mxu1 %vm6950_vm2, %v6951_v22 }
0x154a   : > { %6359 = vmatprep.subr.bf16.mxu1 %v6949_v17 }
0x154d   : > { %6361 = vmatpush3.bf16.msra.mxu1 %v7348_v56 }
0x154e   : > { %6362 = vmatprep.subr.bf16.mxu1 %v6949_v17 }
0x161b   : > { %v2640_v4 = vpop.f32.mrb[18].mxu1 }
0x161c   : > { %v5821_v33 = vpop.f32.mrb[19].mxu1  ;;  %5831 = vmatmul.mubr.msk.f32.vlgmr.msra.gmra.mrb[20].mxu1 %vm466_vm0, %v2640_v4  ;;  %5853 = vmatmul.mubr.msk.f32.vlgmr.msra.gmra.mrb[32].mxu0 %vm466_vm0, %v2640_v4 }
0x161d   : > { %6364 = vmatpush3.bf16.msra.mxu1 %v7316_v36  ;;  %6382 = vmatpush3.bf16.msra.mxu0 %v7407_v20 }
0x161e   : > { %6365 = vmatprep.subr.bf16.mxu1 %v6949_v17  ;;  %6383 = vmatprep.subr.bf16.mxu0 %v6949_v17 }
0x161f   : > { %5841 = vmatprep.mubr.msk.f32.mxu1 %vm6950_vm2, %v6951_v22  ;;  %5874 = vmatprep.mubr.msk.f32.mxu0 %vm6950_vm2, %v6951_v22 }
0x1621   : > { %6367 = vmatpush3.bf16.msra.mxu1 %v7320_v39  ;;  %6385 = vmatpush3.bf16.msra.mxu0 %v7418_v26 }
0x1622   : > { %6374 = vmatprep.subr.bf16.mxu1 %v6949_v17  ;;  %6392 = vmatprep.subr.bf16.mxu0 %v6949_v17 }
0x1624   : > { %5842 = vmatmul.mubr.msk.f32.vlgmr.msra.gmra.mrb[22].mxu1 %vm466_vm0, %v7724_v5  ;;  %5875 = vmatmul.mubr.msk.f32.vlgmr.msra.gmra.mrb[34].mxu0 %vm466_vm0, %v2640_v4 }
0x1625   : > { %6376 = vmatpush3.bf16.msra.mxu1 %v7355_v62  ;;  %5863 = vmatprep.mubr.msk.f32.mxu1 %vm6950_vm2, %v6951_v22 }
0x1626   : > { %6377 = vmatprep.subr.bf16.mxu1 %v6949_v17  ;;  %6394 = vmatpush3.bf16.msra.mxu0 %v7479_v54 }
0x1627   : > { %6395 = vmatprep.subr.bf16.mxu0 %v6949_v17  ;;  %5896 = vmatprep.mubr.msk.f32.mxu0 %vm6950_vm2, %v6951_v22 }
0x1629   : > { %6379 = vmatpush3.bf16.msra.mxu1 %v7359_v2 }
0x162a   : > { %6386 = vmatprep.subr.bf16.mxu1 %v6949_v17  ;;  %6397 = vmatpush3.bf16.msra.mxu0 %v7489_v0 }
0x162b   : > { %6422 = vmatprep.subr.bf16.mxu0 %v6949_v17 }
0x162c   : > { %5864 = vmatmul.mubr.msk.f32.vlgmr.msra.gmra.mrb[24].mxu1 %vm466_vm0, %v7724_v5 }
0x162d   : > { %6388 = vmatpush3.bf16.msra.mxu1 %v7367_v6  ;;  %5885 = vmatprep.mubr.msk.f32.mxu1 %vm6950_vm2, %v6951_v22 }
0x162e   : > { %6389 = vmatprep.subr.bf16.mxu1 %v6949_v17 }
0x1631   : > { %6391 = vmatpush3.bf16.msra.mxu1 %v7370_v8 }
0x1632   : > { %6398 = vmatprep.subr.bf16.mxu1 %v6949_v17 }
0x1634   : > { %5886 = vmatmul.mubr.msk.f32.vlgmr.msra.gmra.mrb[26].mxu1 %vm466_vm0, %v7724_v5 }
0x1635   : > { %6400 = vmatpush3.bf16.msra.mxu1 %v7502_v7  ;;  %5931 = vmatprep.mubr.msk.f32.mxu1 %vm6950_vm2, %v6951_v22 }
0x1636   : > { %6401 = vmatprep.subr.bf16.mxu1 %v6949_v17 }
0x1639   : > { %6403 = vmatpush3.bf16.msra.mxu1 %v7508_v9 }
0x163a   : > { %6404 = vmatprep.subr.bf16.mxu1 %v6949_v17 }
0x163d   : > { %6406 = vmatpush3.bf16.msra.mxu1 %v7518_v15 }
0x163e   : > { %6407 = vmatprep.subr.bf16.mxu1 %v6949_v17 }
0x1641   : > { %6409 = vmatpush3.bf16.msra.mxu1 %v7528_v21 }
0x1642   : > { %6410 = vmatprep.subr.bf16.mxu1 %v6949_v17 }
0x1645   : > { %6412 = vmatpush3.bf16.msra.mxu1 %v7538_v27 }
0x1646   : > { %6413 = vmatprep.subr.bf16.mxu1 %v6949_v17 }
0x1649   : > { %6415 = vmatpush3.bf16.msra.mxu1 %v7548_v30 }
0x164a   : > { %6416 = vmatprep.subr.bf16.mxu1 %v6949_v17 }
0x164d   : > { %6418 = vmatpush3.bf16.msra.mxu1 %v7558_v40 }
0x164e   : > { %6419 = vmatprep.subr.bf16.mxu1 %v6949_v17 }
0x1651   : > { %6421 = vmatpush3.bf16.msra.mxu1 %v7588_v12 }
0x1652   : > { %6440 = vmatprep.subr.bf16.mxu1 %v6949_v17 }
0x16ef   : > { %v2713_v50 = vpop.f32.mrb[20].mxu1  ;;  %v2864_v13 = vpop.f32.mrb[32].mxu0 }
0x16f0   : > { %v5832_v18 = vpop.f32.mrb[21].mxu1  ;;  %v5854_v25 = vpop.f32.mrb[33].mxu0  ;;  %v2714_v60 = vadd.f32 %v2713_v50, %v7431_v35  ;;  %v2865_v41 = vadd.f32 %v2864_v13, %v7444_v52 }
0x16f7   : > { %v2786_v34 = vpop.f32.mrb[22].mxu1  ;;  %v3012_v55 = vpop.f32.mrb[34].mxu0 }
0x16f8   : > { %v2790_v28 = vadd.f32 %v2786_v34, %v2714_v60  ;;  %v5843_v37 = vpop.f32.mrb[23].mxu1  ;;  %v5876_v38 = vpop.f32.mrb[35].mxu0  ;;  %v3013_v13 = vadd.f32 %v3012_v55, %v7462_v14 }
0x16fa   : > { %v2791_v31 = vadd.f32 %v2790_v28, %v7438_v45 }
0x16fc   : > { %v5177_v48 = vmul.f32 -1.442695, %v2791_v31 }
0x16fe   : > { %6700 = vpow2.f32 %v5177_v48 }
0x16ff   : > { %v2934_v29 = vpop.f32.mrb[24].mxu1 }
0x1700   : > { %v2938_v23 = vadd.f32 %v2934_v29, %v2865_v41  ;;  %v5865_v46 = vpop.f32.mrb[25].mxu1 }
0x1702   : > { %v2939_v57 = vadd.f32 %v2938_v23, %v7450_v63 }
0x1704   : > { %v5180_v32 = vmul.f32 -1.442695, %v2939_v57 }
0x1706   : > { %6702 = vpow2.f32 %v5180_v32 }
0x1707   : > { %v3082_v24 = vpop.f32.mrb[26].mxu1 }
0x1708   : > { %v6701_v3 = vpop.eup %6700  ;;  %v5887_v4 = vpop.f32.mrb[27].mxu1  ;;  %v3083_v25 = vadd.f32 %v3082_v24, %v7456_v10 }
0x1709   : > { %v2795_v33 = vadd.f32 1.0, %v6701_v3 }
0x170b   : > { %6704 = vrcp.f32 %v2795_v33 }
0x1710   : > { %v6703_v50 = vpop.eup %6702 }
0x1711   : > { %v2943_v18 = vadd.f32 1.0, %v6703_v50 }
0x1713   : > { %6706 = vrcp.f32 %v2943_v18 }
0x1715   : > { %v6705_v60 = vpop.eup %6704 }
0x1716   : > { %v3086_v34 = vmul.f32 %v6705_v60, %v3083_v25 }
0x1718   : > { %v3087_v28 = vadd.f32 %v3086_v34, %v3013_v13 }
0x171a   : > { %6708 = vtanh.f32 %v3087_v28 }
0x171d   : > { %v6707_v37 = vpop.eup %6706 }
0x171e   : > { %v3089_v38 = vsub.f32 1.0, %v6707_v37  ;;  %v3091_v41 = vmul.f32 %v6707_v37, %v7724_v5 }
0x1724   : > { %v6709_v31 = vpop.eup %6708 }
0x1725   : > { %v3090_v48 = vmul.f32 %v6709_v31, %v3089_v38 }
0x1727   : > { %v3092_v29 = vadd.f32 %v3091_v41, %v3090_v48 }
0x1729   : > { %v3093_v23 = vsel %vm582_vm1, %v3092_v29, 0.0 }
0x172a   : > { %3094 = vadd.xlane.f32.xlu1 %v3093_v23 }
0x17b7   : > { %v3095_v46 = vpop.xlane.xlu1 %3094 }
0x17b8   : > { %v3096_v57 = vmul.f32 0.03125, %v3095_v46 }
0x17ba   : > { %v3097_v32 = vsub.f32 %v3092_v29, %v3096_v57 }
0x17bc   : > { %v3098_v24 = vmul.f32 %v3097_v32, %v3097_v32 }
0x17be   : > { %v3099_v55 = vsel %vm582_vm1, %v3098_v24, 0.0 }
0x17bf   : > { %3100 = vadd.xlane.f32.xlu0 %v3099_v55 }
0x184c   : > { %v3101_v3 = vpop.xlane.xlu0 %3100 }
0x184d   : > { %v3102_v4 = vmul.f32 0.03125, %v3101_v3 }
0x184f   : > { %v3103_v33 = vadd.f32 1e-05, %v3102_v4 }
0x1851   : > { %6710 = vrsqrt.f32 %v3103_v33 }
0x185b   : > { %v6711_v50 = vpop.eup %6710 }
0x185c   : > { %v3105_v18 = vmul.f32 %v6711_v50, %v3097_v32 }
0x185e   : > { %v3106_v25 = vmul.f32 %v3105_v18, %v7566_v1 }
0x1860   : > { %v3107_v5 = vadd.f32 %v3106_v25, %v7571_v59 }
0x1862   : > { %5897 = vmatmul.mubr.msk.f32.vlgmr.msra.gmra.mrb[36].mxu0 %vm466_vm0, %v3107_v5 }
0x1863   : > { %6424 = vmatpush3.bf16.msra.mxu0 %v7261_v44  ;;  %5942 = vmatprep.mubr.msk.f32.mxu0 %vm6950_vm2, %v6951_v22 }
0x1864   : > { %6425 = vmatprep.subr.bf16.mxu0 %v6949_v17 }
0x1867   : > { %6427 = vmatpush3.bf16.msra.mxu0 %v7277_v51 }
0x1868   : > { %5945 = vmatprep.subr.mxu0 %v6951_v22 }
0x1935   : > { %v3177_v60 = vpop.f32.mrb[36].mxu0 }
0x1936   : > { %v3178_v13 = vadd.f32 %v7595_v43, %v3177_v60  ;;  %v5898_v34 = vpop.f32.mrb[37].mxu0 }
0x1938   : > { %v3181_v28 = vmax.f32 %v3178_v13, 0.0 }
0x193a   : > { %5932 = vmatmul.mubr.f32.vlgmr.msra.gmra.mrb[28].mxu1 %v3181_v28 }
0x193b   : > { %6442 = vmatpush3.bf16.msra.mxu1 %v7385_v11  ;;  %5985 = vmatprep.mubr.msk.f32.mxu1 %vm6950_vm2, %v6951_v22 }
0x193c   : > { %6443 = vmatprep.subr.bf16.mxu1 %v6949_v17 }
0x193f   : > { %6445 = vmatpush3.bf16.msra.mxu1 %v7395_v16 }
0x1940   : > { %6452 = vmatprep.subr.bf16.mxu1 %v6949_v17 }
0x1a0d   : > { %v3248_v37 = vpop.f32.mrb[28].mxu1 }
0x1a0e   : > { %v3252_v38 = vadd.f32 %v3248_v37, %v3092_v29  ;;  %v5933_v31 = vpop.f32.mrb[29].mxu1 }
0x1a10   : > { %v7837_v48 = vadd.f32 %v3252_v38, %v7607_v19 }
0x1a12   : > { %v3254_v43 = vsel %vm582_vm1, %v7837_v48, 0.0 }
0x1a13   : > { %3255 = vadd.xlane.f32.xlu1 %v3254_v43 }
0x1aa0   : > { %v3256_v41 = vpop.xlane.xlu1 %3255 }
0x1aa1   : > { %v3257_v23 = vmul.f32 0.03125, %v3256_v41 }
0x1aa3   : > { %v3258_v46 = vsub.f32 %v7837_v48, %v3257_v23 }
0x1aa5   : > { %v3259_v57 = vmul.f32 %v3258_v46, %v3258_v46 }
0x1aa7   : > { %v3260_v32 = vsel %vm582_vm1, %v3259_v57, 0.0 }
0x1aa8   : > { %3261 = vadd.xlane.f32.xlu0 %v3260_v32 }
0x1b35   : > { %v3262_v24 = vpop.xlane.xlu0 %3261 }
0x1b36   : > { %v3263_v55 = vmul.f32 0.03125, %v3262_v24 }
0x1b38   : > { %v3264_v3 = vadd.f32 1e-05, %v3263_v55 }
0x1b3a   : > { %6712 = vrsqrt.f32 %v3264_v3 }
0x1b44   : > { %v6713_v29 = vpop.eup %6712 }
0x1b45   : > { %v3266_v4 = vmul.f32 %v6713_v29, %v3258_v46 }
0x1b47   : > { %v3267_v33 = vmul.f32 %v3266_v4, %v7272_v49 }
0x1b49   : > { %v3268_v50 = vadd.f32 %v3267_v33, %v7286_v53 }
0x1b4b   : > { %5943 = vmatmul.mubr.msk.f32.vlgmr.msra.gmra.mrb[38].mxu0 %vm466_vm0, %v3268_v50 }
0x1b4c   : > { %5946 = vmatpush3.xpose.msk.msra.mxu0 %vm466_vm0, %v7298_v58  ;;  %5947 = vmatprep.mubr.msk.f32.mxu0 %vm6950_vm2, %v6951_v22 }
0x1b4d   : > { %5950 = vmatprep.subr.mxu0 %v6951_v22 }
0x1c1e   : > { %v3338_v18 = vpop.f32.mrb[38].mxu0 }
0x1c1f   : > { %v3339_v25 = vadd.f32 %v3338_v18, %v7307_v61  ;;  %v5944_v5 = vpop.f32.mrb[39].mxu0 }
0x1c21   : > { %5948 = vmatmul.mubr.msk.f32.vlgmr.msra.gmra.mrb[40].mxu0 %vm466_vm0, %v3339_v25 }
0x1c22   : > { %5951 = vmatpush3.msra.mxu0 %v7328_v42  ;;  %5952 = vmatprep.mubr.msk.f32.mxu0 %vm6950_vm2, %v6951_v22 }
0x1c23   : > { %6428 = vmatprep.subr.bf16.mxu0 %v6949_v17 }
0x1cf4   : > { %v3411_v60 = vpop.f32.mrb[40].mxu0 }
0x1cf5   : > { %v3415_v13 = vmul.f32 0.17677669, %v3411_v60  ;;  %v5949_v34 = vpop.f32.mrb[41].mxu0 }
0x1cf7   : > { %v3416_v28 = vsel %vm760_vm3, %v3415_v13, -inf }
0x1cf8   : > { %v3417_v37 = vrot.slane %v3416_v28, 4 }
0x1cfa   : > { %v3418_v38 = vmax.f32 %v3416_v28, %v3417_v37 }
0x1cfc   : > { %v3419_v31 = vrot.slane %v3418_v38, 2 }
0x1cfe   : > { %v3420_v43 = vmax.f32 %v3418_v38, %v3419_v31 }
0x1d00   : > { %v3421_v41 = vrot.slane %v3420_v43, 1 }
0x1d02   : > { %v3422_v23 = vmax.f32 %v3420_v43, %v3421_v41 }
0x1d04   : > { %v3423_v46 = vsub.f32 %v3415_v13, %v3422_v23 }
0x1d06   : > { %v3424_v57 = vmul.f32 1.442695, %v3423_v46 }
0x1d08   : > { %6714 = vpow2.f32 %v3424_v57 }
0x1d12   : > { %v6715_v32 = vpop.eup %6714 }
0x1d13   : > { %v3426_v24 = vsel %vm760_vm3, %v6715_v32, 0.0 }
0x1d14   : > { %v3427_v55 = vrot.slane %v3426_v24, 4 }
0x1d16   : > { %v3428_v3 = vadd.f32 %v3427_v55, %v3426_v24 }
0x1d18   : > { %v3429_v29 = vrot.slane %v3428_v3, 2 }
0x1d1a   : > { %v3430_v4 = vadd.f32 %v3429_v29, %v3428_v3 }
0x1d1c   : > { %v3431_v33 = vrot.slane %v3430_v4, 1 }
0x1d1e   : > { %v3432_v50 = vadd.f32 %v3431_v33, %v3430_v4 }
0x1d20   : > { %6716 = vrcp.f32 %v3432_v50 }
0x1d2a   : > { %v6717_v18 = vpop.eup %6716 }
0x1d2b   : > { %v3434_v25 = vmul.f32 %v6717_v18, %v6715_v32 }
0x1d2d   : > { %v3435_v5 = vadd.f32 1e-08, %v3434_v25 }
0x1d2f   : > { %v3436_v60 = vsel %vm760_vm3, %v3435_v5, 0.0 }
0x1d30   : > { %3437 = vadd.xlane.f32.xlu1 %v3436_v60 }
0x1dbd   : > { %v3438_v34 = vpop.xlane.xlu1 %3437 }
0x1dbe   : > { %6718 = vrcp.f32 %v3438_v34 }
0x1dc8   : > { %v6719_v13 = vpop.eup %6718 }
0x1dc9   : > { %v3440_v28 = vmul.f32 %v6719_v13, %v3435_v5 }
0x1dcb   : > { %5953 = vmatmul.mubr.msk.f32.vlgmr.msra.gmra.mrb[42].mxu0 %vm790_vm4, %v3440_v28 }
0x1dcc   : > { %6430 = vmatpush3.bf16.msra.mxu0 %v7338_v47  ;;  %5963 = vmatprep.mubr.msk.f32.mxu0 %vm6950_vm2, %v6951_v22 }
0x1dcd   : > { %6431 = vmatprep.subr.bf16.mxu0 %v6949_v17 }
0x1dd0   : > { %6433 = vmatpush3.bf16.msra.mxu0 %v7348_v56 }
0x1dd1   : > { %6434 = vmatprep.subr.bf16.mxu0 %v6949_v17 }
0x1e9e   : > { %v3510_v37 = vpop.f32.mrb[42].mxu0 }
0x1e9f   : > { %v5954_v38 = vpop.f32.mrb[43].mxu0  ;;  %5964 = vmatmul.mubr.msk.f32.vlgmr.msra.gmra.mrb[44].mxu0 %vm466_vm0, %v3510_v37  ;;  %5986 = vmatmul.mubr.msk.f32.vlgmr.msra.gmra.mrb[30].mxu1 %vm466_vm0, %v3510_v37 }
0x1ea0   : > { %6436 = vmatpush3.bf16.msra.mxu0 %v7316_v36  ;;  %6454 = vmatpush3.bf16.msra.mxu1 %v7407_v20 }
0x1ea1   : > { %6437 = vmatprep.subr.bf16.mxu0 %v6949_v17  ;;  %6455 = vmatprep.subr.bf16.mxu1 %v6949_v17 }
0x1ea2   : > { %5974 = vmatprep.mubr.msk.f32.mxu0 %vm6950_vm2, %v6951_v22  ;;  %6007 = vmatprep.mubr.msk.f32.mxu1 %vm6950_vm2, %v6951_v22 }
0x1ea4   : > { %6439 = vmatpush3.bf16.msra.mxu0 %v7320_v39  ;;  %6457 = vmatpush3.bf16.msra.mxu1 %v7418_v26 }
0x1ea5   : > { %6446 = vmatprep.subr.bf16.mxu0 %v6949_v17  ;;  %6464 = vmatprep.subr.bf16.mxu1 %v6949_v17 }
0x1ea7   : > { %5975 = vmatmul.mubr.msk.f32.vlgmr.msra.gmra.mrb[46].mxu0 %vm466_vm0, %v7837_v48  ;;  %6008 = vmatmul.mubr.msk.f32.vlgmr.msra.gmra.mrb[32].mxu1 %vm466_vm0, %v3510_v37 }
0x1ea8   : > { %6448 = vmatpush3.bf16.msra.mxu0 %v7355_v62  ;;  %5996 = vmatprep.mubr.msk.f32.mxu0 %vm6950_vm2, %v6951_v22 }
0x1ea9   : > { %6449 = vmatprep.subr.bf16.mxu0 %v6949_v17  ;;  %6466 = vmatpush3.bf16.msra.mxu1 %v7479_v54 }
0x1eaa   : > { %6467 = vmatprep.subr.bf16.mxu1 %v6949_v17  ;;  %6029 = vmatprep.mubr.msk.f32.mxu1 %vm6950_vm2, %v6951_v22 }
0x1eac   : > { %6451 = vmatpush3.bf16.msra.mxu0 %v7359_v2 }
0x1ead   : > { %6458 = vmatprep.subr.bf16.mxu0 %v6949_v17  ;;  %6469 = vmatpush3.bf16.msra.mxu1 %v7489_v0 }
0x1eae   : > { %6494 = vmatprep.subr.bf16.mxu1 %v6949_v17 }
0x1eaf   : > { %5997 = vmatmul.mubr.msk.f32.vlgmr.msra.gmra.mrb[48].mxu0 %vm466_vm0, %v7837_v48 }
0x1eb0   : > { %6460 = vmatpush3.bf16.msra.mxu0 %v7367_v6  ;;  %6018 = vmatprep.mubr.msk.f32.mxu0 %vm6950_vm2, %v6951_v22 }
0x1eb1   : > { %6461 = vmatprep.subr.bf16.mxu0 %v6949_v17 }
0x1eb4   : > { %6463 = vmatpush3.bf16.msra.mxu0 %v7370_v8 }
0x1eb5   : > { %6470 = vmatprep.subr.bf16.mxu0 %v6949_v17 }
0x1eb7   : > { %6019 = vmatmul.mubr.msk.f32.vlgmr.msra.gmra.mrb[50].mxu0 %vm466_vm0, %v7837_v48 }
0x1eb8   : > { %6472 = vmatpush3.bf16.msra.mxu0 %v7502_v7  ;;  %6064 = vmatprep.mubr.msk.f32.mxu0 %vm6950_vm2, %v6951_v22 }
0x1eb9   : > { %6473 = vmatprep.subr.bf16.mxu0 %v6949_v17 }
0x1ebc   : > { %6475 = vmatpush3.bf16.msra.mxu0 %v7508_v9 }
0x1ebd   : > { %6476 = vmatprep.subr.bf16.mxu0 %v6949_v17 }
0x1ec0   : > { %6478 = vmatpush3.bf16.msra.mxu0 %v7518_v15 }
0x1ec1   : > { %6479 = vmatprep.subr.bf16.mxu0 %v6949_v17 }
0x1ec4   : > { %6481 = vmatpush3.bf16.msra.mxu0 %v7528_v21 }
0x1ec5   : > { %6482 = vmatprep.subr.bf16.mxu0 %v6949_v17 }
0x1ec8   : > { %6484 = vmatpush3.bf16.msra.mxu0 %v7538_v27 }
0x1ec9   : > { %6485 = vmatprep.subr.bf16.mxu0 %v6949_v17 }
0x1ecc   : > { %6487 = vmatpush3.bf16.msra.mxu0 %v7548_v30 }
0x1ecd   : > { %6488 = vmatprep.subr.bf16.mxu0 %v6949_v17 }
0x1ed0   : > { %6490 = vmatpush3.bf16.msra.mxu0 %v7558_v40 }
0x1ed1   : > { %6491 = vmatprep.subr.bf16.mxu0 %v6949_v17 }
0x1ed4   : > { %6493 = vmatpush3.bf16.msra.mxu0 %v7588_v12 }
0x1ed5   : > { %6512 = vmatprep.subr.bf16.mxu0 %v6949_v17 }
0x1f72   : > { %v3583_v31 = vpop.f32.mrb[44].mxu0  ;;  %v3734_v43 = vpop.f32.mrb[30].mxu1 }
0x1f73   : > { %v5965_v41 = vpop.f32.mrb[45].mxu0  ;;  %v5987_v23 = vpop.f32.mrb[31].mxu1  ;;  %v3584_v46 = vadd.f32 %v3583_v31, %v7431_v35  ;;  %v3735_v33 = vadd.f32 %v3734_v43, %v7444_v52 }
0x1f7a   : > { %v3656_v57 = vpop.f32.mrb[46].mxu0  ;;  %v3882_v32 = vpop.f32.mrb[32].mxu1 }
0x1f7b   : > { %v3660_v24 = vadd.f32 %v3656_v57, %v3584_v46  ;;  %v5976_v55 = vpop.f32.mrb[47].mxu0  ;;  %v6009_v3 = vpop.f32.mrb[33].mxu1  ;;  %v3883_v43 = vadd.f32 %v3882_v32, %v7462_v14 }
0x1f7d   : > { %v3661_v29 = vadd.f32 %v3660_v24, %v7438_v45 }
0x1f7f   : > { %v5190_v4 = vmul.f32 -1.442695, %v3661_v29 }
0x1f81   : > { %6720 = vpow2.f32 %v5190_v4 }
0x1f82   : > { %v3804_v50 = vpop.f32.mrb[48].mxu0 }
0x1f83   : > { %v3808_v18 = vadd.f32 %v3804_v50, %v3735_v33  ;;  %v5998_v25 = vpop.f32.mrb[49].mxu0 }
0x1f85   : > { %v3809_v5 = vadd.f32 %v3808_v18, %v7450_v63 }
0x1f87   : > { %v5193_v60 = vmul.f32 -1.442695, %v3809_v5 }
0x1f89   : > { %6722 = vpow2.f32 %v5193_v60 }
0x1f8a   : > { %v3952_v34 = vpop.f32.mrb[50].mxu0 }
0x1f8b   : > { %v6721_v13 = vpop.eup %6720  ;;  %v6020_v28 = vpop.f32.mrb[51].mxu0  ;;  %v3953_v41 = vadd.f32 %v3952_v34, %v7456_v10 }
0x1f8c   : > { %v3665_v37 = vadd.f32 1.0, %v6721_v13 }
0x1f8e   : > { %6724 = vrcp.f32 %v3665_v37 }
0x1f93   : > { %v6723_v38 = vpop.eup %6722 }
0x1f94   : > { %v3813_v31 = vadd.f32 1.0, %v6723_v38 }
0x1f96   : > { %6726 = vrcp.f32 %v3813_v31 }
0x1f98   : > { %v6725_v23 = vpop.eup %6724 }
0x1f99   : > { %v3956_v46 = vmul.f32 %v6725_v23, %v3953_v41  ;;  %v7945_v23 = vld [vmem:[%s8111_s7 + $0x20] ss:$0 sm:$0xff] }
0x1f9b   : > { %v3957_v57 = vadd.f32 %v3956_v46, %v3883_v43 }
0x1f9d   : > { %6728 = vtanh.f32 %v3957_v57 }
0x1fa0   : > { %v6727_v24 = vpop.eup %6726 }
0x1fa1   : > { %v3959_v55 = vsub.f32 1.0, %v6727_v24  ;;  %v3961_v4 = vmul.f32 %v6727_v24, %v7837_v48 }
0x1fa7   : > { %v6729_v3 = vpop.eup %6728 }
0x1fa8   : > { %v3960_v29 = vmul.f32 %v6729_v3, %v3959_v55 }
0x1faa   : > { %v3962_v33 = vadd.f32 %v3961_v4, %v3960_v29 }
0x1fac   : > { %v3963_v50 = vsel %vm582_vm1, %v3962_v33, 0.0 }
0x1fad   : > { %3964 = vadd.xlane.f32.xlu0 %v3963_v50 }
0x203a   : > { %v3965_v18 = vpop.xlane.xlu0 %3964 }
0x203b   : > { %v3966_v25 = vmul.f32 0.03125, %v3965_v18 }
0x203d   : > { %v3967_v5 = vsub.f32 %v3962_v33, %v3966_v25 }
0x203f   : > { %v3968_v60 = vmul.f32 %v3967_v5, %v3967_v5 }
0x2041   : > { %v3969_v32 = vsel %vm582_vm1, %v3968_v60, 0.0 }
0x2042   : > { %3970 = vadd.xlane.f32.xlu1 %v3969_v32 }
0x20cf   : > { %v3971_v34 = vpop.xlane.xlu1 %3970 }
0x20d0   : > { %v3972_v13 = vmul.f32 0.03125, %v3971_v34 }
0x20d2   : > { %v3973_v28 = vadd.f32 1e-05, %v3972_v13 }
0x20d4   : > { %6730 = vrsqrt.f32 %v3973_v28 }
0x20de   : > { %v6731_v37 = vpop.eup %6730 }
0x20df   : > { %v3975_v38 = vmul.f32 %v6731_v37, %v3967_v5 }
0x20e1   : > { %v3976_v31 = vmul.f32 %v3975_v38, %v7566_v1 }
0x20e3   : > { %v3977_v48 = vadd.f32 %v3976_v31, %v7571_v59 }
0x20e5   : > { %6030 = vmatmul.mubr.msk.f32.vlgmr.msra.gmra.mrb[34].mxu1 %vm466_vm0, %v3977_v48 }
0x20e6   : > { %6496 = vmatpush3.bf16.msra.mxu1 %v7261_v44  ;;  %6075 = vmatprep.mubr.msk.f32.mxu1 %vm6950_vm2, %v6951_v22 }
0x20e7   : > { %6497 = vmatprep.subr.bf16.mxu1 %v6949_v17 }
0x20ea   : > { %6499 = vmatpush3.bf16.msra.mxu1 %v7277_v51 }
0x20eb   : > { %6078 = vmatprep.subr.mxu1 %v6951_v22 }
0x21b8   : > { %v4047_v41 = vpop.f32.mrb[34].mxu1 }
0x21b9   : > { %v4048_v43 = vadd.f32 %v7945_v23, %v4047_v41  ;;  %v6031_v46 = vpop.f32.mrb[35].mxu1 }
0x21bb   : > { %v4051_v57 = vmax.f32 %v4048_v43, 0.0 }
0x21bd   : > { %6065 = vmatmul.mubr.f32.vlgmr.msra.gmra.mrb[52].mxu0 %v4051_v57 }
0x21be   : > { %6514 = vmatpush3.bf16.msra.mxu0 %v7385_v11  ;;  %6118 = vmatprep.mubr.msk.f32.mxu0 %vm6950_vm2, %v6951_v22 }
0x21bf   : > { %6515 = vmatprep.subr.bf16.mxu0 %v6949_v17 }
0x21c2   : > { %6517 = vmatpush3.bf16.msra.mxu0 %v7395_v16 }
0x21c3   : > { %6524 = vmatprep.subr.bf16.mxu0 %v6949_v17 }
0x2290   : > { %v4118_v44 = vpop.f32.mrb[52].mxu0 }
0x2291   : > { %v4122_v51 = vadd.f32 %v4118_v44, %v3962_v33  ;;  %v6066_v24 = vpop.f32.mrb[53].mxu0 }
0x2293   : > { %v7955_v55 = vadd.f32 %v4122_v51, %v7607_v19 }
0x2295   : > { %v4124_v3 = vsel %vm582_vm1, %v7955_v55, 0.0 }
0x2296   : > { %4125 = vadd.xlane.f32.xlu0 %v4124_v3 }
0x2323   : > { %v4126_v11 = vpop.xlane.xlu0 %4125 }
0x2324   : > { %v4127_v29 = vmul.f32 0.03125, %v4126_v11 }
0x2326   : > { %v4128_v4 = vsub.f32 %v7955_v55, %v4127_v29 }
0x2328   : > { %v4129_v50 = vmul.f32 %v4128_v4, %v4128_v4 }
0x232a   : > { %v4130_v18 = vsel %vm582_vm1, %v4129_v50, 0.0 }
0x232b   : > { %4131 = vadd.xlane.f32.xlu1 %v4130_v18 }
0x23b8   : > { %v4132_v16 = vpop.xlane.xlu1 %4131 }
0x23b9   : > { %v4133_v25 = vmul.f32 0.03125, %v4132_v16 }
0x23bb   : > { %v4134_v5 = vadd.f32 1e-05, %v4133_v25 }
0x23bd   : > { %6732 = vrsqrt.f32 %v4134_v5 }
0x23c7   : > { %v6733_v33 = vpop.eup %6732 }
0x23c8   : > { %v4136_v60 = vmul.f32 %v6733_v33, %v4128_v4 }
0x23ca   : > { %v4137_v32 = vmul.f32 %v4136_v60, %v7272_v49 }
0x23cc   : > { %v4138_v34 = vadd.f32 %v4137_v32, %v7286_v53 }
0x23ce   : > { %6076 = vmatmul.mubr.msk.f32.vlgmr.msra.gmra.mrb[36].mxu1 %vm466_vm0, %v4138_v34 }
0x23cf   : > { %6079 = vmatpush3.xpose.msk.msra.mxu1 %vm466_vm0, %v7298_v58  ;;  %6080 = vmatprep.mubr.msk.f32.mxu1 %vm6950_vm2, %v6951_v22 }
0x23d0   : > { %6083 = vmatprep.subr.mxu1 %v6951_v22 }
0x24a1   : > { %v4208_v13 = vpop.f32.mrb[36].mxu1 }
0x24a2   : > { %v4209_v28 = vadd.f32 %v4208_v13, %v7307_v61  ;;  %v6077_v37 = vpop.f32.mrb[37].mxu1 }
0x24a4   : > { %6081 = vmatmul.mubr.msk.f32.vlgmr.msra.gmra.mrb[38].mxu1 %vm466_vm0, %v4209_v28 }
0x24a5   : > { %6084 = vmatpush3.msra.mxu1 %v7328_v42  ;;  %6085 = vmatprep.mubr.msk.f32.mxu1 %vm6950_vm2, %v6951_v22 }
0x24a6   : > { %6500 = vmatprep.subr.bf16.mxu1 %v6949_v17 }
0x2577   : > { %v4281_v49 = vpop.f32.mrb[38].mxu1 }
0x2578   : > { %v4285_v53 = vmul.f32 0.17677669, %v4281_v49  ;;  %v6082_v58 = vpop.f32.mrb[39].mxu1 }
0x257a   : > { %v4286_v38 = vsel %vm760_vm3, %v4285_v53, -inf }
0x257b   : > { %v4287_v31 = vrot.slane %v4286_v38, 4 }
0x257d   : > { %v4288_v48 = vmax.f32 %v4286_v38, %v4287_v31 }
0x257f   : > { %v4289_v41 = vrot.slane %v4288_v48, 2 }
0x2581   : > { %v4290_v43 = vmax.f32 %v4288_v48, %v4289_v41 }
0x2583   : > { %v4291_v61 = vrot.slane %v4290_v43, 1 }
0x2585   : > { %v4292_v46 = vmax.f32 %v4290_v43, %v4291_v61 }
0x2587   : > { %v4293_v57 = vsub.f32 %v4285_v53, %v4292_v46 }
0x2589   : > { %v4294_v44 = vmul.f32 1.442695, %v4293_v57 }
0x258b   : > { %6734 = vpow2.f32 %v4294_v44 }
0x2595   : > { %v6735_v42 = vpop.eup %6734 }
0x2596   : > { %v4296_v51 = vsel %vm760_vm3, %v6735_v42, 0.0 }
0x2597   : > { %v4297_v24 = vrot.slane %v4296_v51, 4 }
0x2599   : > { %v4298_v3 = vadd.f32 %v4297_v24, %v4296_v51 }
0x259b   : > { %v4299_v11 = vrot.slane %v4298_v3, 2 }
0x259d   : > { %v4300_v29 = vadd.f32 %v4299_v11, %v4298_v3 }
0x259f   : > { %v4301_v4 = vrot.slane %v4300_v29, 1 }
0x25a1   : > { %v4302_v50 = vadd.f32 %v4301_v4, %v4300_v29 }
0x25a3   : > { %6736 = vrcp.f32 %v4302_v50 }
0x25ad   : > { %v6737_v18 = vpop.eup %6736 }
0x25ae   : > { %v4304_v16 = vmul.f32 %v6737_v18, %v6735_v42 }
0x25b0   : > { %v4305_v25 = vadd.f32 1e-08, %v4304_v16 }
0x25b2   : > { %v4306_v5 = vsel %vm760_vm3, %v4305_v25, 0.0 }
0x25b3   : > { %4307 = vadd.xlane.f32.xlu0 %v4306_v5 }
0x2640   : > { %v4308_v33 = vpop.xlane.xlu0 %4307 }
0x2641   : > { %6738 = vrcp.f32 %v4308_v33 }
0x264b   : > { %v6739_v60 = vpop.eup %6738 }
0x264c   : > { %v4310_v32 = vmul.f32 %v6739_v60, %v4305_v25 }
0x264e   : > { %6086 = vmatmul.mubr.msk.f32.vlgmr.msra.gmra.mrb[40].mxu1 %vm790_vm4, %v4310_v32 }
0x264f   : > { %6502 = vmatpush3.bf16.msra.mxu1 %v7338_v47  ;;  %6096 = vmatprep.mubr.msk.f32.mxu1 %vm6950_vm2, %v6951_v22 }
0x2650   : > { %6503 = vmatprep.subr.bf16.mxu1 %v6949_v17 }
0x2653   : > { %6505 = vmatpush3.bf16.msra.mxu1 %v7348_v56 }
0x2654   : > { %6506 = vmatprep.subr.bf16.mxu1 %v6949_v17 }
0x2721   : > { %v4380_v34 = vpop.f32.mrb[40].mxu1 }
0x2722   : > { %v6087_v13 = vpop.f32.mrb[41].mxu1  ;;  %6097 = vmatmul.mubr.msk.f32.vlgmr.msra.gmra.mrb[42].mxu1 %vm466_vm0, %v4380_v34  ;;  %6119 = vmatmul.mubr.msk.f32.vlgmr.msra.gmra.mrb[54].mxu0 %vm466_vm0, %v4380_v34 }
0x2723   : > { %6508 = vmatpush3.bf16.msra.mxu1 %v7316_v36  ;;  %6526 = vmatpush3.bf16.msra.mxu0 %v7407_v20 }
0x2724   : > { %6509 = vmatprep.subr.bf16.mxu1 %v6949_v17  ;;  %6527 = vmatprep.subr.bf16.mxu0 %v6949_v17 }
0x2725   : > { %6107 = vmatprep.mubr.msk.f32.mxu1 %vm6950_vm2, %v6951_v22  ;;  %6140 = vmatprep.mubr.msk.f32.mxu0 %vm6950_vm2, %v6951_v22 }
0x2727   : > { %6511 = vmatpush3.bf16.msra.mxu1 %v7320_v39  ;;  %6529 = vmatpush3.bf16.msra.mxu0 %v7418_v26 }
0x2728   : > { %6518 = vmatprep.subr.bf16.mxu1 %v6949_v17  ;;  %6536 = vmatprep.subr.bf16.mxu0 %v6949_v17 }
0x272a   : > { %6108 = vmatmul.mubr.msk.f32.vlgmr.msra.gmra.mrb[44].mxu1 %vm466_vm0, %v7955_v55  ;;  %6141 = vmatmul.mubr.msk.f32.vlgmr.msra.gmra.mrb[56].mxu0 %vm466_vm0, %v4380_v34 }
0x272b   : > { %6520 = vmatpush3.bf16.msra.mxu1 %v7355_v62  ;;  %6129 = vmatprep.mubr.msk.f32.mxu1 %vm6950_vm2, %v6951_v22 }
0x272c   : > { %6521 = vmatprep.subr.bf16.mxu1 %v6949_v17  ;;  %6538 = vmatpush3.bf16.msra.mxu0 %v7479_v54 }
0x272d   : > { %6539 = vmatprep.subr.bf16.mxu0 %v6949_v17  ;;  %6162 = vmatprep.mubr.msk.f32.mxu0 %vm6950_vm2, %v6951_v22 }
0x272f   : > { %6523 = vmatpush3.bf16.msra.mxu1 %v7359_v2 }
0x2730   : > { %6530 = vmatprep.subr.bf16.mxu1 %v6949_v17  ;;  %6541 = vmatpush3.bf16.msra.mxu0 %v7489_v0 }
0x2732   : > { %6130 = vmatmul.mubr.msk.f32.vlgmr.msra.gmra.mrb[46].mxu1 %vm466_vm0, %v7955_v55 }
0x2733   : > { %6532 = vmatpush3.bf16.msra.mxu1 %v7367_v6  ;;  %6151 = vmatprep.mubr.msk.f32.mxu1 %vm6950_vm2, %v6951_v22 }
0x2734   : > { %6533 = vmatprep.subr.bf16.mxu1 %v6949_v17 }
0x2737   : > { %6535 = vmatpush3.bf16.msra.mxu1 %v7370_v8 }
0x2738   : > { %6542 = vmatprep.subr.bf16.mxu1 %v6949_v17 }
0x273a   : > { %6152 = vmatmul.mubr.msk.f32.vlgmr.msra.gmra.mrb[48].mxu1 %vm466_vm0, %v7955_v55 }
0x273b   : > { %6544 = vmatpush3.bf16.msra.mxu1 %v7502_v7  ;;  %6197 = vmatprep.mubr.msk.f32.mxu1 %vm6950_vm2, %v6951_v22 }
0x273c   : > { %6545 = vmatprep.subr.bf16.mxu1 %v6949_v17 }
0x273f   : > { %6547 = vmatpush3.bf16.msra.mxu1 %v7508_v9 }
0x2740   : > { %6548 = vmatprep.subr.bf16.mxu1 %v6949_v17 }
0x2743   : > { %6550 = vmatpush3.bf16.msra.mxu1 %v7518_v15 }
0x2744   : > { %6551 = vmatprep.subr.bf16.mxu1 %v6949_v17 }
0x2747   : > { %6553 = vmatpush3.bf16.msra.mxu1 %v7528_v21 }
0x2748   : > { %6554 = vmatprep.subr.bf16.mxu1 %v6949_v17 }
0x274b   : > { %6556 = vmatpush3.bf16.msra.mxu1 %v7538_v27 }
0x274c   : > { %6557 = vmatprep.subr.bf16.mxu1 %v6949_v17 }
0x274f   : > { %6559 = vmatpush3.bf16.msra.mxu1 %v7548_v30 }
0x2750   : > { %6560 = vmatprep.subr.bf16.mxu1 %v6949_v17 }
0x2753   : > { %6562 = vmatpush3.bf16.msra.mxu1 %v7558_v40 }
0x2754   : > { %6563 = vmatprep.subr.bf16.mxu1 %v6949_v17 }
0x2757   : > { %6565 = vmatpush3.bf16.msra.mxu1 %v7588_v12 }
0x27f5   : > { %v4453_v22 = vpop.f32.mrb[42].mxu1  ;;  %v4604_v36 = vpop.f32.mrb[54].mxu0 }
0x27f6   : > { %v6098_v39 = vpop.f32.mrb[43].mxu1  ;;  %v6120_v47 = vpop.f32.mrb[55].mxu0  ;;  %v4454_v56 = vadd.f32 %v4453_v22, %v7431_v35  ;;  %v4605_v0 = vadd.f32 %v4604_v36, %v7444_v52 }
0x27fd   : > { %v4526_v62 = vpop.f32.mrb[44].mxu1  ;;  %v4752_v2 = vpop.f32.mrb[56].mxu0 }
0x27fe   : > { %v4530_v6 = vadd.f32 %v4526_v62, %v4454_v56  ;;  %v6109_v8 = vpop.f32.mrb[45].mxu1  ;;  %v6142_v20 = vpop.f32.mrb[57].mxu0  ;;  %v4753_v52 = vadd.f32 %v4752_v2, %v7462_v14 }
0x2800   : > { %v4531_v26 = vadd.f32 %v4530_v6, %v7438_v45 }
0x2802   : > { %v5203_v54 = vmul.f32 -1.442695, %v4531_v26 }
0x2804   : > { %6740 = vpow2.f32 %v5203_v54 }
0x2805   : > { %v4674_v17 = vpop.f32.mrb[46].mxu1 }
0x2806   : > { %v4678_v7 = vadd.f32 %v4674_v17, %v4605_v0  ;;  %v6131_v9 = vpop.f32.mrb[47].mxu1 }
0x2808   : > { %v4679_v15 = vadd.f32 %v4678_v7, %v7450_v63 }
0x280a   : > { %v5206_v21 = vmul.f32 -1.442695, %v4679_v15 }
0x280c   : > { %6742 = vpow2.f32 %v5206_v21 }
0x280d   : > { %v4822_v27 = vpop.f32.mrb[48].mxu1 }
0x280e   : > { %v6741_v35 = vpop.eup %6740  ;;  %v6153_v30 = vpop.f32.mrb[49].mxu1  ;;  %v4823_v45 = vadd.f32 %v4822_v27, %v7456_v10 }
0x280f   : > { %v4535_v40 = vadd.f32 1.0, %v6741_v35 }
0x2811   : > { %6744 = vrcp.f32 %v4535_v40 }
0x2816   : > { %v6743_v12 = vpop.eup %6742 }
0x2817   : > { %v4683_v28 = vadd.f32 1.0, %v6743_v12 }
0x2819   : > { %6746 = vrcp.f32 %v4683_v28 }
0x281b   : > { %v6745_v37 = vpop.eup %6744 }
0x281c   : > { %v4826_v49 = vmul.f32 %v6745_v37, %v4823_v45 }
0x281e   : > { %v4827_v53 = vadd.f32 %v4826_v49, %v4753_v52 }
0x2820   : > { %6748 = vtanh.f32 %v4827_v53 }
0x2823   : > { %v6747_v58 = vpop.eup %6746 }
0x2824   : > { %v4829_v63 = vsub.f32 1.0, %v6747_v58  ;;  %v4831_v48 = vmul.f32 %v6747_v58, %v7955_v55 }
0x282a   : > { %v6749_v38 = vpop.eup %6748 }
0x282b   : > { %v4830_v31 = vmul.f32 %v6749_v38, %v4829_v63 }
0x282d   : > { %v4832_v41 = vadd.f32 %v4831_v48, %v4830_v31 }
0x282f   : > { %v4833_v43 = vsel %vm582_vm1, %v4832_v41, 0.0 }
0x2830   : > { %4834 = vadd.xlane.f32.xlu1 %v4833_v43 }
0x28bd   : > { %v4835_v61 = vpop.xlane.xlu1 %4834 }
0x28be   : > { %v4836_v46 = vmul.f32 0.03125, %v4835_v61 }
0x28c0   : > { %v4837_v10 = vsub.f32 %v4832_v41, %v4836_v46 }
0x28c2   : > { %v4838_v57 = vmul.f32 %v4837_v10, %v4837_v10 }
0x28c4   : > { %v4839_v14 = vsel %vm582_vm1, %v4838_v57, 0.0 }
0x28c5   : > { %4840 = vadd.xlane.f32.xlu0 %v4839_v14 }
0x2952   : > { %v4841_v44 = vpop.xlane.xlu0 %4840 }
0x2953   : > { %v4842_v42 = vmul.f32 0.03125, %v4841_v44 }
0x2955   : > { %v4843_v51 = vadd.f32 1e-05, %v4842_v42 }
0x2957   : > { %6750 = vrsqrt.f32 %v4843_v51 }
0x2961   : > { %v6751_v24 = vpop.eup %6750 }
0x2962   : > { %v4845_v3 = vmul.f32 %v6751_v24, %v4837_v10 }
0x2964   : > { %v4846_v55 = vmul.f32 %v4845_v3, %v7566_v1 }
0x2966   : > { %v4847_v11 = vadd.f32 %v4846_v55, %v7571_v59 }
0x2968   : > { %6163 = vmatmul.mubr.msk.f32.vlgmr.msra.gmra.mrb[58].mxu0 %vm466_vm0, %v4847_v11 }
0x2a3b   : > { %v4917_v29 = vpop.f32.mrb[58].mxu0 }
0x2a3c   : > { %v4918_v4 = vadd.f32 %v7945_v23, %v4917_v29  ;;  %v6164_v50 = vpop.f32.mrb[59].mxu0 }
0x2a3e   : > { %v4921_v18 = vmax.f32 %v4918_v4, 0.0 }
0x2a40   : > { %6198 = vmatmul.mubr.f32.vlgmr.msra.gmra.mrb[50].mxu1 %v4921_v18 }
0x2b13   : > { %v4988_v16 = vpop.f32.mrb[50].mxu1 }
0x2b14   : > { %v4992_v25 = vadd.f32 %v4988_v16, %v4832_v41  ;;  %v6199_v5 = vpop.f32.mrb[51].mxu1 }
0x2b16   : > { %v4993_v1 = vadd.f32 %v4992_v25, %v7607_v19 }
0x2b18   : > { %4994 = vst.msk [vmem:[%s404_s18] sm:$0xf] %vm582_vm1, %v4993_v1 }
0x2b19   : > { %6880 = shalt.err (!%p6877_p0)
}
0x2b1a   : > { %s6881_s9 = scalar_lea.hbm %s8059_s25, 64  ;;  %s6885_s24 = scalar_lea.hbm %s8137_s22, 128 }
0x2b1b   : > { %p6882_p9 = scmp.ne.s32.totalorder %s8059_s25, %s6881_s9  ;;  %p6886_p13 = scmp.lt.u32.totalorder %s8059_s25, %s8137_s22 }
0x2b1c   : > { %p6887_p6 = scmp.lt.u32.totalorder %s6885_s24, %s6881_s9  ;;  %p6889_p3 = scmp.lt.u32.totalorder %s6881_s9, %s8059_s25 }
0x2b1d   : > { %p6883_p8 = pnand %p6882_p9, %p7159_p5 }
0x2b1e   : > { %p6888_p10 = por %p6887_p6, %p6886_p13 }
0x2b1f   : > { %p6884_p11 = pneg %p6883_p8 }
0x2b20   : > { %p6890_p7 = por %p6889_p3, %p6888_p10 }
0x2b22   : > { %p6891_p12 = pnand %p6890_p7, %p6884_p11 }
0x2b24   : > { %6894 = shalt.err (!%p6891_p12)
}
0x2b25   : > { %6580 = dma.vmem_to_hbm [thread:$0]  (%p7159_p5), %s8061_s15, 64, %s8059_s25, %s4996_s28  }
0x2b26 PF: > { %s8138_s23 = sld [smem:[#allocation15_spill]]  ;;  %s8139_s19 = sld [smem:[#allocation16_spill]] }
0x2b27   : > { %p8141_p2 = scmp.ge.s32.totalorder %s6941_s12, 2 }
0x2b2c   : > { %s5021_s13 = sand.u32 1, %s8138_s23   ;;  %p8140_p1 = scmp.ne.s32.totalorder %s8139_s19, 0 }
0x2b2d   : > { %s5022_s26 = scalar_lea.sflag [#allocation4], %s5021_s13 }
0x2b2e   : > { %p6597_p4 = pnand %p8141_p2, %p8140_p1 }
0x2b30   : > { %6924 = dma.done.wait (!%p6597_p4), %s5022_s26, 64  }
0x2b31   : > { %6926 = vsyncadd (!%p6597_p4), %s5022_s26, 4294967232  ;;  %p24_p0 = scmp.ge.s32.totalorder %s7145_s14, 4   ;;  %s8142_s30 = smov %s6933_s10 }
0x2b32   : > { %s8143_s10 = smov %s6937_s11  ;;  %s8144_s11 = smov %s7155_s16 }
0x2b33   : > { %s8145_s12 = smov %s7145_s14  ;;  %26 = sbr.rel (!%p24_p0) target bundleno = 9 (0x9), region = 120 }
0x2b3a   :  { %5027 = vsyncpa [#allocation3], 1 }
0x2b3b   :  { %5029 = vsyncpa [#allocation3 + $0x1], 1 }
0x2b3c   :  { %5030 = vsyncpa [#allocation6], 1 }
0x2b3d   :  { %5031 = vsyncpa [#allocation9], 1 }
0x2b3e   :  { %5032 = vsyncpa [#allocation4], 1 }
0x2b3f   :  { %5034 = vsyncpa [#allocation4 + $0x1], 1 }

</bundles_post_ra>
